<compile_context>
chip_gen: v7x
topology: tpu7x:2x2x1
jax: 0.10.0
libtpu: 0.0.40
codegen_flags: <defaults>
</compile_context>

<pallas_src>
import functools

import jax
import jax.numpy as jnp
from jax.experimental import pallas as pl
from jax.experimental.pallas import tpu as pltpu


GATE_PAD = 128            # each GRU gate padded to a full 128-lane tile (tile-aligned slices)
_VMEM = pl.BlockSpec(memory_space=pltpu.MemorySpace.VMEM)


# ----------------------------------------------------------------------------
# small helpers
# ----------------------------------------------------------------------------
def _round_up(x, m):
    return (x + m - 1) // m * m


def _pad2d(a, rows, cols, dtype=jnp.float32):
    a = a.astype(dtype)
    return jnp.pad(a, ((0, rows - a.shape[0]), (0, cols - a.shape[1])))


def _pad_gemm_lhs(x):
    """Pad an (M, K) GEMM LHS to (mult-of-16, mult-of-128) and cast to bf16 (f32 accumulate)."""
    m, k = x.shape
    return _pad2d(x, _round_up(m, 16), _round_up(k, 128), jnp.bfloat16)


def _im2col_nhwc(x, kh, kw, sh, sw):
    """NHWC im2col, patch columns ordered (ky, kx, ci) to match the flattened weights."""
    b, h, w, c = x.shape
    oh = (h - kh) // sh + 1
    ow = (w - kw) // sw + 1
    cols = []
    for ky in range(kh):
        for kx in range(kw):
            cols.append(x[:, ky:ky + sh * (oh - 1) + 1:sh,
                           kx:kx + sw * (ow - 1) + 1:sw, :])
    patches = jnp.stack(cols, axis=3)                     # (B, oh, ow, kh*kw, C)
    return patches.reshape(b, oh, ow, kh * kw * c), oh, ow


# ----------------------------------------------------------------------------
# Pallas kernels
# ----------------------------------------------------------------------------
def _dual_conv_kernel(xa_ref, wa_ref, ba_ref, xv_ref, wv_ref, bv_ref, oa_ref, ov_ref):
    """Two independent im2col-GEMMs (+bias+ReLU): same conv stage of both encoders."""
    oa = jnp.dot(xa_ref[...], wa_ref[...], preferred_element_type=jnp.float32) + ba_ref[...]
    oa_ref[...] = jnp.maximum(oa, 0.0)
    ov = jnp.dot(xv_ref[...], wv_ref[...], preferred_element_type=jnp.float32) + bv_ref[...]
    ov_ref[...] = jnp.maximum(ov, 0.0)


def _head_kernel(amp_ref, wa_ref, ba_ref, vmp_ref, wv_ref, bv_ref,
                 h_ref, m_ref, wia_ref, wiv_ref, wh_ref, bi_ref, bh_ref, o_ref):
    """Fused head: audio conv3∘FC, visual conv3∘FC (ReLU), implicit concat via split
    input weights, and one masked GRU step with gate-concatenated weights."""
    a_feat = jnp.maximum(
        jnp.dot(amp_ref[...], wa_ref[...], preferred_element_type=jnp.float32) + ba_ref[...],
        0.0)
    v_feat = jnp.maximum(
        jnp.dot(vmp_ref[...], wv_ref[...], preferred_element_type=jnp.float32) + bv_ref[...],
        0.0)

    h = h_ref[...] * m_ref[...]                       # RNNStateEncoder: hidden * masks
    gi = (jnp.dot(a_feat, wia_ref[...], preferred_element_type=jnp.float32)
          + jnp.dot(v_feat, wiv_ref[...], preferred_element_type=jnp.float32)
          + bi_ref[...])
    gh = jnp.dot(h, wh_ref[...], preferred_element_type=jnp.float32) + bh_ref[...]

    g = GATE_PAD                                       # PyTorch GRU gate order: r, z, n
    r = jax.nn.sigmoid(gi[:, 0:g] + gh[:, 0:g])
    z = jax.nn.sigmoid(gi[:, g:2 * g] + gh[:, g:2 * g])
    n = jnp.tanh(gi[:, 2 * g:3 * g] + r * gh[:, 2 * g:3 * g])
    o_ref[...] = (1.0 - z) * n + z * h


def _dual_conv_call(xa, wa, ba, xv, wv, bv):
    return pl.pallas_call(
        _dual_conv_kernel,
        out_shape=(jax.ShapeDtypeStruct((xa.shape[0], wa.shape[1]), jnp.float32),
                   jax.ShapeDtypeStruct((xv.shape[0], wv.shape[1]), jnp.float32)),
        in_specs=[_VMEM] * 6,
        out_specs=(_VMEM, _VMEM),
    )(xa, wa, ba, xv, wv, bv)


def _head_call(amp, wa, ba, vmp, wv, bv, hp, mp, wia, wiv, wh, bi, bh):
    return pl.pallas_call(
        _head_kernel,
        out_shape=jax.ShapeDtypeStruct((hp.shape[0], GATE_PAD), jnp.float32),
        in_specs=[_VMEM] * 13,
        out_specs=_VMEM,
    )(amp, wa, ba, vmp, wv, bv, hp, mp, wia, wiv, wh, bi, bh)


# ----------------------------------------------------------------------------
# one-time parameter preparation (flatten, compose conv3∘FC, pack GRU gates, pad, cast)
# ----------------------------------------------------------------------------
def prepare_params(params, hidden=32):
    def conv_w(w):
        # (Cout, Cin, kh, kw) -> (kh*kw*Cin, Cout), rows in (ky, kx, ci) im2col order
        co, ci, kh, kw = w.shape
        return w.transpose(2, 3, 1, 0).reshape(kh * kw * ci, co)

    def pad_w(w, dtype=jnp.bfloat16):
        k, n = w.shape
        return _pad2d(w, _round_up(k, 128), _round_up(n, 128), dtype)

    def pad_b(b):
        return _pad2d(b.reshape(1, -1), 1, _round_up(b.shape[0], 128), jnp.float32)

    def compose_conv3_fc(w3, b3, wfc, bfc, p_spatial):
        # conv3 (no activation) -> Flatten (torch NCHW order) -> Linear  ==  one GEMM over
        # the per-batch conv3 im2col row (mega-patch).  wfc rows are torch (C, OH, OW) order.
        w3m = conv_w(w3)                                            # (K3, C3)
        c3 = w3.shape[0]
        wfc_pcn = wfc.reshape(c3, p_spatial, -1).transpose(1, 0, 2)  # (P, C3, H)
        w_comb = jnp.einsum("kc,pcn->pkn", w3m, wfc_pcn)
        w_comb = w_comb.reshape(p_spatial * w3m.shape[0], -1)        # (P*K3, H)
        b_comb = jnp.einsum("c,pcn->n", b3, wfc_pcn) + bfc
        return pad_w(w_comb), pad_b(b_comb)

    v, a, g = params["visual"], params["audio"], params["gru"]
    prep = {}
    prep["v_w1"], prep["v_b1"] = pad_w(conv_w(v["conv1_w"])), pad_b(v["conv1_b"])
    prep["v_w2"], prep["v_b2"] = pad_w(conv_w(v["conv2_w"])), pad_b(v["conv2_b"])
    prep["v_wfc"], prep["v_bfc"] = compose_conv3_fc(v["conv3_w"], v["conv3_b"],
                                                    v["fc_w"], v["fc_b"], p_spatial=16)
    prep["a_w1"], prep["a_b1"] = pad_w(conv_w(a["conv1_w"])), pad_b(a["conv1_b"])
    prep["a_w2"], prep["a_b2"] = pad_w(conv_w(a["conv2_w"])), pad_b(a["conv2_b"])
    prep["a_wfc"], prep["a_bfc"] = compose_conv3_fc(a["conv3_w"], a["conv3_b"],
                                                    a["fc_w"], a["fc_b"], p_spatial=4)

    # GRU: pack gates (r, z, n) as three 128-lane blocks of one weight per input stream.
    h = hidden

    def gate_pack_w(ws):
        din = ws[0].shape[0]
        out = jnp.zeros((din, 3 * GATE_PAD), jnp.float32)
        for i, w in enumerate(ws):
            out = out.at[:, i * GATE_PAD:i * GATE_PAD + h].set(w)
        return out

    def gate_pack_b(bs):
        out = jnp.zeros((1, 3 * GATE_PAD), jnp.float32)
        for i, b in enumerate(bs):
            out = out.at[:, i * GATE_PAD:i * GATE_PAD + h].set(b)
        return out

    wi = gate_pack_w([g["w_ir"], g["w_iz"], g["w_in"]])     # (2H, 384)
    wh = gate_pack_w([g["w_hr"], g["w_hz"], g["w_hn"]])     # (H,  384)
    # split input weight into audio-feature / visual-feature halves -> no in-kernel concat
    prep["g_wia"] = _pad2d(wi[:h], GATE_PAD, 3 * GATE_PAD, jnp.float32)
    prep["g_wiv"] = _pad2d(wi[h:], GATE_PAD, 3 * GATE_PAD, jnp.float32)
    prep["g_wh"] = _pad2d(wh, GATE_PAD, 3 * GATE_PAD, jnp.float32)
    prep["g_bi"] = gate_pack_b([g["b_ir"], g["b_iz"], g["b_in"]])
    prep["g_bh"] = gate_pack_b([g["b_hr"], g["b_hz"], g["b_hn"]])
    return prep


# ----------------------------------------------------------------------------
# full AudioNavBaselineNet forward (3 Pallas calls, single jit)
# ----------------------------------------------------------------------------
@jax.jit
def audionav_baseline_net_forward(observations, rnn_hidden_states, prev_actions,
                                  masks, prep):
    del prev_actions                              # unused by this module's forward
    b = observations["rgb"].shape[0]
    h = rnn_hidden_states.shape[2]

    rgb = observations["rgb"].astype(jnp.float32) / 255.0        # NHWC (VisualCNN normalize)
    spec = observations["spectrogram"].astype(jnp.float32)       # NHWC

    # ---- stage 1: conv1 of both encoders (audio k5 s2 / visual k8 s4), one kernel ----
    pa, aoh, aow = _im2col_nhwc(spec, 5, 5, 2, 2)                # (B,10,10,50)
    pv, voh, vow = _im2col_nhwc(rgb, 8, 8, 4, 4)                 # (B,15,15,192)
    oa, ov = _dual_conv_call(_pad_gemm_lhs(pa.reshape(b * aoh * aow, -1)),
                             prep["a_w1"], prep["a_b1"],
                             _pad_gemm_lhs(pv.reshape(b * voh * vow, -1)),
                             prep["v_w1"], prep["v_b1"])
    act_a = oa[:b * aoh * aow, :32].reshape(b, aoh, aow, 32)
    act_v = ov[:b * voh * vow, :32].reshape(b, voh, vow, 32)

    # ---- stage 2: conv2 of both encoders (audio k3 s2 / visual k4 s2), one kernel ----
    pa, aoh, aow = _im2col_nhwc(act_a, 3, 3, 2, 2)               # (B,4,4,288)
    pv, voh, vow = _im2col_nhwc(act_v, 4, 4, 2, 2)               # (B,6,6,512)
    oa, ov = _dual_conv_call(_pad_gemm_lhs(pa.reshape(b * aoh * aow, -1)),
                             prep["a_w2"], prep["a_b2"],
                             _pad_gemm_lhs(pv.reshape(b * voh * vow, -1)),
                             prep["v_w2"], prep["v_b2"])
    act_a = oa[:b * aoh * aow, :64].reshape(b, aoh, aow, 64)
    act_v = ov[:b * voh * vow, :64].reshape(b, voh, vow, 64)

    # ---- head: conv3∘FC (pre-composed) for both encoders + concat + GRU, one kernel ----
    pa, _, _ = _im2col_nhwc(act_a, 3, 3, 1, 1)                   # (B,2,2,576)
    pv, _, _ = _im2col_nhwc(act_v, 3, 3, 1, 1)                   # (B,4,4,576)
    amp = _pad_gemm_lhs(pa.reshape(b, -1))                       # (Bp, 2304) mega-patches
    vmp = _pad_gemm_lhs(pv.reshape(b, -1))                       # (Bp, 9216) mega-patches

    bp = amp.shape[0]
    hp = _pad2d(rnn_hidden_states[0], bp, GATE_PAD)              # padded hidden (f32)
    mp = _pad2d(jnp.broadcast_to(masks.astype(jnp.float32), (b, h)), bp, GATE_PAD)

    h_new_p = _head_call(amp, prep["a_wfc"], prep["a_bfc"],
                         vmp, prep["v_wfc"], prep["v_bfc"],
                         hp, mp,
                         prep["g_wia"], prep["g_wiv"], prep["g_wh"],
                         prep["g_bi"], prep["g_bh"])
    h_new = h_new_p[:b, :h]
    x2 = h_new
    # TODO(synk): torchsummary `summary()` calls in __init__ are logging only; omitted.
    return x2, h_new[None], None


# ----------------------------------------------------------------------------
# deterministic parameter construction (torch-layout raw params)
# ----------------------------------------------------------------------------
def _uniform(key, shape, bound):
    return jax.random.uniform(key, shape, jnp.float32, -bound, bound)


def _conv_p(key, cout, cin, kh, kw):
    kw_, kb = jax.random.split(key)
    bound = 1.0 / float(cin * kh * kw) ** 0.5
    return _uniform(kw_, (cout, cin, kh, kw), bound), _uniform(kb, (cout,), bound)


def _lin_p(key, din, dout):
    kw_, kb = jax.random.split(key)
    bound = 1.0 / float(din) ** 0.5
    return _uniform(kw_, (din, dout), bound), _uniform(kb, (dout,), bound)


def make_params(key, hidden=32):
    ks = jax.random.split(key, 32)
    p = {"visual": {}, "audio": {}, "gru": {}}

    # VisualCNN: rgb 64x64x3 -> conv(32,k8,s4) -> conv(64,k4,s2) -> conv(32,k3,s1)
    #            -> flatten 32*4*4=512 -> Linear(512, hidden) -> ReLU
    v = p["visual"]
    v["conv1_w"], v["conv1_b"] = _conv_p(ks[0], 32, 3, 8, 8)
    v["conv2_w"], v["conv2_b"] = _conv_p(ks[1], 64, 32, 4, 4)
    v["conv3_w"], v["conv3_b"] = _conv_p(ks[2], 32, 64, 3, 3)
    v["fc_w"], v["fc_b"] = _lin_p(ks[3], 32 * 4 * 4, hidden)

    # AudioCNN: spectrogram 24x24x2 -> conv(32,k5,s2) -> conv(64,k3,s2) -> conv(64,k3,s1)
    #           -> flatten 64*2*2=256 -> Linear(256, hidden) -> ReLU
    a = p["audio"]
    a["conv1_w"], a["conv1_b"] = _conv_p(ks[4], 32, 2, 5, 5)
    a["conv2_w"], a["conv2_b"] = _conv_p(ks[5], 64, 32, 3, 3)
    a["conv3_w"], a["conv3_b"] = _conv_p(ks[6], 64, 64, 3, 3)
    a["fc_w"], a["fc_b"] = _lin_p(ks[7], 64 * 2 * 2, hidden)

    # GRU: input = 2*hidden, hidden = hidden  (per-gate weights stored as (in, out))
    g = p["gru"]
    din = 2 * hidden
    bound = 1.0 / float(hidden) ** 0.5
    for n, k in zip(("w_ir", "w_iz", "w_in"), ks[8:11]):
        g[n] = _uniform(k, (din, hidden), bound)
    for n, k in zip(("w_hr", "w_hz", "w_hn"), ks[11:14]):
        g[n] = _uniform(k, (hidden, hidden), bound)
    for n, k in zip(("b_ir", "b_iz", "b_in"), ks[14:17]):
        g[n] = _uniform(k, (hidden,), bound)
    for n, k in zip(("b_hr", "b_hz", "b_hn"), ks[17:20]):
        g[n] = _uniform(k, (hidden,), bound)
    return p


# ----------------------------------------------------------------------------
if __name__ == "__main__":
    B, HIDDEN = 2, 32
    key = jax.random.PRNGKey(0)
    k_rgb, k_spec, k_h, k_param = jax.random.split(key, 4)

    rgb = jax.random.randint(k_rgb, (B, 64, 64, 3), 0, 256, dtype=jnp.int32).astype(jnp.uint8)
    spectrogram = jax.random.uniform(k_spec, (B, 24, 24, 2), dtype=jnp.float32)
    rnn_hidden_states = 0.1 * jax.random.normal(k_h, (1, B, HIDDEN), dtype=jnp.float32)
    masks = jnp.ones((B, 1), jnp.float32)
    prev_actions = jnp.zeros((B, 1), jnp.int32)

    params = make_params(k_param, hidden=HIDDEN)
    prep = prepare_params(params, hidden=HIDDEN)          # one-time weight prep (padded/fused)
    observations = {"rgb": rgb, "spectrogram": spectrogram}

    x2, h1, _ = audionav_baseline_net_forward(
        observations, rnn_hidden_states, prev_actions, masks, prep)
    jax.block_until_ready((x2, h1))

    assert x2.shape == (B, HIDDEN), x2.shape
    assert h1.shape == (1, B, HIDDEN), h1.shape
    assert not bool(jnp.isnan(x2).any())       # mirrors `assert not torch.isnan(x2).any()`
    print("KERNEL_OK")
</pallas_src>

<mosaic_0001>
module attributes {stable_mosaic.version = 11 : i64} {
  func.func @_dual_conv_kernel(%arg0: memref<208x128xbf16, #tpu.memory_space<vmem>>, %arg1: memref<128x128xbf16, #tpu.memory_space<vmem>>, %arg2: memref<1x128xf32, #tpu.memory_space<vmem>>, %arg3: memref<464x256xbf16, #tpu.memory_space<vmem>>, %arg4: memref<256x128xbf16, #tpu.memory_space<vmem>>, %arg5: memref<1x128xf32, #tpu.memory_space<vmem>>, %arg6: memref<208x128xf32, #tpu.memory_space<vmem>>, %arg7: memref<464x128xf32, #tpu.memory_space<vmem>>) attributes {dimension_semantics = [], scalar_prefetch = 0 : i64, scratch_operands = 0 : i64, tpu.core_type = #tpu.core_type<tc>} {
    %c0 = arith.constant 0 : index
    %c0_0 = arith.constant 0 : index
    %0 = vector.load %arg0[%c0, %c0_0] : memref<208x128xbf16, #tpu.memory_space<vmem>>, vector<208x128xbf16>
    %c0_1 = arith.constant 0 : index
    %c0_2 = arith.constant 0 : index
    %1 = vector.load %arg1[%c0_1, %c0_2] : memref<128x128xbf16, #tpu.memory_space<vmem>>, vector<128x128xbf16>
    %cst = arith.constant dense<0.000000e+00> : vector<208x128xf32>
    %2 = tpu.matmul %0, %1, %cst {dimension_numbers = #tpu.dot_dimension_numbers<[1], [0], [0], [1], [0, 0, 1, 1], [], []>} : vector<208x128xbf16>, vector<128x128xbf16>, vector<208x128xf32> -> vector<208x128xf32>
    %c0_3 = arith.constant 0 : index
    %c0_4 = arith.constant 0 : index
    %3 = vector.load %arg2[%c0_3, %c0_4] : memref<1x128xf32, #tpu.memory_space<vmem>>, vector<1x128xf32>
    %4 = vector.broadcast %3 : vector<1x128xf32> to vector<208x128xf32>
    %5 = arith.addf %2, %4 : vector<208x128xf32>
    %cst_5 = arith.constant 0.000000e+00 : f32
    %6 = vector.broadcast %cst_5 : f32 to vector<208x128xf32>
    %7 = arith.maximumf %5, %6 : vector<208x128xf32>
    %c0_6 = arith.constant 0 : index
    %c0_7 = arith.constant 0 : index
    %8 = vector.load %arg6[%c0_6, %c0_7] : memref<208x128xf32, #tpu.memory_space<vmem>>, vector<208x128xf32>
    tpu.vector_store %arg6[%c0_6, %c0_7], %7 {strides = array<i32>} : memref<208x128xf32, #tpu.memory_space<vmem>>, vector<208x128xf32>,
    %c0_8 = arith.constant 0 : index
    %c0_9 = arith.constant 0 : index
    %9 = vector.load %arg3[%c0_8, %c0_9] : memref<464x256xbf16, #tpu.memory_space<vmem>>, vector<464x256xbf16>
    %c0_10 = arith.constant 0 : index
    %c0_11 = arith.constant 0 : index
    %10 = vector.load %arg4[%c0_10, %c0_11] : memref<256x128xbf16, #tpu.memory_space<vmem>>, vector<256x128xbf16>
    %cst_12 = arith.constant dense<0.000000e+00> : vector<464x128xf32>
    %11 = tpu.matmul %9, %10, %cst_12 {dimension_numbers = #tpu.dot_dimension_numbers<[1], [0], [0], [1], [0, 0, 1, 1], [], []>} : vector<464x256xbf16>, vector<256x128xbf16>, vector<464x128xf32> -> vector<464x128xf32>
    %c0_13 = arith.constant 0 : index
    %c0_14 = arith.constant 0 : index
    %12 = vector.load %arg5[%c0_13, %c0_14] : memref<1x128xf32, #tpu.memory_space<vmem>>, vector<1x128xf32>
    %13 = vector.broadcast %12 : vector<1x128xf32> to vector<464x128xf32>
    %14 = arith.addf %11, %13 : vector<464x128xf32>
    %cst_15 = arith.constant 0.000000e+00 : f32
    %15 = vector.broadcast %cst_15 : f32 to vector<464x128xf32>
    %16 = arith.maximumf %14, %15 : vector<464x128xf32>
    %c0_16 = arith.constant 0 : index
    %c0_17 = arith.constant 0 : index
    %17 = vector.load %arg7[%c0_16, %c0_17] : memref<464x128xf32, #tpu.memory_space<vmem>>, vector<464x128xf32>
    tpu.vector_store %arg7[%c0_16, %c0_17], %16 {strides = array<i32>} : memref<464x128xf32, #tpu.memory_space<vmem>>, vector<464x128xf32>,
    return
  }
}

module attributes {stable_mosaic.version = 11 : i64} {
  func.func @_dual_conv_kernel(%arg0: memref<32x384xbf16, #tpu.memory_space<vmem>>, %arg1: memref<384x128xbf16, #tpu.memory_space<vmem>>, %arg2: memref<1x128xf32, #tpu.memory_space<vmem>>, %arg3: memref<80x512xbf16, #tpu.memory_space<vmem>>, %arg4: memref<512x128xbf16, #tpu.memory_space<vmem>>, %arg5: memref<1x128xf32, #tpu.memory_space<vmem>>, %arg6: memref<32x128xf32, #tpu.memory_space<vmem>>, %arg7: memref<80x128xf32, #tpu.memory_space<vmem>>) attributes {dimension_semantics = [], scalar_prefetch = 0 : i64, scratch_operands = 0 : i64, tpu.core_type = #tpu.core_type<tc>} {
    %c0 = arith.constant 0 : index
    %c0_0 = arith.constant 0 : index
    %0 = vector.load %arg0[%c0, %c0_0] : memref<32x384xbf16, #tpu.memory_space<vmem>>, vector<32x384xbf16>
    %c0_1 = arith.constant 0 : index
    %c0_2 = arith.constant 0 : index
    %1 = vector.load %arg1[%c0_1, %c0_2] : memref<384x128xbf16, #tpu.memory_space<vmem>>, vector<384x128xbf16>
    %cst = arith.constant dense<0.000000e+00> : vector<32x128xf32>
    %2 = tpu.matmul %0, %1, %cst {dimension_numbers = #tpu.dot_dimension_numbers<[1], [0], [0], [1], [0, 0, 1, 1], [], []>} : vector<32x384xbf16>, vector<384x128xbf16>, vector<32x128xf32> -> vector<32x128xf32>
    %c0_3 = arith.constant 0 : index
    %c0_4 = arith.constant 0 : index
    %3 = vector.load %arg2[%c0_3, %c0_4] : memref<1x128xf32, #tpu.memory_space<vmem>>, vector<1x128xf32>
    %4 = vector.broadcast %3 : vector<1x128xf32> to vector<32x128xf32>
    %5 = arith.addf %2, %4 : vector<32x128xf32>
    %cst_5 = arith.constant 0.000000e+00 : f32
    %6 = vector.broadcast %cst_5 : f32 to vector<32x128xf32>
    %7 = arith.maximumf %5, %6 : vector<32x128xf32>
    %c0_6 = arith.constant 0 : index
    %c0_7 = arith.constant 0 : index
    %8 = vector.load %arg6[%c0_6, %c0_7] : memref<32x128xf32, #tpu.memory_space<vmem>>, vector<32x128xf32>
    tpu.vector_store %arg6[%c0_6, %c0_7], %7 {strides = array<i32>} : memref<32x128xf32, #tpu.memory_space<vmem>>, vector<32x128xf32>,
    %c0_8 = arith.constant 0 : index
    %c0_9 = arith.constant 0 : index
    %9 = vector.load %arg3[%c0_8, %c0_9] : memref<80x512xbf16, #tpu.memory_space<vmem>>, vector<80x512xbf16>
    %c0_10 = arith.constant 0 : index
    %c0_11 = arith.constant 0 : index
    %10 = vector.load %arg4[%c0_10, %c0_11] : memref<512x128xbf16, #tpu.memory_space<vmem>>, vector<512x128xbf16>
    %cst_12 = arith.constant dense<0.000000e+00> : vector<80x128xf32>
    %11 = tpu.matmul %9, %10, %cst_12 {dimension_numbers = #tpu.dot_dimension_numbers<[1], [0], [0], [1], [0, 0, 1, 1], [], []>} : vector<80x512xbf16>, vector<512x128xbf16>, vector<80x128xf32> -> vector<80x128xf32>
    %c0_13 = arith.constant 0 : index
    %c0_14 = arith.constant 0 : index
    %12 = vector.load %arg5[%c0_13, %c0_14] : memref<1x128xf32, #tpu.memory_space<vmem>>, vector<1x128xf32>
    %13 = vector.broadcast %12 : vector<1x128xf32> to vector<80x128xf32>
    %14 = arith.addf %11, %13 : vector<80x128xf32>
    %cst_15 = arith.constant 0.000000e+00 : f32
    %15 = vector.broadcast %cst_15 : f32 to vector<80x128xf32>
    %16 = arith.maximumf %14, %15 : vector<80x128xf32>
    %c0_16 = arith.constant 0 : index
    %c0_17 = arith.constant 0 : index
    %17 = vector.load %arg7[%c0_16, %c0_17] : memref<80x128xf32, #tpu.memory_space<vmem>>, vector<80x128xf32>
    tpu.vector_store %arg7[%c0_16, %c0_17], %16 {strides = array<i32>} : memref<80x128xf32, #tpu.memory_space<vmem>>, vector<80x128xf32>,
    return
  }
}

module attributes {stable_mosaic.version = 11 : i64} {
  func.func @_head_kernel(%arg0: memref<16x2304xbf16, #tpu.memory_space<vmem>>, %arg1: memref<2304x128xbf16, #tpu.memory_space<vmem>>, %arg2: memref<1x128xf32, #tpu.memory_space<vmem>>, %arg3: memref<16x9216xbf16, #tpu.memory_space<vmem>>, %arg4: memref<9216x128xbf16, #tpu.memory_space<vmem>>, %arg5: memref<1x128xf32, #tpu.memory_space<vmem>>, %arg6: memref<16x128xf32, #tpu.memory_space<vmem>>, %arg7: memref<16x128xf32, #tpu.memory_space<vmem>>, %arg8: memref<128x384xf32, #tpu.memory_space<vmem>>, %arg9: memref<128x384xf32, #tpu.memory_space<vmem>>, %arg10: memref<128x384xf32, #tpu.memory_space<vmem>>, %arg11: memref<1x384xf32, #tpu.memory_space<vmem>>, %arg12: memref<1x384xf32, #tpu.memory_space<vmem>>, %arg13: memref<16x128xf32, #tpu.memory_space<vmem>>) attributes {dimension_semantics = [], scalar_prefetch = 0 : i64, scratch_operands = 0 : i64, tpu.core_type = #tpu.core_type<tc>} {
    %c0 = arith.constant 0 : index
    %c0_0 = arith.constant 0 : index
    %0 = vector.load %arg0[%c0, %c0_0] : memref<16x2304xbf16, #tpu.memory_space<vmem>>, vector<16x2304xbf16>
    %c0_1 = arith.constant 0 : index
    %c0_2 = arith.constant 0 : index
    %1 = vector.load %arg1[%c0_1, %c0_2] : memref<2304x128xbf16, #tpu.memory_space<vmem>>, vector<2304x128xbf16>
    %cst = arith.constant dense<0.000000e+00> : vector<16x128xf32>
    %2 = tpu.matmul %0, %1, %cst {dimension_numbers = #tpu.dot_dimension_numbers<[1], [0], [0], [1], [0, 0, 1, 1], [], []>} : vector<16x2304xbf16>, vector<2304x128xbf16>, vector<16x128xf32> -> vector<16x128xf32>
    %c0_3 = arith.constant 0 : index
    %c0_4 = arith.constant 0 : index
    %3 = vector.load %arg2[%c0_3, %c0_4] : memref<1x128xf32, #tpu.memory_space<vmem>>, vector<1x128xf32>
    %4 = vector.broadcast %3 : vector<1x128xf32> to vector<16x128xf32>
    %5 = arith.addf %2, %4 : vector<16x128xf32>
    %cst_5 = arith.constant 0.000000e+00 : f32
    %6 = vector.broadcast %cst_5 : f32 to vector<16x128xf32>
    %7 = arith.maximumf %5, %6 : vector<16x128xf32>
    %c0_6 = arith.constant 0 : index
    %c0_7 = arith.constant 0 : index
    %8 = vector.load %arg3[%c0_6, %c0_7] : memref<16x9216xbf16, #tpu.memory_space<vmem>>, vector<16x9216xbf16>
    %c0_8 = arith.constant 0 : index
    %c0_9 = arith.constant 0 : index
    %9 = vector.load %arg4[%c0_8, %c0_9] : memref<9216x128xbf16, #tpu.memory_space<vmem>>, vector<9216x128xbf16>
    %cst_10 = arith.constant dense<0.000000e+00> : vector<16x128xf32>
    %10 = tpu.matmul %8, %9, %cst_10 {dimension_numbers = #tpu.dot_dimension_numbers<[1], [0], [0], [1], [0, 0, 1, 1], [], []>} : vector<16x9216xbf16>, vector<9216x128xbf16>, vector<16x128xf32> -> vector<16x128xf32>
    %c0_11 = arith.constant 0 : index
    %c0_12 = arith.constant 0 : index
    %11 = vector.load %arg5[%c0_11, %c0_12] : memref<1x128xf32, #tpu.memory_space<vmem>>, vector<1x128xf32>
    %12 = vector.broadcast %11 : vector<1x128xf32> to vector<16x128xf32>
    %13 = arith.addf %10, %12 : vector<16x128xf32>
    %cst_13 = arith.constant 0.000000e+00 : f32
    %14 = vector.broadcast %cst_13 : f32 to vector<16x128xf32>
    %15 = arith.maximumf %13, %14 : vector<16x128xf32>
    %c0_14 = arith.constant 0 : index
    %c0_15 = arith.constant 0 : index
    %16 = vector.load %arg6[%c0_14, %c0_15] : memref<16x128xf32, #tpu.memory_space<vmem>>, vector<16x128xf32>
    %c0_16 = arith.constant 0 : index
    %c0_17 = arith.constant 0 : index
    %17 = vector.load %arg7[%c0_16, %c0_17] : memref<16x128xf32, #tpu.memory_space<vmem>>, vector<16x128xf32>
    %18 = arith.mulf %16, %17 : vector<16x128xf32>
    %c0_18 = arith.constant 0 : index
    %c0_19 = arith.constant 0 : index
    %19 = vector.load %arg8[%c0_18, %c0_19] : memref<128x384xf32, #tpu.memory_space<vmem>>, vector<128x384xf32>
    %cst_20 = arith.constant dense<0.000000e+00> : vector<16x384xf32>
    %20 = tpu.matmul %7, %19, %cst_20 {dimension_numbers = #tpu.dot_dimension_numbers<[1], [0], [0], [1], [0, 0, 1, 1], [], []>} : vector<16x128xf32>, vector<128x384xf32>, vector<16x384xf32> -> vector<16x384xf32>
    %c0_21 = arith.constant 0 : index
    %c0_22 = arith.constant 0 : index
    %21 = vector.load %arg9[%c0_21, %c0_22] : memref<128x384xf32, #tpu.memory_space<vmem>>, vector<128x384xf32>
    %cst_23 = arith.constant dense<0.000000e+00> : vector<16x384xf32>
    %22 = tpu.matmul %15, %21, %cst_23 {dimension_numbers = #tpu.dot_dimension_numbers<[1], [0], [0], [1], [0, 0, 1, 1], [], []>} : vector<16x128xf32>, vector<128x384xf32>, vector<16x384xf32> -> vector<16x384xf32>
    %23 = arith.addf %20, %22 : vector<16x384xf32>
    %c0_24 = arith.constant 0 : index
    %c0_25 = arith.constant 0 : index
    %24 = vector.load %arg11[%c0_24, %c0_25] : memref<1x384xf32, #tpu.memory_space<vmem>>, vector<1x384xf32>
    %25 = vector.broadcast %24 : vector<1x384xf32> to vector<16x384xf32>
    %26 = arith.addf %23, %25 : vector<16x384xf32>
    %c0_26 = arith.constant 0 : index
    %c0_27 = arith.constant 0 : index
    %27 = vector.load %arg10[%c0_26, %c0_27] : memref<128x384xf32, #tpu.memory_space<vmem>>, vector<128x384xf32>
    %cst_28 = arith.constant dense<0.000000e+00> : vector<16x384xf32>
    %28 = tpu.matmul %18, %27, %cst_28 {dimension_numbers = #tpu.dot_dimension_numbers<[1], [0], [0], [1], [0, 0, 1, 1], [], []>} : vector<16x128xf32>, vector<128x384xf32>, vector<16x384xf32> -> vector<16x384xf32>
    %c0_29 = arith.constant 0 : index
    %c0_30 = arith.constant 0 : index
    %29 = vector.load %arg12[%c0_29, %c0_30] : memref<1x384xf32, #tpu.memory_space<vmem>>, vector<1x384xf32>
    %30 = vector.broadcast %29 : vector<1x384xf32> to vector<16x384xf32>
    %31 = arith.addf %28, %30 : vector<16x384xf32>
    %32 = vector.extract_strided_slice %26 {offsets = [0, 0], sizes = [16, 128], strides = [1, 1]} : vector<16x384xf32> to vector<16x128xf32>
    %33 = vector.extract_strided_slice %31 {offsets = [0, 0], sizes = [16, 128], strides = [1, 1]} : vector<16x384xf32> to vector<16x128xf32>
    %34 = arith.addf %32, %33 : vector<16x128xf32>
    %35 = arith.negf %34 : vector<16x128xf32>
    %36 = math.exp %35 : vector<16x128xf32>
    %cst_31 = arith.constant 1.000000e+00 : f32
    %37 = vector.broadcast %cst_31 : f32 to vector<16x128xf32>
    %38 = arith.addf %37, %36 : vector<16x128xf32>
    %39 = arith.divf %37, %38 : vector<16x128xf32>
    %40 = vector.extract_strided_slice %26 {offsets = [0, 128], sizes = [16, 128], strides = [1, 1]} : vector<16x384xf32> to vector<16x128xf32>
    %41 = vector.extract_strided_slice %31 {offsets = [0, 128], sizes = [16, 128], strides = [1, 1]} : vector<16x384xf32> to vector<16x128xf32>
    %42 = arith.addf %40, %41 : vector<16x128xf32>
    %43 = arith.negf %42 : vector<16x128xf32>
    %44 = math.exp %43 : vector<16x128xf32>
    %cst_32 = arith.constant 1.000000e+00 : f32
    %45 = vector.broadcast %cst_32 : f32 to vector<16x128xf32>
    %46 = arith.addf %45, %44 : vector<16x128xf32>
    %47 = arith.divf %45, %46 : vector<16x128xf32>
    %48 = vector.extract_strided_slice %26 {offsets = [0, 256], sizes = [16, 128], strides = [1, 1]} : vector<16x384xf32> to vector<16x128xf32>
    %49 = vector.extract_strided_slice %31 {offsets = [0, 256], sizes = [16, 128], strides = [1, 1]} : vector<16x384xf32> to vector<16x128xf32>
    %50 = arith.mulf %39, %49 : vector<16x128xf32>
    %51 = arith.addf %48, %50 : vector<16x128xf32>
    %52 = math.tanh %51 : vector<16x128xf32>
    %cst_33 = arith.constant 1.000000e+00 : f32
    %53 = vector.broadcast %cst_33 : f32 to vector<16x128xf32>
    %54 = arith.subf %53, %47 : vector<16x128xf32>
    %55 = arith.mulf %54, %52 : vector<16x128xf32>
    %56 = arith.mulf %47, %18 : vector<16x128xf32>
    %57 = arith.addf %55, %56 : vector<16x128xf32>
    %c0_34 = arith.constant 0 : index
    %c0_35 = arith.constant 0 : index
    %58 = vector.load %arg13[%c0_34, %c0_35] : memref<16x128xf32, #tpu.memory_space<vmem>>, vector<16x128xf32>
    tpu.vector_store %arg13[%c0_34, %c0_35], %57 {strides = array<i32>} : memref<16x128xf32, #tpu.memory_space<vmem>>, vector<16x128xf32>,
    return
  }
}

</mosaic_0001>

<bundles_post_ra>
// kernel: audionav_baseline_net_forward.3
= control target key start
LH: loop header
LB: loop body
LE: loop exit
PB: predicated region body
PF: predicated region fallthrough
CT: control target
= control target key end

     0   :  { %v1607_v0 = vmov 0.0   ;;  %v1608_v1 = vmov 0   ;;  %vm1609_vm0 = vmmov 0   ;;  %s2347_s1 = inlined_call_operand.vmem [shape: bf16[128,128], index: 1, kind: input, shape index: {}]   ;;  %s2348_s4 = inlined_call_operand.vmem [shape: bf16[256,128], index: 4, kind: input, shape index: {}]   ;;  %s2349_s0 = inlined_call_operand.vmem [shape: bf16[208,128], index: 0, kind: input, shape index: {}]   ;;  %s2350_s3 = inlined_call_operand.vmem [shape: bf16[464,256], index: 3, kind: input, shape index: {}]   ;;  %s2351_s2 = inlined_call_operand.vmem [shape: f32[1,128], index: 2, kind: input, shape index: {}]   ;;  %s2352_s6 = inlined_call_operand.vmem [shape: f32[208,128], index: 6, kind: output, shape index: {0}]   ;;  %s2353_s5 = inlined_call_operand.vmem [shape: f32[1,128], index: 5, kind: input, shape index: {}]   ;;  %s2354_s7 = inlined_call_operand.vmem [shape: f32[464,128], index: 7, kind: output, shape index: {1}]  }
   0x1   :  { %1380 = vmatprep.subr.bf16.mxu0 %v1607_v0  ;;  %1448 = vmatprep.subr.bf16.mxu1 %v1608_v1  ;;  %v1483_v2 = vld [vmem:[%s2347_s1] sm:$0xff]   ;;  %v1485_v4 = vld [vmem:[%s2347_s1 + $0x8] sm:$0xff]   ;;  %v1487_v6 = vld [vmem:[%s2347_s1 + $0x10] sm:$0xff]  }
   0x2   :  { %v1484_v3 = vld [vmem:[%s2348_s4] sm:$0xff]   ;;  %1396 = vmatprep.mubr.msk.bf16.mxu0 %vm1609_vm0, %v1607_v0  ;;  %1381 = vmatpush3.bf16.msra.mxu0 %v1483_v2  ;;  %v1486_v5 = vld [vmem:[%s2348_s4 + $0x8] sm:$0xff]   ;;  %v1488_v7 = vld [vmem:[%s2348_s4 + $0x10] sm:$0xff]  }
   0x3   :  { %1464 = vmatpush1.bf16.msra.mxu1 %v1484_v3  ;;  %1382 = vmatprep.subr.bf16.mxu0 %v1607_v0  ;;  %v1489_v8 = vld [vmem:[%s2347_s1 + $0x18] sm:$0xff]   ;;  %v1491_v10 = vld [vmem:[%s2347_s1 + $0x20] sm:$0xff]   ;;  %v1493_v12 = vld [vmem:[%s2347_s1 + $0x28] sm:$0xff]  }
   0x4   :  { %1449 = vmatprep.subr.bf16.mxu1 %v1608_v1  ;;  %v1490_v9 = vld [vmem:[%s2348_s4 + $0x18] sm:$0xff]   ;;  %v1492_v11 = vld [vmem:[%s2348_s4 + $0x20] sm:$0xff]   ;;  %v1494_v13 = vld [vmem:[%s2348_s4 + $0x28] sm:$0xff]  }
   0x5   :  { %v1495_v14 = vld [vmem:[%s2347_s1 + $0x30] sm:$0xff]   ;;  %v1497_v16 = vld [vmem:[%s2347_s1 + $0x38] sm:$0xff]   ;;  %v1499_v18 = vld [vmem:[%s2349_s0] sm:$0xff]  }
   0x6   :  { %1383 = vmatpush3.bf16.msra.mxu0 %v1485_v4  ;;  %v1496_v15 = vld [vmem:[%s2348_s4 + $0x30] sm:$0xff]   ;;  %v1498_v17 = vld [vmem:[%s2348_s4 + $0x38] sm:$0xff]   ;;  %v1513_v19 = vld [vmem:[%s2350_s3 + $0xa4] ss:$8 sps:$4 sm:$0xff]  }
   0x7   :  { %1465 = vmatpush1.bf16.msra.mxu1 %v1486_v5  ;;  %1384 = vmatprep.subr.bf16.mxu0 %v1607_v0  ;;  %v1500_v20 = vld [vmem:[%s2348_s4 + $0x40] sm:$0xff]   ;;  %v1501_v21 = vld [vmem:[%s2348_s4 + $0x48] sm:$0xff]   ;;  %v1503_v23 = vld [vmem:[%s2348_s4 + $0x50] sm:$0xff]  }
   0x8   :  { %1450 = vmatprep.subr.bf16.mxu1 %v1608_v1  ;;  %985 = vmatprep.mubr.bf16.mxu1 %v1513_v19  ;;  %v1502_v22 = vld [vmem:[%s2349_s0 + $0x8] sm:$0xff]   ;;  %v1504_v24 = vld [vmem:[%s2348_s4 + $0x58] sm:$0xff]   ;;  %v1505_v25 = vld [vmem:[%s2349_s0 + $0x10] sm:$0xff]  }
   0x9   :  { %v1506_v26 = vld [vmem:[%s2348_s4 + $0x60] sm:$0xff]   ;;  %v1507_v27 = vld [vmem:[%s2348_s4 + $0x68] sm:$0xff]   ;;  %v1508_v28 = vld [vmem:[%s2349_s0 + $0x18] sm:$0xff]  }
   0xa   :  { %1385 = vmatpush3.bf16.msra.mxu0 %v1487_v6  ;;  %v1509_v29 = vld [vmem:[%s2348_s4 + $0x70] sm:$0xff]   ;;  %v1510_v30 = vld [vmem:[%s2348_s4 + $0x78] sm:$0xff]   ;;  %v1514_v31 = vld [vmem:[%s2349_s0 + $0x20] sm:$0xff]  }
   0xb   :  { %1466 = vmatpush1.bf16.msra.mxu1 %v1488_v7  ;;  %1386 = vmatprep.subr.bf16.mxu0 %v1607_v0  ;;  %v1511_v32 = vld [vmem:[%s2350_s3 + $0xa0] ss:$8 sps:$4 sm:$0xff]   ;;  %v1515_v33 = vld [vmem:[%s2350_s3 + $0xb4] ss:$8 sps:$4 sm:$0xff]   ;;  %v1518_v35 = vld [vmem:[%s2350_s3 + $0xb0] ss:$8 sps:$4 sm:$0xff]  }
   0xc   :  { %1451 = vmatprep.subr.bf16.mxu1 %v1608_v1  ;;  %v1517_v34 = vld [vmem:[%s2349_s0 + $0x28] sm:$0xff]   ;;  %v1521_v37 = vld [vmem:[%s2349_s0 + $0x30] sm:$0xff]   ;;  %v1525_v40 = vld [vmem:[%s2349_s0 + $0x38] sm:$0xff]  }
   0xd   :  { %v1519_v36 = vld [vmem:[%s2350_s3 + $0xc4] ss:$8 sps:$4 sm:$0xff]   ;;  %v1522_v38 = vld [vmem:[%s2350_s3 + $0xc0] ss:$8 sps:$4 sm:$0xff]   ;;  %v1523_v39 = vld [vmem:[%s2350_s3 + $0xd4] ss:$8 sps:$4 sm:$0xff]  }
   0xe   :  { %1387 = vmatpush3.bf16.msra.mxu0 %v1489_v8  ;;  %v1526_v41 = vld [vmem:[%s2350_s3 + $0xd0] ss:$8 sps:$4 sm:$0xff]   ;;  %v1527_v42 = vld [vmem:[%s2350_s3 + $0xe4] ss:$8 sps:$4 sm:$0xff]   ;;  %v1530_v44 = vld [vmem:[%s2350_s3 + $0xe0] ss:$8 sps:$4 sm:$0xff]  }
   0xf   :  { %1467 = vmatpush1.bf16.msra.mxu1 %v1490_v9  ;;  %1388 = vmatprep.subr.bf16.mxu0 %v1607_v0  ;;  %v1529_v43 = vld [vmem:[%s2349_s0 + $0x40] sm:$0xff]   ;;  %v1531_v45 = vld [vmem:[%s2350_s3 + $0xf4] ss:$8 sps:$4 sm:$0xff]   ;;  %v1533_v46 = vld [vmem:[%s2349_s0 + $0x48] sm:$0xff]  }
  0x10   :  { %1452 = vmatprep.subr.bf16.mxu1 %v1608_v1  ;;  %v1534_v47 = vld [vmem:[%s2350_s3 + $0xf0] ss:$8 sps:$4 sm:$0xff]   ;;  %v1535_v48 = vld [vmem:[%s2350_s3 + $0x104] ss:$8 sps:$4 sm:$0xff]   ;;  %v1538_v50 = vld [vmem:[%s2350_s3 + $0x100] ss:$8 sps:$4 sm:$0xff]  }
  0x11   :  { %v1537_v49 = vld [vmem:[%s2349_s0 + $0x50] sm:$0xff]   ;;  %v1541_v52 = vld [vmem:[%s2349_s0 + $0x58] sm:$0xff]   ;;  %v1543_v54 = vld [vmem:[%s2350_s3 + $0x124] ss:$8 sps:$4 sm:$0xff]  }
  0x12   :  { %1389 = vmatpush3.bf16.msra.mxu0 %v1491_v10  ;;  %v1539_v51 = vld [vmem:[%s2350_s3 + $0x114] ss:$8 sps:$4 sm:$0xff]   ;;  %v1542_v53 = vld [vmem:[%s2350_s3 + $0x110] ss:$8 sps:$4 sm:$0xff]   ;;  %v1545_v55 = vld [vmem:[%s2349_s0 + $0x60] sm:$0xff]  }
  0x13   :  { %1468 = vmatpush1.bf16.msra.mxu1 %v1492_v11  ;;  %1390 = vmatprep.subr.bf16.mxu0 %v1607_v0  ;;  %v1546_v56 = vld [vmem:[%s2350_s3 + $0x120] ss:$8 sps:$4 sm:$0xff]   ;;  %v1549_v57 = vld [vmem:[%s2350_s3 + $0x4] ss:$8 sps:$4 sm:$0xff]   ;;  %v1550_v58 = vld [vmem:[%s2350_s3 + $0x134] ss:$8 sps:$4 sm:$0xff]  }
  0x14   :  { %1453 = vmatprep.subr.bf16.mxu1 %v1608_v1  ;;  %v1547_v59 = vld [vmem:[%s2350_s3] ss:$8 sps:$4 sm:$0xff]   ;;  %v1552_v60 = vld [vmem:[%s2350_s3 + $0x130] ss:$8 sps:$4 sm:$0xff]   ;;  %v1553_v61 = vld [vmem:[%s2350_s3 + $0x14] ss:$8 sps:$4 sm:$0xff]  }
  0x15   :  { %v1555_v62 = vld [vmem:[%s2350_s3 + $0x144] ss:$8 sps:$4 sm:$0xff]   ;;  %v1557_v63 = vld [vmem:[%s2350_s3 + $0x10] ss:$8 sps:$4 sm:$0xff]   ;;  %v1561_v2 = vld [vmem:[%s2350_s3 + $0x154] ss:$8 sps:$4 sm:$0xff]  }
  0x16   :  { %1391 = vmatpush3.bf16.msra.mxu0 %v1493_v12  ;;  %v1564_v4 = vld [vmem:[%s2350_s3 + $0x150] ss:$8 sps:$4 sm:$0xff]   ;;  %v1567_v6 = vld [vmem:[%s2350_s3 + $0x164] ss:$8 sps:$4 sm:$0xff]   ;;  %v1570_v8 = vld [vmem:[%s2350_s3 + $0x160] ss:$8 sps:$4 sm:$0xff]  }
  0x17   :  { %1469 = vmatpush1.bf16.msra.mxu1 %v1494_v13  ;;  %1392 = vmatprep.subr.bf16.mxu0 %v1607_v0  ;;  %v1573_v10 = vld [vmem:[%s2350_s3 + $0x174] ss:$8 sps:$4 sm:$0xff]   ;;  %v1576_v12 = vld [vmem:[%s2350_s3 + $0x170] ss:$8 sps:$4 sm:$0xff]   ;;  %v1587_v19 = vld [vmem:[%s2350_s3 + $0x60] ss:$8 sps:$4 sm:$0xff]  }
  0x18   :  { %1454 = vmatprep.subr.bf16.mxu1 %v1608_v1 }
  0x1a   :  { %1393 = vmatpush3.bf16.msra.mxu0 %v1495_v14  ;;  %v1579_v14 = vld [vmem:[%s2350_s3 + $0x184] ss:$8 sps:$4 sm:$0xff]  }
  0x1b   :  { %1470 = vmatpush1.bf16.msra.mxu1 %v1496_v15  ;;  %1394 = vmatprep.subr.bf16.mxu0 %v1607_v0 }
  0x1c   :  { %1455 = vmatprep.subr.bf16.mxu1 %v1608_v1 }
  0x1e   :  { %1395 = vmatpush3.bf16.msra.mxu0 %v1497_v16  ;;  %v1582_v16 = vld [vmem:[%s2350_s3 + $0x180] ss:$8 sps:$4 sm:$0xff]  }
  0x1f   :  { %1471 = vmatpush1.bf16.msra.mxu1 %v1498_v17  ;;  %873 = vmatprep.subr.bf16.mxu0 %v1608_v1 }
  0x20   :  { %1456 = vmatprep.subr.bf16.mxu1 %v1608_v1 }
  0x21   :  { %1397 = vmatmul.mubr.bf16.vlgmr.msra.gmra.mrb[0].mxu0 %v1499_v18  ;;  %v1585_v18 = vld [vmem:[%s2350_s3 + $0x194] ss:$8 sps:$4 sm:$0xff]  }
  0x22   :  { %874 = vmatpush1.bf16.msra.mxu0 %v1484_v3  ;;  %1400 = vmatprep.mubr.msk.bf16.mxu0 %vm1609_vm0, %v1607_v0  ;;  %v1563_v3 = vld [vmem:[%s2350_s3 + $0x20] ss:$8 sps:$4 sm:$0xff]  }
  0x23   :  { %1472 = vmatpush1.bf16.msra.mxu1 %v1500_v20  ;;  %875 = vmatprep.subr.bf16.mxu0 %v1608_v1 }
  0x24   :  { %1457 = vmatprep.subr.bf16.mxu1 %v1608_v1 }
  0x26   :  { %876 = vmatpush1.bf16.msra.mxu0 %v1486_v5  ;;  %v1565_v5 = vld [vmem:[%s2350_s3 + $0x34] ss:$8 sps:$4 sm:$0xff]  }
  0x27   :  { %1473 = vmatpush1.bf16.msra.mxu1 %v1501_v21  ;;  %877 = vmatprep.subr.bf16.mxu0 %v1608_v1 }
  0x28   :  { %1458 = vmatprep.subr.bf16.mxu1 %v1608_v1 }
  0x29   :  { %1401 = vmatmul.mubr.bf16.gmra.mrb[4].mxu0 %v1502_v22  ;;  %v1591_v22 = vld [vmem:[%s2350_s3 + $0x1a4] ss:$8 sps:$4 sm:$0xff]  }
  0x2a   :  { %878 = vmatpush1.bf16.msra.mxu0 %v1488_v7  ;;  %1404 = vmatprep.mubr.msk.bf16.mxu0 %vm1609_vm0, %v1607_v0  ;;  %v1569_v7 = vld [vmem:[%s2350_s3 + $0x30] ss:$8 sps:$4 sm:$0xff]  }
  0x2b   :  { %1474 = vmatpush1.bf16.msra.mxu1 %v1503_v23  ;;  %879 = vmatprep.subr.bf16.mxu0 %v1608_v1 }
  0x2c   :  { %1459 = vmatprep.subr.bf16.mxu1 %v1608_v1 }
  0x2e   :  { %880 = vmatpush1.bf16.msra.mxu0 %v1490_v9  ;;  %v1571_v9 = vld [vmem:[%s2350_s3 + $0x44] ss:$8 sps:$4 sm:$0xff]  }
  0x2f   :  { %1475 = vmatpush1.bf16.msra.mxu1 %v1504_v24  ;;  %881 = vmatprep.subr.bf16.mxu0 %v1608_v1 }
  0x30   :  { %1460 = vmatprep.subr.bf16.mxu1 %v1608_v1 }
  0x31   :  { %1405 = vmatmul.mubr.bf16.gmra.mrb[8].mxu0 %v1505_v25  ;;  %v1595_v25 = vld [vmem:[%s2350_s3 + $0x84] ss:$8 sps:$4 sm:$0xff]  }
  0x32   :  { %1408 = vmatprep.mubr.msk.bf16.mxu0 %vm1609_vm0, %v1607_v0  ;;  %882 = vmatpush1.bf16.msra.mxu0 %v1492_v11  ;;  %v1575_v11 = vld [vmem:[%s2350_s3 + $0x40] ss:$8 sps:$4 sm:$0xff]  }
  0x33   :  { %1476 = vmatpush1.bf16.msra.mxu1 %v1506_v26  ;;  %883 = vmatprep.subr.bf16.mxu0 %v1608_v1 }
  0x34   :  { %1461 = vmatprep.subr.bf16.mxu1 %v1608_v1 }
  0x36   :  { %884 = vmatpush1.bf16.msra.mxu0 %v1494_v13  ;;  %v1577_v13 = vld [vmem:[%s2350_s3 + $0x54] ss:$8 sps:$4 sm:$0xff]  }
  0x37   :  { %1477 = vmatpush1.bf16.msra.mxu1 %v1507_v27  ;;  %885 = vmatprep.subr.bf16.mxu0 %v1608_v1 }
  0x38   :  { %1462 = vmatprep.subr.bf16.mxu1 %v1608_v1 }
  0x39   :  { %1409 = vmatmul.mubr.bf16.gmra.mrb[12].mxu0 %v1508_v28  ;;  %v1600_v28 = vld [vmem:[%s2350_s3 + $0x1b0] ss:$8 sps:$4 sm:$0xff]  }
  0x3a   :  { %1412 = vmatprep.mubr.msk.bf16.mxu0 %vm1609_vm0, %v1607_v0  ;;  %886 = vmatpush1.bf16.msra.mxu0 %v1496_v15  ;;  %v1581_v15 = vld [vmem:[%s2350_s3 + $0x50] ss:$8 sps:$4 sm:$0xff]  }
  0x3b   :  { %1478 = vmatpush1.bf16.msra.mxu1 %v1509_v29  ;;  %887 = vmatprep.subr.bf16.mxu0 %v1608_v1 }
  0x3c   :  { %1463 = vmatprep.subr.bf16.mxu1 %v1608_v1 }
  0x3e   :  { %888 = vmatpush1.bf16.msra.mxu0 %v1498_v17  ;;  %v1583_v17 = vld [vmem:[%s2350_s3 + $0x64] ss:$8 sps:$4 sm:$0xff]  }
  0x3f   :  { %1479 = vmatpush1.bf16.msra.mxu1 %v1510_v30  ;;  %889 = vmatprep.subr.bf16.mxu0 %v1608_v1 }
  0x41   :  { %1413 = vmatmul.mubr.bf16.gmra.mrb[16].mxu0 %v1514_v31  ;;  %v1605_v31 = vld [vmem:[%s2350_s3 + $0x90] ss:$8 sps:$4 sm:$0xff]  }
  0x42   :  { %986 = vmatmul.mubr.bf16.vlgmr.msra.gmra.mrb[0].mxu1 %v1511_v32  ;;  %1416 = vmatprep.mubr.msk.bf16.mxu0 %vm1609_vm0, %v1607_v0  ;;  %v1606_v32 = vld [vmem:[%s2350_s3 + $0x1c0] ss:$8 sps:$4 sm:$0xff]  }
  0x43   :  { %993 = vmatprep.mubr.bf16.mxu1 %v1515_v33  ;;  %890 = vmatpush1.bf16.msra.mxu0 %v1500_v20  ;;  %v1588_v20 = vld [vmem:[%s2350_s3 + $0x190] ss:$8 sps:$4 sm:$0xff]   ;;  %v2004_v33 = vld [vmem:[%s2351_s2] ss:$0 sm:$0xff] }
  0x44   :  { %891 = vmatprep.subr.bf16.mxu0 %v1608_v1 }
  0x47   :  { %892 = vmatpush1.bf16.msra.mxu0 %v1501_v21  ;;  %v1589_v21 = vld [vmem:[%s2350_s3 + $0x74] ss:$8 sps:$4 sm:$0xff]  }
  0x48   :  { %893 = vmatprep.subr.bf16.mxu0 %v1608_v1 }
  0x49   :  { %1417 = vmatmul.mubr.bf16.gmra.mrb[20].mxu0 %v1517_v34 }
  0x4a   :  { %994 = vmatmul.mubr.bf16.gmra.mrb[4].mxu1 %v1518_v35  ;;  %1420 = vmatprep.mubr.msk.bf16.mxu0 %vm1609_vm0, %v1607_v0 }
  0x4b   :  { %1001 = vmatprep.mubr.bf16.mxu1 %v1519_v36  ;;  %894 = vmatpush1.bf16.msra.mxu0 %v1503_v23  ;;  %v1593_v23 = vld [vmem:[%s2350_s3 + $0x70] ss:$8 sps:$4 sm:$0xff]  }
  0x4c   :  { %895 = vmatprep.subr.bf16.mxu0 %v1608_v1 }
  0x4f   :  { %896 = vmatpush1.bf16.msra.mxu0 %v1504_v24  ;;  %v1594_v24 = vld [vmem:[%s2350_s3 + $0x1a0] ss:$8 sps:$4 sm:$0xff]  }
  0x50   :  { %897 = vmatprep.subr.bf16.mxu0 %v1608_v1 }
  0x51   :  { %1421 = vmatmul.mubr.bf16.gmra.mrb[24].mxu0 %v1521_v37 }
  0x52   :  { %1002 = vmatmul.mubr.bf16.gmra.mrb[8].mxu1 %v1522_v38  ;;  %1424 = vmatprep.mubr.msk.bf16.mxu0 %vm1609_vm0, %v1607_v0 }
  0x53   :  { %1009 = vmatprep.mubr.bf16.mxu1 %v1523_v39  ;;  %898 = vmatpush1.bf16.msra.mxu0 %v1506_v26  ;;  %v1597_v26 = vld [vmem:[%s2350_s3 + $0x1b4] ss:$8 sps:$4 sm:$0xff]  }
  0x54   :  { %899 = vmatprep.subr.bf16.mxu0 %v1608_v1 }
  0x57   :  { %900 = vmatpush1.bf16.msra.mxu0 %v1507_v27  ;;  %v1599_v27 = vld [vmem:[%s2350_s3 + $0x80] ss:$8 sps:$4 sm:$0xff]  }
  0x58   :  { %901 = vmatprep.subr.bf16.mxu0 %v1608_v1 }
  0x59   :  { %1425 = vmatmul.mubr.bf16.gmra.mrb[28].mxu0 %v1525_v40 }
  0x5a   :  { %1010 = vmatmul.mubr.bf16.gmra.mrb[12].mxu1 %v1526_v41  ;;  %1428 = vmatprep.mubr.msk.bf16.mxu0 %vm1609_vm0, %v1607_v0 }
  0x5b   :  { %1017 = vmatprep.mubr.bf16.mxu1 %v1527_v42  ;;  %902 = vmatpush1.bf16.msra.mxu0 %v1509_v29  ;;  %v1601_v29 = vld [vmem:[%s2350_s3 + $0x94] ss:$8 sps:$4 sm:$0xff]  }
  0x5c   :  { %903 = vmatprep.subr.bf16.mxu0 %v1608_v1  ;;  %v1559_v1 = vld [vmem:[%s2350_s3 + $0x24] ss:$8 sps:$4 sm:$0xff]  }
  0x5f   :  { %904 = vmatpush1.bf16.msra.mxu0 %v1510_v30  ;;  %v1603_v30 = vld [vmem:[%s2350_s3 + $0x1c4] ss:$8 sps:$4 sm:$0xff]  }
  0x61   :  { %1429 = vmatmul.mubr.bf16.gmra.mrb[32].mxu0 %v1529_v43 }
  0x62   :  { %1018 = vmatmul.mubr.bf16.gmra.mrb[16].mxu1 %v1530_v44  ;;  %1432 = vmatprep.mubr.msk.bf16.mxu0 %vm1609_vm0, %v1607_v0 }
  0x63   :  { %1025 = vmatprep.mubr.bf16.mxu1 %v1531_v45 }
  0x69   :  { %1433 = vmatmul.mubr.bf16.gmra.mrb[36].mxu0 %v1533_v46 }
  0x6a   :  { %1026 = vmatmul.mubr.bf16.gmra.mrb[20].mxu1 %v1534_v47  ;;  %1436 = vmatprep.mubr.msk.bf16.mxu0 %vm1609_vm0, %v1607_v0 }
  0x6b   :  { %1033 = vmatprep.mubr.bf16.mxu1 %v1535_v48 }
  0x71   :  { %1437 = vmatmul.mubr.bf16.gmra.mrb[40].mxu0 %v1537_v49 }
  0x72   :  { %1034 = vmatmul.mubr.bf16.gmra.mrb[24].mxu1 %v1538_v50  ;;  %1440 = vmatprep.mubr.msk.bf16.mxu0 %vm1609_vm0, %v1607_v0 }
  0x73   :  { %1041 = vmatprep.mubr.bf16.mxu1 %v1539_v51 }
  0x79   :  { %1441 = vmatmul.mubr.bf16.gmra.mrb[44].mxu0 %v1541_v52 }
  0x7a   :  { %1042 = vmatmul.mubr.bf16.gmra.mrb[28].mxu1 %v1542_v53  ;;  %1444 = vmatprep.mubr.msk.bf16.mxu0 %vm1609_vm0, %v1607_v0  ;;  %v1558_v0 = vld [vmem:[%s2350_s3 + $0x140] ss:$8 sps:$4 sm:$0xff]  }
  0x7b   :  { %1049 = vmatprep.mubr.bf16.mxu1 %v1543_v54 }
  0x81   :  { %1445 = vmatmul.mubr.bf16.gmra.mrb[48].mxu0 %v1545_v55 }
  0x82   :  { %1050 = vmatmul.mubr.bf16.gmra.mrb[32].mxu1 %v1546_v56  ;;  %905 = vmatprep.mubr.bf16.mxu0 %v1549_v57 }
  0x83   :  { %1057 = vmatprep.mubr.bf16.mxu1 %v1550_v58 }
  0x89   :  { %906 = vmatmul.mubr.bf16.vlgmr.msra.gmra.mrb[52].mxu0 %v1547_v59 }
  0x8a   :  { %1058 = vmatmul.mubr.bf16.gmra.mrb[36].mxu1 %v1552_v60  ;;  %913 = vmatprep.mubr.bf16.mxu0 %v1553_v61 }
  0x8b   :  { %1065 = vmatprep.mubr.bf16.mxu1 %v1555_v62 }
  0x91   :  { %914 = vmatmul.mubr.bf16.gmra.mrb[56].mxu0 %v1557_v63 }
  0x92   :  { %1066 = vmatmul.mubr.bf16.gmra.mrb[40].mxu1 %v1558_v0  ;;  %921 = vmatprep.mubr.bf16.mxu0 %v1559_v1 }
  0x93   :  { %1073 = vmatprep.mubr.bf16.mxu1 %v1561_v2  ;;  %v2041_v2 = vld [vmem:[%s2353_s5] ss:$0 sm:$0xff] }
  0x99   :  { %922 = vmatmul.mubr.bf16.gmra.mrb[60].mxu0 %v1563_v3 }
  0x9a   :  { %1074 = vmatmul.mubr.bf16.gmra.mrb[44].mxu1 %v1564_v4  ;;  %929 = vmatprep.mubr.bf16.mxu0 %v1565_v5 }
  0x9b   :  { %1081 = vmatprep.mubr.bf16.mxu1 %v1567_v6 }
  0xa1   :  { %930 = vmatmul.mubr.bf16.gmra.mrb[64].mxu0 %v1569_v7 }
  0xa2   :  { %1082 = vmatmul.mubr.bf16.gmra.mrb[48].mxu1 %v1570_v8  ;;  %937 = vmatprep.mubr.bf16.mxu0 %v1571_v9 }
  0xa3   :  { %1089 = vmatprep.mubr.bf16.mxu1 %v1573_v10 }
  0xa9   :  { %938 = vmatmul.mubr.bf16.gmra.mrb[68].mxu0 %v1575_v11 }
  0xaa   :  { %1090 = vmatmul.mubr.bf16.gmra.mrb[52].mxu1 %v1576_v12  ;;  %945 = vmatprep.mubr.bf16.mxu0 %v1577_v13 }
  0xab   :  { %1097 = vmatprep.mubr.bf16.mxu1 %v1579_v14 }
  0xb1   :  { %946 = vmatmul.mubr.bf16.gmra.mrb[72].mxu0 %v1581_v15 }
  0xb2   :  { %1098 = vmatmul.mubr.bf16.gmra.mrb[56].mxu1 %v1582_v16  ;;  %953 = vmatprep.mubr.bf16.mxu0 %v1583_v17 }
  0xb3   :  { %1105 = vmatprep.mubr.bf16.mxu1 %v1585_v18 }
  0xb9   :  { %954 = vmatmul.mubr.bf16.gmra.mrb[76].mxu0 %v1587_v19 }
  0xba   :  { %1106 = vmatmul.mubr.bf16.gmra.mrb[60].mxu1 %v1588_v20  ;;  %961 = vmatprep.mubr.bf16.mxu0 %v1589_v21 }
  0xbb   :  { %1113 = vmatprep.mubr.bf16.mxu1 %v1591_v22 }
  0xc1   :  { %962 = vmatmul.mubr.bf16.gmra.mrb[80].mxu0 %v1593_v23 }
  0xc2   :  { %1114 = vmatmul.mubr.bf16.gmra.mrb[64].mxu1 %v1594_v24  ;;  %969 = vmatprep.mubr.bf16.mxu0 %v1595_v25 }
  0xc3   :  { %1121 = vmatprep.mubr.bf16.mxu1 %v1597_v26 }
  0xc9   :  { %970 = vmatmul.mubr.bf16.gmra.mrb[84].mxu0 %v1599_v27 }
  0xca   :  { %1122 = vmatmul.mubr.bf16.gmra.mrb[68].mxu1 %v1600_v28  ;;  %977 = vmatprep.mubr.bf16.mxu0 %v1601_v29 }
  0xcb   :  { %1129 = vmatprep.mubr.bf16.mxu1 %v1603_v30 }
  0xd1   :  { %978 = vmatmul.mubr.bf16.gmra.mrb[88].mxu0 %v1605_v31 }
  0xd2   :  { %1130 = vmatmul.mubr.bf16.gmra.mrb[72].mxu1 %v1606_v32 }
  0xf4   :  { %v235_v34 = vpop.f32.mrb[0].mxu0 }
  0xf5   :  { %v236_v35 = vadd.f32 %v2004_v33, %v235_v34  ;;  %v1398_v36 = vpop.f32.mrb[1].mxu0 }
  0xf6   :  { %v238_v37 = vpop.f32.mrb[2].mxu0 }
  0xf7   :  { %v338_v38 = vmax.f32 %v236_v35, 0.0  ;;  %v239_v39 = vadd.f32 %v2004_v33, %v238_v37  ;;  %v1399_v40 = vpop.f32.mrb[3].mxu0 }
  0xf9   :  { %364 = vst [vmem:[%s2352_s6] sm:$0xff] %v338_v38  ;;  %v339_v41 = vmax.f32 %v239_v39, 0.0 }
  0xfb   :  { %365 = vst [vmem:[%s2352_s6 + $0x8] sm:$0xff] %v339_v41 }
  0xfc   :  { %v243_v42 = vpop.f32.mrb[4].mxu0 }
  0xfd   :  { %v244_v43 = vadd.f32 %v2004_v33, %v243_v42  ;;  %v1402_v44 = vpop.f32.mrb[5].mxu0 }
  0xfe   :  { %v246_v45 = vpop.f32.mrb[6].mxu0 }
  0xff   :  { %v340_v46 = vmax.f32 %v244_v43, 0.0  ;;  %v247_v47 = vadd.f32 %v2004_v33, %v246_v45  ;;  %v1403_v48 = vpop.f32.mrb[7].mxu0 }
 0x101   :  { %366 = vst [vmem:[%s2352_s6 + $0x10] sm:$0xff] %v340_v46  ;;  %v341_v49 = vmax.f32 %v247_v47, 0.0 }
 0x103   :  { %367 = vst [vmem:[%s2352_s6 + $0x18] sm:$0xff] %v341_v49 }
 0x104   :  { %v251_v50 = vpop.f32.mrb[8].mxu0 }
 0x105   :  { %v252_v51 = vadd.f32 %v2004_v33, %v251_v50  ;;  %v1406_v52 = vpop.f32.mrb[9].mxu0 }
 0x106   :  { %v254_v53 = vpop.f32.mrb[10].mxu0 }
 0x107   :  { %v342_v54 = vmax.f32 %v252_v51, 0.0  ;;  %v255_v55 = vadd.f32 %v2004_v33, %v254_v53  ;;  %v1407_v56 = vpop.f32.mrb[11].mxu0 }
 0x109   :  { %368 = vst [vmem:[%s2352_s6 + $0x20] sm:$0xff] %v342_v54  ;;  %v343_v57 = vmax.f32 %v255_v55, 0.0 }
 0x10b   :  { %369 = vst [vmem:[%s2352_s6 + $0x28] sm:$0xff] %v343_v57 }
 0x10c   :  { %v259_v58 = vpop.f32.mrb[12].mxu0 }
 0x10d   :  { %v260_v59 = vadd.f32 %v2004_v33, %v259_v58  ;;  %v1410_v60 = vpop.f32.mrb[13].mxu0 }
 0x10e   :  { %v262_v61 = vpop.f32.mrb[14].mxu0 }
 0x10f   :  { %v344_v62 = vmax.f32 %v260_v59, 0.0  ;;  %v263_v63 = vadd.f32 %v2004_v33, %v262_v61  ;;  %v1411_v0 = vpop.f32.mrb[15].mxu0 }
 0x111   :  { %370 = vst [vmem:[%s2352_s6 + $0x30] sm:$0xff] %v344_v62  ;;  %v345_v1 = vmax.f32 %v263_v63, 0.0 }
 0x113   :  { %371 = vst [vmem:[%s2352_s6 + $0x38] sm:$0xff] %v345_v1 }
 0x114   :  { %v267_v3 = vpop.f32.mrb[16].mxu0 }
 0x115   :  { %v268_v4 = vadd.f32 %v2004_v33, %v267_v3  ;;  %v987_v5 = vpop.f32.mrb[0].mxu1  ;;  %v1414_v6 = vpop.f32.mrb[17].mxu0 }
 0x116   :  { %v988_v7 = vadd.f32 %v2041_v2, %v987_v5  ;;  %v989_v8 = vpop.f32.mrb[1].mxu1  ;;  %v270_v9 = vpop.f32.mrb[18].mxu0 }
 0x117   :  { %v346_v10 = vmax.f32 %v268_v4, 0.0  ;;  %v271_v11 = vadd.f32 %v2004_v33, %v270_v9  ;;  %v990_v12 = vpop.f32.mrb[2].mxu1  ;;  %v1415_v13 = vpop.f32.mrb[19].mxu0 }
 0x118   :  { %v1158_v14 = vmax.f32 %v988_v7, 0.0  ;;  %v991_v15 = vadd.f32 %v2041_v2, %v990_v12  ;;  %v992_v16 = vpop.f32.mrb[3].mxu1 }
 0x119   :  { %372 = vst [vmem:[%s2352_s6 + $0x40] sm:$0xff] %v346_v10  ;;  %v347_v17 = vmax.f32 %v271_v11, 0.0 }
 0x11a   :  { %1216 = vst [vmem:[%s2354_s7 + $0xa0] sm:$0xff] %v1158_v14  ;;  %v1159_v18 = vmax.f32 %v991_v15, 0.0 }
 0x11b   :  { %373 = vst [vmem:[%s2352_s6 + $0x48] sm:$0xff] %v347_v17 }
 0x11c   :  { %1217 = vst [vmem:[%s2354_s7 + $0xa8] sm:$0xff] %v1159_v18  ;;  %v275_v19 = vpop.f32.mrb[20].mxu0 }
 0x11d   :  { %v276_v20 = vadd.f32 %v2004_v33, %v275_v19  ;;  %v995_v21 = vpop.f32.mrb[4].mxu1  ;;  %v1418_v22 = vpop.f32.mrb[21].mxu0 }
 0x11e   :  { %v996_v23 = vadd.f32 %v2041_v2, %v995_v21  ;;  %v997_v24 = vpop.f32.mrb[5].mxu1  ;;  %v278_v25 = vpop.f32.mrb[22].mxu0 }
 0x11f   :  { %v348_v26 = vmax.f32 %v276_v20, 0.0  ;;  %v279_v27 = vadd.f32 %v2004_v33, %v278_v25  ;;  %v998_v28 = vpop.f32.mrb[6].mxu1  ;;  %v1419_v29 = vpop.f32.mrb[23].mxu0 }
 0x120   :  { %v1160_v30 = vmax.f32 %v996_v23, 0.0  ;;  %v999_v31 = vadd.f32 %v2041_v2, %v998_v28  ;;  %v1000_v32 = vpop.f32.mrb[7].mxu1 }
 0x121   :  { %374 = vst [vmem:[%s2352_s6 + $0x50] sm:$0xff] %v348_v26  ;;  %v349_v34 = vmax.f32 %v279_v27, 0.0 }
 0x122   :  { %1218 = vst [vmem:[%s2354_s7 + $0xb0] sm:$0xff] %v1160_v30  ;;  %v1161_v35 = vmax.f32 %v999_v31, 0.0 }
 0x123   :  { %375 = vst [vmem:[%s2352_s6 + $0x58] sm:$0xff] %v349_v34 }
 0x124   :  { %1219 = vst [vmem:[%s2354_s7 + $0xb8] sm:$0xff] %v1161_v35  ;;  %v283_v36 = vpop.f32.mrb[24].mxu0 }
 0x125   :  { %v284_v37 = vadd.f32 %v2004_v33, %v283_v36  ;;  %v1003_v38 = vpop.f32.mrb[8].mxu1  ;;  %v1422_v39 = vpop.f32.mrb[25].mxu0 }
 0x126   :  { %v1004_v40 = vadd.f32 %v2041_v2, %v1003_v38  ;;  %v1005_v41 = vpop.f32.mrb[9].mxu1  ;;  %v286_v42 = vpop.f32.mrb[26].mxu0 }
 0x127   :  { %v350_v43 = vmax.f32 %v284_v37, 0.0  ;;  %v287_v44 = vadd.f32 %v2004_v33, %v286_v42  ;;  %v1006_v45 = vpop.f32.mrb[10].mxu1  ;;  %v1423_v46 = vpop.f32.mrb[27].mxu0 }
 0x128   :  { %v1162_v47 = vmax.f32 %v1004_v40, 0.0  ;;  %v1007_v48 = vadd.f32 %v2041_v2, %v1006_v45  ;;  %v1008_v49 = vpop.f32.mrb[11].mxu1 }
 0x129   :  { %376 = vst [vmem:[%s2352_s6 + $0x60] sm:$0xff] %v350_v43  ;;  %v351_v50 = vmax.f32 %v287_v44, 0.0 }
 0x12a   :  { %1220 = vst [vmem:[%s2354_s7 + $0xc0] sm:$0xff] %v1162_v47  ;;  %v1163_v51 = vmax.f32 %v1007_v48, 0.0 }
 0x12b   :  { %377 = vst [vmem:[%s2352_s6 + $0x68] sm:$0xff] %v351_v50 }
 0x12c   :  { %1221 = vst [vmem:[%s2354_s7 + $0xc8] sm:$0xff] %v1163_v51  ;;  %v291_v52 = vpop.f32.mrb[28].mxu0 }
 0x12d   :  { %v292_v53 = vadd.f32 %v2004_v33, %v291_v52  ;;  %v1011_v54 = vpop.f32.mrb[12].mxu1  ;;  %v1426_v55 = vpop.f32.mrb[29].mxu0 }
 0x12e   :  { %v1012_v56 = vadd.f32 %v2041_v2, %v1011_v54  ;;  %v1013_v57 = vpop.f32.mrb[13].mxu1  ;;  %v294_v58 = vpop.f32.mrb[30].mxu0 }
 0x12f   :  { %v352_v59 = vmax.f32 %v292_v53, 0.0  ;;  %v295_v60 = vadd.f32 %v2004_v33, %v294_v58  ;;  %v1014_v61 = vpop.f32.mrb[14].mxu1  ;;  %v1427_v62 = vpop.f32.mrb[31].mxu0 }
 0x130   :  { %v1164_v63 = vmax.f32 %v1012_v56, 0.0  ;;  %v1015_v0 = vadd.f32 %v2041_v2, %v1014_v61  ;;  %v1016_v1 = vpop.f32.mrb[15].mxu1 }
 0x131   :  { %378 = vst [vmem:[%s2352_s6 + $0x70] sm:$0xff] %v352_v59  ;;  %v353_v3 = vmax.f32 %v295_v60, 0.0 }
 0x132   :  { %1222 = vst [vmem:[%s2354_s7 + $0xd0] sm:$0xff] %v1164_v63  ;;  %v1165_v4 = vmax.f32 %v1015_v0, 0.0 }
 0x133   :  { %379 = vst [vmem:[%s2352_s6 + $0x78] sm:$0xff] %v353_v3 }
 0x134   :  { %1223 = vst [vmem:[%s2354_s7 + $0xd8] sm:$0xff] %v1165_v4  ;;  %v299_v5 = vpop.f32.mrb[32].mxu0 }
 0x135   :  { %v300_v6 = vadd.f32 %v2004_v33, %v299_v5  ;;  %v1019_v7 = vpop.f32.mrb[16].mxu1  ;;  %v1430_v8 = vpop.f32.mrb[33].mxu0 }
 0x136   :  { %v1020_v9 = vadd.f32 %v2041_v2, %v1019_v7  ;;  %v1021_v10 = vpop.f32.mrb[17].mxu1  ;;  %v302_v11 = vpop.f32.mrb[34].mxu0 }
 0x137   :  { %v354_v12 = vmax.f32 %v300_v6, 0.0  ;;  %v303_v13 = vadd.f32 %v2004_v33, %v302_v11  ;;  %v1022_v14 = vpop.f32.mrb[18].mxu1  ;;  %v1431_v15 = vpop.f32.mrb[35].mxu0 }
 0x138   :  { %v1166_v16 = vmax.f32 %v1020_v9, 0.0  ;;  %v1023_v17 = vadd.f32 %v2041_v2, %v1022_v14  ;;  %v1024_v18 = vpop.f32.mrb[19].mxu1 }
 0x139   :  { %380 = vst [vmem:[%s2352_s6 + $0x80] sm:$0xff] %v354_v12  ;;  %v355_v19 = vmax.f32 %v303_v13, 0.0 }
 0x13a   :  { %1224 = vst [vmem:[%s2354_s7 + $0xe0] sm:$0xff] %v1166_v16  ;;  %v1167_v20 = vmax.f32 %v1023_v17, 0.0 }
 0x13b   :  { %381 = vst [vmem:[%s2352_s6 + $0x88] sm:$0xff] %v355_v19 }
 0x13c   :  { %1225 = vst [vmem:[%s2354_s7 + $0xe8] sm:$0xff] %v1167_v20  ;;  %v307_v21 = vpop.f32.mrb[36].mxu0 }
 0x13d   :  { %v308_v22 = vadd.f32 %v2004_v33, %v307_v21  ;;  %v1027_v23 = vpop.f32.mrb[20].mxu1  ;;  %v1434_v24 = vpop.f32.mrb[37].mxu0 }
 0x13e   :  { %v1028_v25 = vadd.f32 %v2041_v2, %v1027_v23  ;;  %v1029_v26 = vpop.f32.mrb[21].mxu1  ;;  %v310_v27 = vpop.f32.mrb[38].mxu0 }
 0x13f   :  { %v356_v28 = vmax.f32 %v308_v22, 0.0  ;;  %v311_v29 = vadd.f32 %v2004_v33, %v310_v27  ;;  %v1030_v30 = vpop.f32.mrb[22].mxu1  ;;  %v1435_v31 = vpop.f32.mrb[39].mxu0 }
 0x140   :  { %v1168_v32 = vmax.f32 %v1028_v25, 0.0  ;;  %v1031_v34 = vadd.f32 %v2041_v2, %v1030_v30  ;;  %v1032_v35 = vpop.f32.mrb[23].mxu1 }
 0x141   :  { %382 = vst [vmem:[%s2352_s6 + $0x90] sm:$0xff] %v356_v28  ;;  %v357_v36 = vmax.f32 %v311_v29, 0.0 }
 0x142   :  { %1226 = vst [vmem:[%s2354_s7 + $0xf0] sm:$0xff] %v1168_v32  ;;  %v1169_v37 = vmax.f32 %v1031_v34, 0.0 }
 0x143   :  { %383 = vst [vmem:[%s2352_s6 + $0x98] sm:$0xff] %v357_v36 }
 0x144   :  { %1227 = vst [vmem:[%s2354_s7 + $0xf8] sm:$0xff] %v1169_v37  ;;  %v315_v38 = vpop.f32.mrb[40].mxu0 }
 0x145   :  { %v316_v39 = vadd.f32 %v2004_v33, %v315_v38  ;;  %v1035_v40 = vpop.f32.mrb[24].mxu1  ;;  %v1438_v41 = vpop.f32.mrb[41].mxu0 }
 0x146   :  { %v1036_v42 = vadd.f32 %v2041_v2, %v1035_v40  ;;  %v1037_v43 = vpop.f32.mrb[25].mxu1  ;;  %v318_v44 = vpop.f32.mrb[42].mxu0 }
 0x147   :  { %v358_v45 = vmax.f32 %v316_v39, 0.0  ;;  %v319_v46 = vadd.f32 %v2004_v33, %v318_v44  ;;  %v1038_v47 = vpop.f32.mrb[26].mxu1  ;;  %v1439_v48 = vpop.f32.mrb[43].mxu0 }
 0x148   :  { %v1170_v49 = vmax.f32 %v1036_v42, 0.0  ;;  %v1039_v50 = vadd.f32 %v2041_v2, %v1038_v47  ;;  %v1040_v51 = vpop.f32.mrb[27].mxu1 }
 0x149   :  { %384 = vst [vmem:[%s2352_s6 + $0xa0] sm:$0xff] %v358_v45  ;;  %v359_v52 = vmax.f32 %v319_v46, 0.0 }
 0x14a   :  { %1228 = vst [vmem:[%s2354_s7 + $0x100] sm:$0xff] %v1170_v49  ;;  %v1171_v53 = vmax.f32 %v1039_v50, 0.0 }
 0x14b   :  { %385 = vst [vmem:[%s2352_s6 + $0xa8] sm:$0xff] %v359_v52 }
 0x14c   :  { %1229 = vst [vmem:[%s2354_s7 + $0x108] sm:$0xff] %v1171_v53  ;;  %v323_v54 = vpop.f32.mrb[44].mxu0 }
 0x14d   :  { %v324_v55 = vadd.f32 %v2004_v33, %v323_v54  ;;  %v1043_v56 = vpop.f32.mrb[28].mxu1  ;;  %v1442_v57 = vpop.f32.mrb[45].mxu0 }
 0x14e   :  { %v1044_v58 = vadd.f32 %v2041_v2, %v1043_v56  ;;  %v1045_v59 = vpop.f32.mrb[29].mxu1  ;;  %v326_v60 = vpop.f32.mrb[46].mxu0 }
 0x14f   :  { %v360_v61 = vmax.f32 %v324_v55, 0.0  ;;  %v327_v62 = vadd.f32 %v2004_v33, %v326_v60  ;;  %v1046_v63 = vpop.f32.mrb[30].mxu1  ;;  %v1443_v0 = vpop.f32.mrb[47].mxu0 }
 0x150   :  { %v1172_v1 = vmax.f32 %v1044_v58, 0.0  ;;  %v1047_v3 = vadd.f32 %v2041_v2, %v1046_v63  ;;  %v1048_v4 = vpop.f32.mrb[31].mxu1 }
 0x151   :  { %386 = vst [vmem:[%s2352_s6 + $0xb0] sm:$0xff] %v360_v61  ;;  %v361_v5 = vmax.f32 %v327_v62, 0.0 }
 0x152   :  { %1230 = vst [vmem:[%s2354_s7 + $0x110] sm:$0xff] %v1172_v1  ;;  %v1173_v6 = vmax.f32 %v1047_v3, 0.0 }
 0x153   :  { %387 = vst [vmem:[%s2352_s6 + $0xb8] sm:$0xff] %v361_v5 }
 0x154   :  { %1231 = vst [vmem:[%s2354_s7 + $0x118] sm:$0xff] %v1173_v6  ;;  %v331_v7 = vpop.f32.mrb[48].mxu0 }
 0x155   :  { %v332_v8 = vadd.f32 %v2004_v33, %v331_v7  ;;  %v1051_v9 = vpop.f32.mrb[32].mxu1  ;;  %v1446_v10 = vpop.f32.mrb[49].mxu0 }
 0x156   :  { %v1052_v11 = vadd.f32 %v2041_v2, %v1051_v9  ;;  %v1053_v12 = vpop.f32.mrb[33].mxu1  ;;  %v334_v13 = vpop.f32.mrb[50].mxu0 }
 0x157   :  { %v362_v14 = vmax.f32 %v332_v8, 0.0  ;;  %v335_v15 = vadd.f32 %v2004_v33, %v334_v13  ;;  %v1054_v16 = vpop.f32.mrb[34].mxu1  ;;  %v1447_v17 = vpop.f32.mrb[51].mxu0 }
 0x158   :  { %v1174_v18 = vmax.f32 %v1052_v11, 0.0  ;;  %v1055_v19 = vadd.f32 %v2041_v2, %v1054_v16  ;;  %v1056_v20 = vpop.f32.mrb[35].mxu1 }
 0x159   :  { %388 = vst [vmem:[%s2352_s6 + $0xc0] sm:$0xff] %v362_v14  ;;  %v363_v21 = vmax.f32 %v335_v15, 0.0 }
 0x15a   :  { %1232 = vst [vmem:[%s2354_s7 + $0x120] sm:$0xff] %v1174_v18  ;;  %v1175_v22 = vmax.f32 %v1055_v19, 0.0 }
 0x15b   :  { %389 = vst [vmem:[%s2352_s6 + $0xc8] sm:$0xff] %v363_v21 }
 0x15c   :  { %1233 = vst [vmem:[%s2354_s7 + $0x128] sm:$0xff] %v1175_v22  ;;  %v907_v33 = vpop.f32.mrb[52].mxu0 }
 0x15d   :  { %v908_v23 = vadd.f32 %v2041_v2, %v907_v33  ;;  %v1059_v24 = vpop.f32.mrb[36].mxu1  ;;  %v909_v25 = vpop.f32.mrb[53].mxu0 }
 0x15e   :  { %v1060_v26 = vadd.f32 %v2041_v2, %v1059_v24  ;;  %v1061_v27 = vpop.f32.mrb[37].mxu1  ;;  %v910_v28 = vpop.f32.mrb[54].mxu0 }
 0x15f   :  { %v1138_v29 = vmax.f32 %v908_v23, 0.0  ;;  %v911_v30 = vadd.f32 %v2041_v2, %v910_v28  ;;  %v1062_v31 = vpop.f32.mrb[38].mxu1  ;;  %v912_v32 = vpop.f32.mrb[55].mxu0 }
 0x160   :  { %v1176_v34 = vmax.f32 %v1060_v26, 0.0  ;;  %v1063_v35 = vadd.f32 %v2041_v2, %v1062_v31  ;;  %v1064_v36 = vpop.f32.mrb[39].mxu1 }
 0x161   :  { %1196 = vst [vmem:[%s2354_s7] sm:$0xff] %v1138_v29  ;;  %v1139_v37 = vmax.f32 %v911_v30, 0.0 }
 0x162   :  { %1234 = vst [vmem:[%s2354_s7 + $0x130] sm:$0xff] %v1176_v34  ;;  %v1177_v38 = vmax.f32 %v1063_v35, 0.0 }
 0x163   :  { %1197 = vst [vmem:[%s2354_s7 + $0x8] sm:$0xff] %v1139_v37 }
 0x164   :  { %1235 = vst [vmem:[%s2354_s7 + $0x138] sm:$0xff] %v1177_v38  ;;  %v915_v39 = vpop.f32.mrb[56].mxu0 }
 0x165   :  { %v916_v40 = vadd.f32 %v2041_v2, %v915_v39  ;;  %v1067_v41 = vpop.f32.mrb[40].mxu1  ;;  %v917_v42 = vpop.f32.mrb[57].mxu0 }
 0x166   :  { %v1068_v43 = vadd.f32 %v2041_v2, %v1067_v41  ;;  %v1069_v44 = vpop.f32.mrb[41].mxu1  ;;  %v918_v45 = vpop.f32.mrb[58].mxu0 }
 0x167   :  { %v1140_v46 = vmax.f32 %v916_v40, 0.0  ;;  %v919_v47 = vadd.f32 %v2041_v2, %v918_v45  ;;  %v1070_v48 = vpop.f32.mrb[42].mxu1  ;;  %v920_v49 = vpop.f32.mrb[59].mxu0 }
 0x168   :  { %v1178_v50 = vmax.f32 %v1068_v43, 0.0  ;;  %v1071_v51 = vadd.f32 %v2041_v2, %v1070_v48  ;;  %v1072_v52 = vpop.f32.mrb[43].mxu1 }
 0x169   :  { %1198 = vst [vmem:[%s2354_s7 + $0x10] sm:$0xff] %v1140_v46  ;;  %v1141_v53 = vmax.f32 %v919_v47, 0.0 }
 0x16a   :  { %1236 = vst [vmem:[%s2354_s7 + $0x140] sm:$0xff] %v1178_v50  ;;  %v1179_v54 = vmax.f32 %v1071_v51, 0.0 }
 0x16b   :  { %1199 = vst [vmem:[%s2354_s7 + $0x18] sm:$0xff] %v1141_v53 }
 0x16c   :  { %1237 = vst [vmem:[%s2354_s7 + $0x148] sm:$0xff] %v1179_v54  ;;  %v923_v55 = vpop.f32.mrb[60].mxu0 }
 0x16d   :  { %v924_v56 = vadd.f32 %v2041_v2, %v923_v55  ;;  %v1075_v57 = vpop.f32.mrb[44].mxu1  ;;  %v925_v58 = vpop.f32.mrb[61].mxu0 }
 0x16e   :  { %v1076_v59 = vadd.f32 %v2041_v2, %v1075_v57  ;;  %v1077_v60 = vpop.f32.mrb[45].mxu1  ;;  %v926_v61 = vpop.f32.mrb[62].mxu0 }
 0x16f   :  { %v1142_v62 = vmax.f32 %v924_v56, 0.0  ;;  %v927_v63 = vadd.f32 %v2041_v2, %v926_v61  ;;  %v1078_v0 = vpop.f32.mrb[46].mxu1  ;;  %v928_v1 = vpop.f32.mrb[63].mxu0 }
 0x170   :  { %v1180_v3 = vmax.f32 %v1076_v59, 0.0  ;;  %v1079_v4 = vadd.f32 %v2041_v2, %v1078_v0  ;;  %v1080_v5 = vpop.f32.mrb[47].mxu1 }
 0x171   :  { %1200 = vst [vmem:[%s2354_s7 + $0x20] sm:$0xff] %v1142_v62  ;;  %v1143_v6 = vmax.f32 %v927_v63, 0.0 }
 0x172   :  { %1238 = vst [vmem:[%s2354_s7 + $0x150] sm:$0xff] %v1180_v3  ;;  %v1181_v7 = vmax.f32 %v1079_v4, 0.0 }
 0x173   :  { %1201 = vst [vmem:[%s2354_s7 + $0x28] sm:$0xff] %v1143_v6 }
 0x174   :  { %1239 = vst [vmem:[%s2354_s7 + $0x158] sm:$0xff] %v1181_v7  ;;  %v931_v8 = vpop.f32.mrb[64].mxu0 }
 0x175   :  { %v932_v9 = vadd.f32 %v2041_v2, %v931_v8  ;;  %v1083_v10 = vpop.f32.mrb[48].mxu1  ;;  %v933_v11 = vpop.f32.mrb[65].mxu0 }
 0x176   :  { %v1084_v12 = vadd.f32 %v2041_v2, %v1083_v10  ;;  %v1085_v13 = vpop.f32.mrb[49].mxu1  ;;  %v934_v14 = vpop.f32.mrb[66].mxu0 }
 0x177   :  { %v1144_v15 = vmax.f32 %v932_v9, 0.0  ;;  %v935_v16 = vadd.f32 %v2041_v2, %v934_v14  ;;  %v1086_v17 = vpop.f32.mrb[50].mxu1  ;;  %v936_v18 = vpop.f32.mrb[67].mxu0 }
 0x178   :  { %v1182_v19 = vmax.f32 %v1084_v12, 0.0  ;;  %v1087_v20 = vadd.f32 %v2041_v2, %v1086_v17  ;;  %v1088_v21 = vpop.f32.mrb[51].mxu1 }
 0x179   :  { %1202 = vst [vmem:[%s2354_s7 + $0x30] sm:$0xff] %v1144_v15  ;;  %v1145_v22 = vmax.f32 %v935_v16, 0.0 }
 0x17a   :  { %1240 = vst [vmem:[%s2354_s7 + $0x160] sm:$0xff] %v1182_v19  ;;  %v1183_v33 = vmax.f32 %v1087_v20, 0.0 }
 0x17b   :  { %1203 = vst [vmem:[%s2354_s7 + $0x38] sm:$0xff] %v1145_v22 }
 0x17c   :  { %1241 = vst [vmem:[%s2354_s7 + $0x168] sm:$0xff] %v1183_v33  ;;  %v939_v23 = vpop.f32.mrb[68].mxu0 }
 0x17d   :  { %v940_v24 = vadd.f32 %v2041_v2, %v939_v23  ;;  %v1091_v25 = vpop.f32.mrb[52].mxu1  ;;  %v941_v26 = vpop.f32.mrb[69].mxu0 }
 0x17e   :  { %v1092_v27 = vadd.f32 %v2041_v2, %v1091_v25  ;;  %v1093_v28 = vpop.f32.mrb[53].mxu1  ;;  %v942_v29 = vpop.f32.mrb[70].mxu0 }
 0x17f   :  { %v1146_v30 = vmax.f32 %v940_v24, 0.0  ;;  %v943_v31 = vadd.f32 %v2041_v2, %v942_v29  ;;  %v1094_v32 = vpop.f32.mrb[54].mxu1  ;;  %v944_v34 = vpop.f32.mrb[71].mxu0 }
 0x180   :  { %v1184_v35 = vmax.f32 %v1092_v27, 0.0  ;;  %v1095_v36 = vadd.f32 %v2041_v2, %v1094_v32  ;;  %v1096_v37 = vpop.f32.mrb[55].mxu1 }
 0x181   :  { %1204 = vst [vmem:[%s2354_s7 + $0x40] sm:$0xff] %v1146_v30  ;;  %v1147_v38 = vmax.f32 %v943_v31, 0.0 }
 0x182   :  { %1242 = vst [vmem:[%s2354_s7 + $0x170] sm:$0xff] %v1184_v35  ;;  %v1185_v39 = vmax.f32 %v1095_v36, 0.0 }
 0x183   :  { %1205 = vst [vmem:[%s2354_s7 + $0x48] sm:$0xff] %v1147_v38 }
 0x184   :  { %1243 = vst [vmem:[%s2354_s7 + $0x178] sm:$0xff] %v1185_v39  ;;  %v947_v40 = vpop.f32.mrb[72].mxu0 }
 0x185   :  { %v948_v41 = vadd.f32 %v2041_v2, %v947_v40  ;;  %v1099_v42 = vpop.f32.mrb[56].mxu1  ;;  %v949_v43 = vpop.f32.mrb[73].mxu0 }
 0x186   :  { %v1100_v44 = vadd.f32 %v2041_v2, %v1099_v42  ;;  %v1101_v45 = vpop.f32.mrb[57].mxu1  ;;  %v950_v46 = vpop.f32.mrb[74].mxu0 }
 0x187   :  { %v1148_v47 = vmax.f32 %v948_v41, 0.0  ;;  %v951_v48 = vadd.f32 %v2041_v2, %v950_v46  ;;  %v1102_v49 = vpop.f32.mrb[58].mxu1  ;;  %v952_v50 = vpop.f32.mrb[75].mxu0 }
 0x188   :  { %v1186_v51 = vmax.f32 %v1100_v44, 0.0  ;;  %v1103_v52 = vadd.f32 %v2041_v2, %v1102_v49  ;;  %v1104_v53 = vpop.f32.mrb[59].mxu1 }
 0x189   :  { %1206 = vst [vmem:[%s2354_s7 + $0x50] sm:$0xff] %v1148_v47  ;;  %v1149_v54 = vmax.f32 %v951_v48, 0.0 }
 0x18a   :  { %1244 = vst [vmem:[%s2354_s7 + $0x180] sm:$0xff] %v1186_v51  ;;  %v1187_v55 = vmax.f32 %v1103_v52, 0.0 }
 0x18b   :  { %1207 = vst [vmem:[%s2354_s7 + $0x58] sm:$0xff] %v1149_v54 }
 0x18c   :  { %1245 = vst [vmem:[%s2354_s7 + $0x188] sm:$0xff] %v1187_v55  ;;  %v955_v56 = vpop.f32.mrb[76].mxu0 }
 0x18d   :  { %v956_v57 = vadd.f32 %v2041_v2, %v955_v56  ;;  %v1107_v58 = vpop.f32.mrb[60].mxu1  ;;  %v957_v59 = vpop.f32.mrb[77].mxu0 }
 0x18e   :  { %v1108_v60 = vadd.f32 %v2041_v2, %v1107_v58  ;;  %v1109_v61 = vpop.f32.mrb[61].mxu1  ;;  %v958_v62 = vpop.f32.mrb[78].mxu0 }
 0x18f   :  { %v1150_v63 = vmax.f32 %v956_v57, 0.0  ;;  %v959_v0 = vadd.f32 %v2041_v2, %v958_v62  ;;  %v1110_v1 = vpop.f32.mrb[62].mxu1  ;;  %v960_v3 = vpop.f32.mrb[79].mxu0 }
 0x190   :  { %v1188_v4 = vmax.f32 %v1108_v60, 0.0  ;;  %v1111_v5 = vadd.f32 %v2041_v2, %v1110_v1  ;;  %v1112_v6 = vpop.f32.mrb[63].mxu1 }
 0x191   :  { %1208 = vst [vmem:[%s2354_s7 + $0x60] sm:$0xff] %v1150_v63  ;;  %v1151_v7 = vmax.f32 %v959_v0, 0.0 }
 0x192   :  { %1246 = vst [vmem:[%s2354_s7 + $0x190] sm:$0xff] %v1188_v4  ;;  %v1189_v8 = vmax.f32 %v1111_v5, 0.0 }
 0x193   :  { %1209 = vst [vmem:[%s2354_s7 + $0x68] sm:$0xff] %v1151_v7 }
 0x194   :  { %1247 = vst [vmem:[%s2354_s7 + $0x198] sm:$0xff] %v1189_v8  ;;  %v963_v9 = vpop.f32.mrb[80].mxu0 }
 0x195   :  { %v964_v10 = vadd.f32 %v2041_v2, %v963_v9  ;;  %v1115_v11 = vpop.f32.mrb[64].mxu1  ;;  %v965_v12 = vpop.f32.mrb[81].mxu0 }
 0x196   :  { %v1116_v13 = vadd.f32 %v2041_v2, %v1115_v11  ;;  %v1117_v14 = vpop.f32.mrb[65].mxu1  ;;  %v966_v15 = vpop.f32.mrb[82].mxu0 }
 0x197   :  { %v1152_v16 = vmax.f32 %v964_v10, 0.0  ;;  %v967_v17 = vadd.f32 %v2041_v2, %v966_v15  ;;  %v1118_v18 = vpop.f32.mrb[66].mxu1  ;;  %v968_v19 = vpop.f32.mrb[83].mxu0 }
 0x198   :  { %v1190_v20 = vmax.f32 %v1116_v13, 0.0  ;;  %v1119_v21 = vadd.f32 %v2041_v2, %v1118_v18  ;;  %v1120_v22 = vpop.f32.mrb[67].mxu1 }
 0x199   :  { %1210 = vst [vmem:[%s2354_s7 + $0x70] sm:$0xff] %v1152_v16  ;;  %v1153_v33 = vmax.f32 %v967_v17, 0.0 }
 0x19a   :  { %1248 = vst [vmem:[%s2354_s7 + $0x1a0] sm:$0xff] %v1190_v20  ;;  %v1191_v23 = vmax.f32 %v1119_v21, 0.0 }
 0x19b   :  { %1211 = vst [vmem:[%s2354_s7 + $0x78] sm:$0xff] %v1153_v33 }
 0x19c   :  { %1249 = vst [vmem:[%s2354_s7 + $0x1a8] sm:$0xff] %v1191_v23  ;;  %v971_v24 = vpop.f32.mrb[84].mxu0 }
 0x19d   :  { %v972_v25 = vadd.f32 %v2041_v2, %v971_v24  ;;  %v1123_v26 = vpop.f32.mrb[68].mxu1  ;;  %v973_v27 = vpop.f32.mrb[85].mxu0 }
 0x19e   :  { %v1124_v28 = vadd.f32 %v2041_v2, %v1123_v26  ;;  %v1125_v29 = vpop.f32.mrb[69].mxu1  ;;  %v974_v30 = vpop.f32.mrb[86].mxu0 }
 0x19f   :  { %v1154_v31 = vmax.f32 %v972_v25, 0.0  ;;  %v975_v32 = vadd.f32 %v2041_v2, %v974_v30  ;;  %v1126_v34 = vpop.f32.mrb[70].mxu1  ;;  %v976_v35 = vpop.f32.mrb[87].mxu0 }
 0x1a0   :  { %v1192_v36 = vmax.f32 %v1124_v28, 0.0  ;;  %v1127_v37 = vadd.f32 %v2041_v2, %v1126_v34  ;;  %v1128_v38 = vpop.f32.mrb[71].mxu1 }
 0x1a1   :  { %1212 = vst [vmem:[%s2354_s7 + $0x80] sm:$0xff] %v1154_v31  ;;  %v1155_v39 = vmax.f32 %v975_v32, 0.0 }
 0x1a2   :  { %1250 = vst [vmem:[%s2354_s7 + $0x1b0] sm:$0xff] %v1192_v36  ;;  %v1193_v40 = vmax.f32 %v1127_v37, 0.0 }
 0x1a3   :  { %1213 = vst [vmem:[%s2354_s7 + $0x88] sm:$0xff] %v1155_v39 }
 0x1a4   :  { %1251 = vst [vmem:[%s2354_s7 + $0x1b8] sm:$0xff] %v1193_v40  ;;  %v979_v41 = vpop.f32.mrb[88].mxu0 }
 0x1a5   :  { %v980_v42 = vadd.f32 %v2041_v2, %v979_v41  ;;  %v1131_v43 = vpop.f32.mrb[72].mxu1  ;;  %v981_v44 = vpop.f32.mrb[89].mxu0 }
 0x1a6   :  { %v1132_v45 = vadd.f32 %v2041_v2, %v1131_v43  ;;  %v1133_v46 = vpop.f32.mrb[73].mxu1  ;;  %v982_v47 = vpop.f32.mrb[90].mxu0 }
 0x1a7   :  { %v1156_v48 = vmax.f32 %v980_v42, 0.0  ;;  %v983_v49 = vadd.f32 %v2041_v2, %v982_v47  ;;  %v1134_v50 = vpop.f32.mrb[74].mxu1  ;;  %v984_v51 = vpop.f32.mrb[91].mxu0 }
 0x1a8   :  { %v1194_v52 = vmax.f32 %v1132_v45, 0.0  ;;  %v1135_v53 = vadd.f32 %v2041_v2, %v1134_v50  ;;  %v1136_v54 = vpop.f32.mrb[75].mxu1 }
 0x1a9   :  { %1214 = vst [vmem:[%s2354_s7 + $0x90] sm:$0xff] %v1156_v48  ;;  %v1157_v55 = vmax.f32 %v983_v49, 0.0 }
 0x1aa   :  { %1252 = vst [vmem:[%s2354_s7 + $0x1c0] sm:$0xff] %v1194_v52  ;;  %v1195_v56 = vmax.f32 %v1135_v53, 0.0 }
 0x1ab   :  { %1215 = vst [vmem:[%s2354_s7 + $0x98] sm:$0xff] %v1157_v55 }
 0x1ac   :  { %1253 = vst [vmem:[%s2354_s7 + $0x1c8] sm:$0xff] %v1195_v56 }

// kernel: audionav_baseline_net_forward.4
= control target key start
LH: loop header
LB: loop body
LE: loop exit
PB: predicated region body
PF: predicated region fallthrough
CT: control target
= control target key end

     0   :  { %s1602_s1 = inlined_call_operand.vmem [shape: bf16[384,128], index: 1, kind: input, shape index: {}]   ;;  %s1603_s0 = inlined_call_operand.vmem [shape: bf16[32,384], index: 0, kind: input, shape index: {}]   ;;  %s1604_s4 = inlined_call_operand.vmem [shape: bf16[512,128], index: 4, kind: input, shape index: {}]   ;;  %s1605_s3 = inlined_call_operand.vmem [shape: bf16[80,512], index: 3, kind: input, shape index: {}]   ;;  %s1606_s2 = inlined_call_operand.vmem [shape: f32[1,128], index: 2, kind: input, shape index: {}]   ;;  %s1607_s6 = inlined_call_operand.vmem [shape: f32[32,128], index: 6, kind: output, shape index: {0}]   ;;  %s1608_s5 = inlined_call_operand.vmem [shape: f32[1,128], index: 5, kind: input, shape index: {}]   ;;  %s1609_s7 = inlined_call_operand.vmem [shape: f32[80,128], index: 7, kind: output, shape index: {1}]  }
   0x1   :  { %v1162_v0 = vld [vmem:[%s1602_s1 + $0x40] sm:$0xff]   ;;  %v1165_v3 = vld [vmem:[%s1602_s1 + $0x48] sm:$0xff]   ;;  %v1168_v6 = vld [vmem:[%s1602_s1 + $0x50] sm:$0xff]  }
   0x2   :  { %v1163_v1 = vld [vmem:[%s1602_s1 + $0x80] sm:$0xff]   ;;  %1012 = vmatprep.subr.bf16.mxu0 %v1162_v0  ;;  %v1166_v4 = vld [vmem:[%s1602_s1 + $0x88] sm:$0xff]   ;;  %v1169_v7 = vld [vmem:[%s1602_s1 + $0x90] sm:$0xff]  }
   0x3   :  { %v1164_v2 = vld [vmem:[%s1602_s1] sm:$0xff]   ;;  %1142 = vmatprep.subr.bf16.mxu1 %v1163_v1  ;;  %v1167_v5 = vld [vmem:[%s1602_s1 + $0x8] sm:$0xff]   ;;  %v1170_v8 = vld [vmem:[%s1602_s1 + $0x10] sm:$0xff]  }
   0x4   :  { %1013 = vmatpush3.bf16.msra.mxu0 %v1164_v2  ;;  %1143 = vmatpush3.bf16.msra.mxu1 %v1163_v1  ;;  %v1171_v9 = vld [vmem:[%s1602_s1 + $0x58] sm:$0xff]   ;;  %v1174_v12 = vld [vmem:[%s1602_s1 + $0x60] sm:$0xff]   ;;  %v1177_v15 = vld [vmem:[%s1602_s1 + $0x68] sm:$0xff]  }
   0x5   :  { %1014 = vmatprep.subr.bf16.mxu0 %v1165_v3  ;;  %1144 = vmatprep.subr.bf16.mxu1 %v1166_v4  ;;  %v1172_v10 = vld [vmem:[%s1602_s1 + $0x98] sm:$0xff]   ;;  %v1175_v13 = vld [vmem:[%s1602_s1 + $0xa0] sm:$0xff]   ;;  %v1178_v16 = vld [vmem:[%s1602_s1 + $0xa8] sm:$0xff]  }
   0x6   :  { %v1173_v11 = vld [vmem:[%s1602_s1 + $0x18] sm:$0xff]   ;;  %v1176_v14 = vld [vmem:[%s1602_s1 + $0x20] sm:$0xff]   ;;  %v1179_v17 = vld [vmem:[%s1602_s1 + $0x28] sm:$0xff]  }
   0x7   :  { %v1180_v18 = vld [vmem:[%s1602_s1 + $0x70] sm:$0xff]   ;;  %v1183_v21 = vld [vmem:[%s1602_s1 + $0x78] sm:$0xff]   ;;  %v1191_v26 = vld [vmem:[%s1604_s4 + $0x40] sm:$0xff]  }
   0x8   :  { %1015 = vmatpush3.bf16.msra.mxu0 %v1167_v5  ;;  %1145 = vmatpush3.bf16.msra.mxu1 %v1166_v4  ;;  %v1181_v19 = vld [vmem:[%s1602_s1 + $0xb0] sm:$0xff]   ;;  %v1184_v22 = vld [vmem:[%s1602_s1 + $0xb8] sm:$0xff]   ;;  %v1186_v27 = vld [vmem:[%s1603_s0] ss:$12 sps:$4 sm:$0xff]  }
   0x9   :  { %1016 = vmatprep.subr.bf16.mxu0 %v1168_v6  ;;  %1146 = vmatprep.subr.bf16.mxu1 %v1169_v7  ;;  %v1182_v20 = vld [vmem:[%s1602_s1 + $0x30] sm:$0xff]   ;;  %v1185_v25 = vld [vmem:[%s1602_s1 + $0x38] sm:$0xff]   ;;  %v1190_v28 = vld [vmem:[%s1603_s0 + $0x20] ss:$12 sps:$4 sm:$0xff]  }
   0xa   :  { %v1188_v23 = vld [vmem:[%s1603_s0 + $0x4] ss:$12 sps:$4 sm:$0xff]   ;;  %v1189_v24 = vld [vmem:[%s1603_s0 + $0x8] ss:$12 sps:$4 sm:$0xff]   ;;  %v1206_v42 = vld [vmem:[%s1604_s4 + $0x58] sm:$0xff]  }
   0xb   :  { %297 = vmatprep.mubr.bf16.mxu0 %v1188_v23  ;;  %v1192_v29 = vld [vmem:[%s1604_s4 + $0xc0] sm:$0xff]   ;;  %1158 = vmatprep.mubr.bf16.mxu1 %v1189_v24  ;;  %v1195_v32 = vld [vmem:[%s1604_s4 + $0x48] sm:$0xff]   ;;  %v1202_v38 = vld [vmem:[%s1604_s4 + $0x50] sm:$0xff]  }
   0xc   :  { %1017 = vmatpush3.bf16.msra.mxu0 %v1170_v8  ;;  %1147 = vmatpush3.bf16.msra.mxu1 %v1169_v7  ;;  %v1193_v30 = vld [vmem:[%s1604_s4] sm:$0xff]   ;;  %v1196_v33 = vld [vmem:[%s1604_s4 + $0xc8] sm:$0xff]   ;;  %v1203_v39 = vld [vmem:[%s1604_s4 + $0xd0] sm:$0xff]  }
   0xd   :  { %1018 = vmatprep.subr.bf16.mxu0 %v1171_v9  ;;  %1148 = vmatprep.subr.bf16.mxu1 %v1172_v10  ;;  %v1194_v31 = vld [vmem:[%s1604_s4 + $0x80] sm:$0xff]   ;;  %v1197_v34 = vld [vmem:[%s1604_s4 + $0x8] sm:$0xff]   ;;  %v1204_v40 = vld [vmem:[%s1604_s4 + $0x10] sm:$0xff]  }
   0xe   :  { %v1198_v35 = vld [vmem:[%s1604_s4 + $0x88] sm:$0xff]   ;;  %v1201_v37 = vld [vmem:[%s1603_s0 + $0x18] ss:$12 sps:$4 sm:$0xff]   ;;  %v1205_v41 = vld [vmem:[%s1604_s4 + $0x90] sm:$0xff]  }
   0xf   :  { %v1199_v36 = vld [vmem:[%s1603_s0 + $0x1c] ss:$12 sps:$4 sm:$0xff]   ;;  %v1210_v46 = vld [vmem:[%s1604_s4 + $0x60] sm:$0xff]   ;;  %v1218_v54 = vld [vmem:[%s1604_s4 + $0x70] sm:$0xff]  }
  0x10   :  { %1019 = vmatpush3.bf16.msra.mxu0 %v1173_v11  ;;  %1149 = vmatpush3.bf16.msra.mxu1 %v1172_v10  ;;  %v1207_v43 = vld [vmem:[%s1604_s4 + $0xd8] sm:$0xff]   ;;  %v1211_v47 = vld [vmem:[%s1604_s4 + $0xe0] sm:$0xff]   ;;  %v1214_v50 = vld [vmem:[%s1604_s4 + $0x68] sm:$0xff]  }
  0x11   :  { %1020 = vmatprep.subr.bf16.mxu0 %v1174_v12  ;;  %1150 = vmatprep.subr.bf16.mxu1 %v1175_v13  ;;  %v1208_v44 = vld [vmem:[%s1604_s4 + $0x18] sm:$0xff]   ;;  %v1212_v48 = vld [vmem:[%s1604_s4 + $0x20] sm:$0xff]   ;;  %v1215_v51 = vld [vmem:[%s1604_s4 + $0xe8] sm:$0xff]  }
  0x12   :  { %v1209_v45 = vld [vmem:[%s1604_s4 + $0x98] sm:$0xff]   ;;  %v1213_v49 = vld [vmem:[%s1604_s4 + $0xa0] sm:$0xff]   ;;  %v1216_v52 = vld [vmem:[%s1604_s4 + $0x28] sm:$0xff]  }
  0x13   :  { %v1217_v53 = vld [vmem:[%s1604_s4 + $0xa8] sm:$0xff]   ;;  %v1219_v55 = vld [vmem:[%s1604_s4 + $0xf0] sm:$0xff]   ;;  %v1222_v58 = vld [vmem:[%s1604_s4 + $0x78] sm:$0xff]  }
  0x14   :  { %1021 = vmatpush3.bf16.msra.mxu0 %v1176_v14  ;;  %1151 = vmatpush3.bf16.msra.mxu1 %v1175_v13  ;;  %v1220_v56 = vld [vmem:[%s1604_s4 + $0x30] sm:$0xff]   ;;  %v1223_v59 = vld [vmem:[%s1604_s4 + $0xf8] sm:$0xff]  }
  0x15   :  { %1022 = vmatprep.subr.bf16.mxu0 %v1177_v15  ;;  %1152 = vmatprep.subr.bf16.mxu1 %v1178_v16  ;;  %v1221_v57 = vld [vmem:[%s1604_s4 + $0xb0] sm:$0xff]   ;;  %v1224_v60 = vld [vmem:[%s1604_s4 + $0x38] sm:$0xff]  }
  0x16   :  { %v1225_v61 = vld [vmem:[%s1604_s4 + $0xb8] sm:$0xff]   ;;  %v1226_v62 = vld [vmem:[%s1605_s3] ss:$16 sps:$4 sm:$0xff]   ;;  %v1228_v63 = vld [vmem:[%s1605_s3 + $0x4] ss:$16 sps:$4 sm:$0xff]  }
  0x17   :  { %v1229_v0 = vld [vmem:[%s1605_s3 + $0x8] ss:$16 sps:$4 sm:$0xff]   ;;  %v1231_v1 = vld [vmem:[%s1605_s3 + $0xc] ss:$16 sps:$4 sm:$0xff]   ;;  %v1232_v2 = vld [vmem:[%s1605_s3 + $0x24] ss:$16 sps:$4 sm:$0xff]  }
  0x18   :  { %1023 = vmatpush3.bf16.msra.mxu0 %v1179_v17  ;;  %1153 = vmatpush3.bf16.msra.mxu1 %v1178_v16  ;;  %v1234_v3 = vld [vmem:[%s1605_s3 + $0x2c] ss:$16 sps:$4 sm:$0xff]   ;;  %v1236_v4 = vld [vmem:[%s1605_s3 + $0x20] ss:$16 sps:$4 sm:$0xff]   ;;  %v1237_v5 = vld [vmem:[%s1605_s3 + $0x28] ss:$16 sps:$4 sm:$0xff]  }
  0x19   :  { %1024 = vmatprep.subr.bf16.mxu0 %v1180_v18  ;;  %1154 = vmatprep.subr.bf16.mxu1 %v1181_v19  ;;  %v1238_v6 = vld [vmem:[%s1605_s3 + $0x44] ss:$16 sps:$4 sm:$0xff]   ;;  %v1240_v7 = vld [vmem:[%s1605_s3 + $0x4c] ss:$16 sps:$4 sm:$0xff]   ;;  %v1242_v8 = vld [vmem:[%s1605_s3 + $0x40] ss:$16 sps:$4 sm:$0xff]  }
  0x1a   :  { %v1243_v9 = vld [vmem:[%s1605_s3 + $0x48] ss:$16 sps:$4 sm:$0xff]   ;;  %v1244_v10 = vld [vmem:[%s1605_s3 + $0x64] ss:$16 sps:$4 sm:$0xff]   ;;  %v1246_v11 = vld [vmem:[%s1605_s3 + $0x6c] ss:$16 sps:$4 sm:$0xff]  }
  0x1b   :  { %v1248_v12 = vld [vmem:[%s1605_s3 + $0x60] ss:$16 sps:$4 sm:$0xff]   ;;  %v1249_v13 = vld [vmem:[%s1605_s3 + $0x68] ss:$16 sps:$4 sm:$0xff]   ;;  %v1250_v14 = vld [vmem:[%s1605_s3 + $0x84] ss:$16 sps:$4 sm:$0xff]  }
  0x1c   :  { %1025 = vmatpush3.bf16.msra.mxu0 %v1182_v20  ;;  %1155 = vmatpush3.bf16.msra.mxu1 %v1181_v19  ;;  %v1252_v15 = vld [vmem:[%s1605_s3 + $0x8c] ss:$16 sps:$4 sm:$0xff]   ;;  %v1254_v16 = vld [vmem:[%s1605_s3 + $0x80] ss:$16 sps:$4 sm:$0xff]   ;;  %v1255_v17 = vld [vmem:[%s1605_s3 + $0x88] ss:$16 sps:$4 sm:$0xff]  }
  0x1d   :  { %1026 = vmatprep.subr.bf16.mxu0 %v1183_v21  ;;  %1156 = vmatprep.subr.bf16.mxu1 %v1184_v22  ;;  %v928_v21 = vld [vmem:[%s1606_s2] ss:$0 sm:$0xff] }
  0x20   :  { %1027 = vmatpush3.bf16.msra.mxu0 %v1185_v25  ;;  %1157 = vmatpush3.bf16.msra.mxu1 %v1184_v22 }
  0x21   :  { %1050 = vmatprep.subr.bf16.mxu0 %v1191_v26  ;;  %1096 = vmatprep.subr.bf16.mxu1 %v1192_v29 }
  0x23   :  { %298 = vmatmul.mubr.bf16.vlgmr.msra.gmra.mrb[0].mxu0 %v1186_v27  ;;  %1159 = vmatmul.mubr.bf16.vlgmr.msra.gmra.mrb[0].mxu1 %v1190_v28 }
  0x24   :  { %1051 = vmatpush3.bf16.msra.mxu0 %v1193_v30  ;;  %1097 = vmatpush3.bf16.msra.mxu1 %v1194_v31 }
  0x25   :  { %1052 = vmatprep.subr.bf16.mxu0 %v1195_v32  ;;  %1098 = vmatprep.subr.bf16.mxu1 %v1196_v33 }
  0x26   :  { %305 = vmatprep.mubr.bf16.mxu0 %v1199_v36  ;;  %859 = vmatprep.mubr.bf16.mxu1 %v1231_v1 }
  0x28   :  { %1053 = vmatpush3.bf16.msra.mxu0 %v1197_v34  ;;  %1099 = vmatpush3.bf16.msra.mxu1 %v1198_v35 }
  0x29   :  { %1054 = vmatprep.subr.bf16.mxu0 %v1202_v38  ;;  %1100 = vmatprep.subr.bf16.mxu1 %v1203_v39 }
  0x2b   :  { %306 = vmatmul.mubr.bf16.gmra.mrb[4].mxu0 %v1201_v37 }
  0x2c   :  { %1055 = vmatpush3.bf16.msra.mxu0 %v1204_v40  ;;  %1101 = vmatpush3.bf16.msra.mxu1 %v1205_v41 }
  0x2d   :  { %1056 = vmatprep.subr.bf16.mxu0 %v1206_v42  ;;  %1102 = vmatprep.subr.bf16.mxu1 %v1207_v43 }
  0x2e   :  { %786 = vmatprep.mubr.bf16.mxu0 %v1228_v63 }
  0x30   :  { %1057 = vmatpush3.bf16.msra.mxu0 %v1208_v44  ;;  %1103 = vmatpush3.bf16.msra.mxu1 %v1209_v45 }
  0x31   :  { %1058 = vmatprep.subr.bf16.mxu0 %v1210_v46  ;;  %1104 = vmatprep.subr.bf16.mxu1 %v1211_v47 }
  0x34   :  { %1059 = vmatpush3.bf16.msra.mxu0 %v1212_v48  ;;  %1105 = vmatpush3.bf16.msra.mxu1 %v1213_v49  ;;  %v1560_v49 = vld [vmem:[%s1608_s5] ss:$0 sm:$0xff] }
  0x35   :  { %1060 = vmatprep.subr.bf16.mxu0 %v1214_v50  ;;  %1106 = vmatprep.subr.bf16.mxu1 %v1215_v51 }
  0x38   :  { %1061 = vmatpush3.bf16.msra.mxu0 %v1216_v52  ;;  %1107 = vmatpush3.bf16.msra.mxu1 %v1217_v53 }
  0x39   :  { %1062 = vmatprep.subr.bf16.mxu0 %v1218_v54  ;;  %1108 = vmatprep.subr.bf16.mxu1 %v1219_v55 }
  0x3c   :  { %1063 = vmatpush3.bf16.msra.mxu0 %v1220_v56  ;;  %1109 = vmatpush3.bf16.msra.mxu1 %v1221_v57 }
  0x3d   :  { %1064 = vmatprep.subr.bf16.mxu0 %v1222_v58  ;;  %1110 = vmatprep.subr.bf16.mxu1 %v1223_v59 }
  0x40   :  { %1065 = vmatpush3.bf16.msra.mxu0 %v1224_v60  ;;  %1111 = vmatpush3.bf16.msra.mxu1 %v1225_v61 }
  0x43   :  { %787 = vmatmul.mubr.bf16.vlgmr.msra.gmra.mrb[8].mxu0 %v1226_v62  ;;  %860 = vmatmul.mubr.bf16.vlgmr.msra.gmra.mrb[4].mxu1 %v1229_v0 }
  0x44   :  { %794 = vmatprep.mubr.bf16.mxu0 %v1232_v2  ;;  %867 = vmatprep.mubr.bf16.mxu1 %v1234_v3 }
  0x4b   :  { %795 = vmatmul.mubr.bf16.gmra.mrb[12].mxu0 %v1236_v4  ;;  %868 = vmatmul.mubr.bf16.gmra.mrb[8].mxu1 %v1237_v5 }
  0x4c   :  { %802 = vmatprep.mubr.bf16.mxu0 %v1238_v6  ;;  %875 = vmatprep.mubr.bf16.mxu1 %v1240_v7 }
  0x53   :  { %803 = vmatmul.mubr.bf16.gmra.mrb[16].mxu0 %v1242_v8  ;;  %876 = vmatmul.mubr.bf16.gmra.mrb[12].mxu1 %v1243_v9 }
  0x54   :  { %810 = vmatprep.mubr.bf16.mxu0 %v1244_v10  ;;  %883 = vmatprep.mubr.bf16.mxu1 %v1246_v11 }
  0x5b   :  { %811 = vmatmul.mubr.bf16.gmra.mrb[20].mxu0 %v1248_v12  ;;  %884 = vmatmul.mubr.bf16.gmra.mrb[16].mxu1 %v1249_v13 }
  0x5c   :  { %818 = vmatprep.mubr.bf16.mxu0 %v1250_v14  ;;  %891 = vmatprep.mubr.bf16.mxu1 %v1252_v15 }
  0x63   :  { %819 = vmatmul.mubr.bf16.gmra.mrb[24].mxu0 %v1254_v16  ;;  %892 = vmatmul.mubr.bf16.gmra.mrb[20].mxu1 %v1255_v17 }
  0xf6   :  { %v1028_v18 = vpop.f32.mrb[0].mxu0  ;;  %v1160_v19 = vpop.f32.mrb[0].mxu1 }
  0xf7   :  { %v1029_v20 = vpop.f32.mrb[1].mxu0  ;;  %v348_v22 = vpop.f32.mrb[1].mxu1 }
  0xf8   :  { %v1030_v23 = vadd.f32 %v1029_v20, %v1028_v18  ;;  %v1031_v24 = vpop.f32.mrb[2].mxu0  ;;  %v1161_v25 = vpop.f32.mrb[2].mxu1 }
  0xf9   :  { %v1032_v26 = vpop.f32.mrb[3].mxu0  ;;  %v351_v27 = vpop.f32.mrb[3].mxu1 }
  0xfa   :  { %v300_v28 = vadd.f32 %v1030_v23, %v928_v21  ;;  %v1033_v29 = vadd.f32 %v1032_v26, %v1031_v24 }
  0xfc   :  { %v349_v30 = vadd.f32 %v348_v22, %v300_v28  ;;  %v303_v31 = vadd.f32 %v1033_v29, %v928_v21 }
  0xfe   :  { %v363_v32 = vmax.f32 %v349_v30, 0.0  ;;  %v352_v33 = vadd.f32 %v351_v27, %v303_v31  ;;  %v1034_v34 = vpop.f32.mrb[4].mxu0 }
  0xff   :  { %v1035_v35 = vpop.f32.mrb[5].mxu0 }
 0x100   :  { %367 = vst [vmem:[%s1607_s6] sm:$0xff] %v363_v32  ;;  %v364_v36 = vmax.f32 %v352_v33, 0.0  ;;  %v1036_v37 = vadd.f32 %v1035_v35, %v1034_v34  ;;  %v1037_v38 = vpop.f32.mrb[6].mxu0 }
 0x101   :  { %v1038_v39 = vpop.f32.mrb[7].mxu0 }
 0x102   :  { %368 = vst [vmem:[%s1607_s6 + $0x8] sm:$0xff] %v364_v36  ;;  %v308_v40 = vadd.f32 %v1036_v37, %v928_v21  ;;  %v1039_v41 = vadd.f32 %v1038_v39, %v1037_v38 }
 0x104   :  { %v357_v42 = vadd.f32 %v1160_v19, %v308_v40  ;;  %v311_v43 = vadd.f32 %v1039_v41, %v928_v21 }
 0x106   :  { %v365_v44 = vmax.f32 %v357_v42, 0.0  ;;  %v360_v45 = vadd.f32 %v1161_v25, %v311_v43 }
 0x108   :  { %369 = vst [vmem:[%s1607_s6 + $0x10] sm:$0xff] %v365_v44  ;;  %v366_v46 = vmax.f32 %v360_v45, 0.0 }
 0x10a   :  { %370 = vst [vmem:[%s1607_s6 + $0x18] sm:$0xff] %v366_v46 }
 0x116   :  { %v1066_v47 = vpop.f32.mrb[8].mxu0  ;;  %v1112_v48 = vpop.f32.mrb[4].mxu1 }
 0x117   :  { %v1067_v50 = vpop.f32.mrb[9].mxu0  ;;  %v1113_v51 = vpop.f32.mrb[5].mxu1 }
 0x118   :  { %v1068_v52 = vadd.f32 %v1067_v50, %v1066_v47  ;;  %v1114_v53 = vadd.f32 %v1113_v51, %v1112_v48  ;;  %v1069_v54 = vpop.f32.mrb[10].mxu0  ;;  %v1115_v55 = vpop.f32.mrb[6].mxu1 }
 0x119   :  { %v1070_v56 = vpop.f32.mrb[11].mxu0  ;;  %v1116_v57 = vpop.f32.mrb[7].mxu1 }
 0x11a   :  { %v789_v58 = vadd.f32 %v1068_v52, %v1560_v49  ;;  %v1071_v59 = vadd.f32 %v1070_v56, %v1069_v54  ;;  %v1117_v60 = vadd.f32 %v1116_v57, %v1115_v55 }
 0x11c   :  { %v862_v61 = vadd.f32 %v1114_v53, %v789_v58  ;;  %v792_v62 = vadd.f32 %v1071_v59, %v1560_v49 }
 0x11e   :  { %v900_v63 = vmax.f32 %v862_v61, 0.0  ;;  %v865_v0 = vadd.f32 %v1117_v60, %v792_v62  ;;  %v1072_v1 = vpop.f32.mrb[12].mxu0  ;;  %v1118_v2 = vpop.f32.mrb[8].mxu1 }
 0x11f   :  { %v1073_v3 = vpop.f32.mrb[13].mxu0  ;;  %v1119_v4 = vpop.f32.mrb[9].mxu1 }
 0x120   :  { %910 = vst [vmem:[%s1609_s7] sm:$0xff] %v900_v63  ;;  %v901_v5 = vmax.f32 %v865_v0, 0.0  ;;  %v1074_v6 = vadd.f32 %v1073_v3, %v1072_v1  ;;  %v1120_v7 = vadd.f32 %v1119_v4, %v1118_v2  ;;  %v1075_v8 = vpop.f32.mrb[14].mxu0  ;;  %v1121_v9 = vpop.f32.mrb[10].mxu1 }
 0x121   :  { %v1076_v10 = vpop.f32.mrb[15].mxu0  ;;  %v1122_v11 = vpop.f32.mrb[11].mxu1 }
 0x122   :  { %911 = vst [vmem:[%s1609_s7 + $0x8] sm:$0xff] %v901_v5  ;;  %v797_v12 = vadd.f32 %v1074_v6, %v1560_v49  ;;  %v1077_v13 = vadd.f32 %v1076_v10, %v1075_v8  ;;  %v1123_v14 = vadd.f32 %v1122_v11, %v1121_v9 }
 0x124   :  { %v870_v15 = vadd.f32 %v1120_v7, %v797_v12  ;;  %v800_v16 = vadd.f32 %v1077_v13, %v1560_v49 }
 0x126   :  { %v902_v17 = vmax.f32 %v870_v15, 0.0  ;;  %v873_v18 = vadd.f32 %v1123_v14, %v800_v16  ;;  %v1078_v19 = vpop.f32.mrb[16].mxu0  ;;  %v1124_v20 = vpop.f32.mrb[12].mxu1 }
 0x127   :  { %v1079_v21 = vpop.f32.mrb[17].mxu0  ;;  %v1125_v22 = vpop.f32.mrb[13].mxu1 }
 0x128   :  { %912 = vst [vmem:[%s1609_s7 + $0x10] sm:$0xff] %v902_v17  ;;  %v903_v23 = vmax.f32 %v873_v18, 0.0  ;;  %v1080_v24 = vadd.f32 %v1079_v21, %v1078_v19  ;;  %v1126_v25 = vadd.f32 %v1125_v22, %v1124_v20  ;;  %v1081_v26 = vpop.f32.mrb[18].mxu0  ;;  %v1127_v27 = vpop.f32.mrb[14].mxu1 }
 0x129   :  { %v1082_v28 = vpop.f32.mrb[19].mxu0  ;;  %v1128_v29 = vpop.f32.mrb[15].mxu1 }
 0x12a   :  { %913 = vst [vmem:[%s1609_s7 + $0x18] sm:$0xff] %v903_v23  ;;  %v805_v30 = vadd.f32 %v1080_v24, %v1560_v49  ;;  %v1083_v31 = vadd.f32 %v1082_v28, %v1081_v26  ;;  %v1129_v32 = vadd.f32 %v1128_v29, %v1127_v27 }
 0x12c   :  { %v878_v33 = vadd.f32 %v1126_v25, %v805_v30  ;;  %v808_v34 = vadd.f32 %v1083_v31, %v1560_v49 }
 0x12e   :  { %v904_v35 = vmax.f32 %v878_v33, 0.0  ;;  %v881_v36 = vadd.f32 %v1129_v32, %v808_v34  ;;  %v1084_v37 = vpop.f32.mrb[20].mxu0  ;;  %v1130_v38 = vpop.f32.mrb[16].mxu1 }
 0x12f   :  { %v1085_v39 = vpop.f32.mrb[21].mxu0  ;;  %v1131_v40 = vpop.f32.mrb[17].mxu1 }
 0x130   :  { %914 = vst [vmem:[%s1609_s7 + $0x20] sm:$0xff] %v904_v35  ;;  %v905_v41 = vmax.f32 %v881_v36, 0.0  ;;  %v1086_v42 = vadd.f32 %v1085_v39, %v1084_v37  ;;  %v1132_v43 = vadd.f32 %v1131_v40, %v1130_v38  ;;  %v1087_v44 = vpop.f32.mrb[22].mxu0  ;;  %v1133_v45 = vpop.f32.mrb[18].mxu1 }
 0x131   :  { %v1088_v46 = vpop.f32.mrb[23].mxu0  ;;  %v1134_v47 = vpop.f32.mrb[19].mxu1 }
 0x132   :  { %915 = vst [vmem:[%s1609_s7 + $0x28] sm:$0xff] %v905_v41  ;;  %v813_v48 = vadd.f32 %v1086_v42, %v1560_v49  ;;  %v1089_v50 = vadd.f32 %v1088_v46, %v1087_v44  ;;  %v1135_v51 = vadd.f32 %v1134_v47, %v1133_v45 }
 0x134   :  { %v886_v52 = vadd.f32 %v1132_v43, %v813_v48  ;;  %v816_v53 = vadd.f32 %v1089_v50, %v1560_v49 }
 0x136   :  { %v906_v54 = vmax.f32 %v886_v52, 0.0  ;;  %v889_v55 = vadd.f32 %v1135_v51, %v816_v53  ;;  %v1090_v56 = vpop.f32.mrb[24].mxu0  ;;  %v1136_v57 = vpop.f32.mrb[20].mxu1 }
 0x137   :  { %v1091_v58 = vpop.f32.mrb[25].mxu0  ;;  %v1137_v59 = vpop.f32.mrb[21].mxu1 }
 0x138   :  { %916 = vst [vmem:[%s1609_s7 + $0x30] sm:$0xff] %v906_v54  ;;  %v907_v60 = vmax.f32 %v889_v55, 0.0  ;;  %v1092_v61 = vadd.f32 %v1091_v58, %v1090_v56  ;;  %v1138_v62 = vadd.f32 %v1137_v59, %v1136_v57  ;;  %v1093_v63 = vpop.f32.mrb[26].mxu0  ;;  %v1139_v0 = vpop.f32.mrb[22].mxu1 }
 0x139   :  { %v1094_v1 = vpop.f32.mrb[27].mxu0  ;;  %v1140_v2 = vpop.f32.mrb[23].mxu1 }
 0x13a   :  { %917 = vst [vmem:[%s1609_s7 + $0x38] sm:$0xff] %v907_v60  ;;  %v821_v3 = vadd.f32 %v1092_v61, %v1560_v49  ;;  %v1095_v4 = vadd.f32 %v1094_v1, %v1093_v63  ;;  %v1141_v5 = vadd.f32 %v1140_v2, %v1139_v0 }
 0x13c   :  { %v894_v6 = vadd.f32 %v1138_v62, %v821_v3  ;;  %v824_v7 = vadd.f32 %v1095_v4, %v1560_v49 }
 0x13e   :  { %v908_v8 = vmax.f32 %v894_v6, 0.0  ;;  %v897_v9 = vadd.f32 %v1141_v5, %v824_v7 }
 0x140   :  { %918 = vst [vmem:[%s1609_s7 + $0x40] sm:$0xff] %v908_v8  ;;  %v909_v10 = vmax.f32 %v897_v9, 0.0 }
 0x142   :  { %919 = vst [vmem:[%s1609_s7 + $0x48] sm:$0xff] %v909_v10 }

// kernel: audionav_baseline_net_forward.5
= control target key start
LH: loop header
LB: loop body
LE: loop exit
PB: predicated region body
PF: predicated region fallthrough
CT: control target
= control target key end

     0   :  { %s14931_s1 = inlined_call_operand.vmem [shape: bf16[2304,128], index: 1, kind: input, shape index: {}]   ;;  %s14932_s0 = inlined_call_operand.vmem [shape: bf16[16,2304], index: 0, kind: input, shape index: {}]   ;;  %s14933_s4 = inlined_call_operand.vmem [shape: bf16[9216,128], index: 4, kind: input, shape index: {}]   ;;  %s14934_s3 = inlined_call_operand.vmem [shape: bf16[16,9216], index: 3, kind: input, shape index: {}]   ;;  %s14935_s2 = inlined_call_operand.vmem [shape: f32[1,128], index: 2, kind: input, shape index: {}]   ;;  %s14936_s5 = inlined_call_operand.vmem [shape: f32[1,128], index: 5, kind: input, shape index: {}]   ;;  %s14937_s9 = inlined_call_operand.vmem [shape: f32[128,384], index: 9, kind: input, shape index: {}]   ;;  %s14938_s8 = inlined_call_operand.vmem [shape: f32[128,384], index: 8, kind: input, shape index: {}]   ;;  %s14939_s10 = inlined_call_operand.vmem [shape: f32[128,384], index: 10, kind: input, shape index: {}]   ;;  %s14940_s6 = inlined_call_operand.vmem [shape: f32[16,128], index: 6, kind: input, shape index: {}]   ;;  %s14941_s7 = inlined_call_operand.vmem [shape: f32[16,128], index: 7, kind: input, shape index: {}]   ;;  %s14942_s12 = inlined_call_operand.vmem [shape: f32[1,384], index: 12, kind: input, shape index: {}]   ;;  %s14943_s11 = inlined_call_operand.vmem [shape: f32[1,384], index: 11, kind: input, shape index: {}]   ;;  %s14944_s13 = inlined_call_operand.vmem [shape: f32[16,128], index: 13, kind: output, shape index: {}]  }
   0x1   :  { %v11078_v0 = vld [vmem:[%s14931_s1 + $0x40] sm:$0xff]   ;;  %v11082_v4 = vld [vmem:[%s14931_s1 + $0x48] sm:$0xff]   ;;  %v11086_v8 = vld [vmem:[%s14931_s1 + $0x50] sm:$0xff]  }
   0x2   :  { %v11079_v1 = vld [vmem:[%s14931_s1] sm:$0xff]   ;;  %9718 = vmatprep.subr.bf16.mxu0 %v11078_v0  ;;  %v11083_v5 = vld [vmem:[%s14931_s1 + $0x8] sm:$0xff]   ;;  %v11087_v9 = vld [vmem:[%s14931_s1 + $0x10] sm:$0xff]  }
   0x3   :  { %v11080_v2 = vld [vmem:[%s14931_s1 + $0xc0] sm:$0xff]   ;;  %9719 = vmatpush3.bf16.msra.mxu0 %v11079_v1  ;;  %v11084_v6 = vld [vmem:[%s14931_s1 + $0xc8] sm:$0xff]   ;;  %v11088_v10 = vld [vmem:[%s14931_s1 + $0xd0] sm:$0xff]  }
   0x4   :  { %v11081_v3 = vld [vmem:[%s14931_s1 + $0x80] sm:$0xff]   ;;  %9740 = vmatprep.subr.bf16.mxu1 %v11080_v2  ;;  %9720 = vmatprep.subr.bf16.mxu0 %v11082_v4  ;;  %v11085_v7 = vld [vmem:[%s14931_s1 + $0x88] sm:$0xff]   ;;  %v11089_v11 = vld [vmem:[%s14931_s1 + $0x90] sm:$0xff]  }
   0x5   :  { %9741 = vmatpush3.bf16.msra.mxu1 %v11081_v3  ;;  %v11090_v12 = vld [vmem:[%s14931_s1 + $0x58] sm:$0xff]   ;;  %v11094_v16 = vld [vmem:[%s14931_s1 + $0x60] sm:$0xff]   ;;  %v11098_v20 = vld [vmem:[%s14931_s1 + $0x68] sm:$0xff]  }
   0x6   :  { %9742 = vmatprep.subr.bf16.mxu1 %v11084_v6  ;;  %v11091_v13 = vld [vmem:[%s14931_s1 + $0x18] sm:$0xff]   ;;  %v11095_v17 = vld [vmem:[%s14931_s1 + $0x20] sm:$0xff]   ;;  %v11099_v21 = vld [vmem:[%s14931_s1 + $0x28] sm:$0xff]  }
   0x7   :  { %9721 = vmatpush3.bf16.msra.mxu0 %v11083_v5  ;;  %v11092_v14 = vld [vmem:[%s14931_s1 + $0xd8] sm:$0xff]   ;;  %v11096_v18 = vld [vmem:[%s14931_s1 + $0xe0] sm:$0xff]   ;;  %v11100_v22 = vld [vmem:[%s14931_s1 + $0xe8] sm:$0xff]  }
   0x8   :  { %9722 = vmatprep.subr.bf16.mxu0 %v11086_v8  ;;  %v11093_v15 = vld [vmem:[%s14931_s1 + $0x98] sm:$0xff]   ;;  %v11097_v19 = vld [vmem:[%s14931_s1 + $0xa0] sm:$0xff]   ;;  %v11101_v23 = vld [vmem:[%s14931_s1 + $0xa8] sm:$0xff]  }
   0x9   :  { %9743 = vmatpush3.bf16.msra.mxu1 %v11085_v7  ;;  %v11102_v24 = vld [vmem:[%s14931_s1 + $0x70] sm:$0xff]   ;;  %v11106_v28 = vld [vmem:[%s14931_s1 + $0x78] sm:$0xff]   ;;  %v11109_v31 = vld [vmem:[%s14932_s0] ss:$72 sps:$4 sm:$0xff]  }
   0xa   :  { %9744 = vmatprep.subr.bf16.mxu1 %v11088_v10  ;;  %v11103_v25 = vld [vmem:[%s14931_s1 + $0x30] sm:$0xff]   ;;  %v11107_v29 = vld [vmem:[%s14931_s1 + $0x38] sm:$0xff]   ;;  %v11111_v32 = vld [vmem:[%s14932_s0 + $0x4] ss:$72 sps:$4 sm:$0xff]  }
   0xb   :  { %9723 = vmatpush3.bf16.msra.mxu0 %v11087_v9  ;;  %v11104_v26 = vld [vmem:[%s14931_s1 + $0xf0] sm:$0xff]   ;;  %v11108_v30 = vld [vmem:[%s14931_s1 + $0xf8] sm:$0xff]   ;;  %1344 = vmatprep.mubr.bf16.mxu0 %v11111_v32  ;;  %v11113_v34 = vld [vmem:[%s14931_s1 + $0x140] sm:$0xff]  }
   0xc   :  { %9724 = vmatprep.subr.bf16.mxu0 %v11090_v12  ;;  %v11105_v27 = vld [vmem:[%s14931_s1 + $0xb0] sm:$0xff]   ;;  %v11112_v33 = vld [vmem:[%s14931_s1 + $0xb8] sm:$0xff]   ;;  %v11117_v37 = vld [vmem:[%s14931_s1 + $0x100] sm:$0xff]  }
   0xd   :  { %9745 = vmatpush3.bf16.msra.mxu1 %v11089_v11  ;;  %v11114_v35 = vld [vmem:[%s14932_s0 + $0x8] ss:$72 sps:$4 sm:$0xff]   ;;  %v11116_v36 = vld [vmem:[%s14932_s0 + $0xc] ss:$72 sps:$4 sm:$0xff]   ;;  %v11118_v38 = vld [vmem:[%s14931_s1 + $0x1c0] sm:$0xff]  }
   0xe   :  { %9746 = vmatprep.subr.bf16.mxu1 %v11092_v14  ;;  %1385 = vmatprep.mubr.bf16.mxu1 %v11116_v36  ;;  %v11119_v39 = vld [vmem:[%s14931_s1 + $0x180] sm:$0xff]   ;;  %v11120_v40 = vld [vmem:[%s14931_s1 + $0x148] sm:$0xff]   ;;  %v11124_v44 = vld [vmem:[%s14931_s1 + $0x150] sm:$0xff]  }
   0xf   :  { %9725 = vmatpush3.bf16.msra.mxu0 %v11091_v13  ;;  %v11121_v41 = vld [vmem:[%s14931_s1 + $0x108] sm:$0xff]   ;;  %v11125_v45 = vld [vmem:[%s14931_s1 + $0x110] sm:$0xff]   ;;  %v11128_v48 = vld [vmem:[%s14931_s1 + $0x158] sm:$0xff]  }
  0x10   :  { %9726 = vmatprep.subr.bf16.mxu0 %v11094_v16  ;;  %v11122_v42 = vld [vmem:[%s14931_s1 + $0x1c8] sm:$0xff]   ;;  %v11126_v46 = vld [vmem:[%s14931_s1 + $0x1d0] sm:$0xff]   ;;  %v11129_v49 = vld [vmem:[%s14931_s1 + $0x118] sm:$0xff]  }
  0x11   :  { %9747 = vmatpush3.bf16.msra.mxu1 %v11093_v15  ;;  %v11123_v43 = vld [vmem:[%s14931_s1 + $0x188] sm:$0xff]   ;;  %v11127_v47 = vld [vmem:[%s14931_s1 + $0x190] sm:$0xff]   ;;  %v11130_v50 = vld [vmem:[%s14931_s1 + $0x1d8] sm:$0xff]  }
  0x12   :  { %9748 = vmatprep.subr.bf16.mxu1 %v11096_v18  ;;  %v11131_v51 = vld [vmem:[%s14931_s1 + $0x198] sm:$0xff]   ;;  %v11132_v52 = vld [vmem:[%s14931_s1 + $0x160] sm:$0xff]   ;;  %v11136_v56 = vld [vmem:[%s14931_s1 + $0x168] sm:$0xff]  }
  0x13   :  { %9727 = vmatpush3.bf16.msra.mxu0 %v11095_v17  ;;  %v11133_v53 = vld [vmem:[%s14931_s1 + $0x120] sm:$0xff]   ;;  %v11137_v57 = vld [vmem:[%s14931_s1 + $0x128] sm:$0xff]   ;;  %v11140_v60 = vld [vmem:[%s14931_s1 + $0x170] sm:$0xff]  }
  0x14   :  { %9728 = vmatprep.subr.bf16.mxu0 %v11098_v20  ;;  %v11134_v54 = vld [vmem:[%s14931_s1 + $0x1e0] sm:$0xff]   ;;  %v11138_v58 = vld [vmem:[%s14931_s1 + $0x1e8] sm:$0xff]   ;;  %v11141_v61 = vld [vmem:[%s14931_s1 + $0x130] sm:$0xff]  }
  0x15   :  { %9749 = vmatpush3.bf16.msra.mxu1 %v11097_v19  ;;  %v11135_v55 = vld [vmem:[%s14931_s1 + $0x1a0] sm:$0xff]   ;;  %v11139_v59 = vld [vmem:[%s14931_s1 + $0x1a8] sm:$0xff]   ;;  %v11142_v62 = vld [vmem:[%s14931_s1 + $0x1f0] sm:$0xff]  }
  0x16   :  { %9750 = vmatprep.subr.bf16.mxu1 %v11100_v22  ;;  %v11143_v63 = vld [vmem:[%s14931_s1 + $0x1b0] sm:$0xff]   ;;  %v11144_v0 = vld [vmem:[%s14931_s1 + $0x178] sm:$0xff]   ;;  %v11151_v6 = vld [vmem:[%s14931_s1 + $0x240] sm:$0xff]  }
  0x17   :  { %9729 = vmatpush3.bf16.msra.mxu0 %v11099_v21  ;;  %v11145_v1 = vld [vmem:[%s14931_s1 + $0x138] sm:$0xff]   ;;  %v11155_v9 = vld [vmem:[%s14931_s1 + $0x200] sm:$0xff]   ;;  %v11158_v12 = vld [vmem:[%s14931_s1 + $0x248] sm:$0xff]  }
  0x18   :  { %9730 = vmatprep.subr.bf16.mxu0 %v11102_v24  ;;  %v11146_v2 = vld [vmem:[%s14931_s1 + $0x1f8] sm:$0xff]   ;;  %v11156_v10 = vld [vmem:[%s14931_s1 + $0x2c0] sm:$0xff]   ;;  %v11159_v13 = vld [vmem:[%s14931_s1 + $0x208] sm:$0xff]  }
  0x19   :  { %9751 = vmatpush3.bf16.msra.mxu1 %v11101_v23  ;;  %v11147_v3 = vld [vmem:[%s14932_s0 + $0x10] ss:$72 sps:$4 sm:$0xff]   ;;  %v11149_v4 = vld [vmem:[%s14932_s0 + $0x14] ss:$72 sps:$4 sm:$0xff]   ;;  %v11157_v11 = vld [vmem:[%s14931_s1 + $0x280] sm:$0xff]  }
  0x1a   :  { %9752 = vmatprep.subr.bf16.mxu1 %v11104_v26  ;;  %v11150_v5 = vld [vmem:[%s14931_s1 + $0x1b8] sm:$0xff]   ;;  %v11160_v14 = vld [vmem:[%s14931_s1 + $0x2c8] sm:$0xff]   ;;  %v11162_v16 = vld [vmem:[%s14931_s1 + $0x250] sm:$0xff]  }
  0x1b   :  { %9731 = vmatpush3.bf16.msra.mxu0 %v11103_v25  ;;  %v11152_v7 = vld [vmem:[%s14932_s0 + $0x18] ss:$72 sps:$4 sm:$0xff]   ;;  %v11154_v8 = vld [vmem:[%s14932_s0 + $0x1c] ss:$72 sps:$4 sm:$0xff]   ;;  %v11161_v15 = vld [vmem:[%s14931_s1 + $0x288] sm:$0xff]  }
  0x1c   :  { %9732 = vmatprep.subr.bf16.mxu0 %v11106_v28  ;;  %v11163_v17 = vld [vmem:[%s14931_s1 + $0x210] sm:$0xff]   ;;  %v11166_v20 = vld [vmem:[%s14931_s1 + $0x258] sm:$0xff]   ;;  %v11170_v24 = vld [vmem:[%s14931_s1 + $0x260] sm:$0xff]  }
  0x1d   :  { %9753 = vmatpush3.bf16.msra.mxu1 %v11105_v27  ;;  %v11164_v18 = vld [vmem:[%s14931_s1 + $0x2d0] sm:$0xff]   ;;  %v11167_v21 = vld [vmem:[%s14931_s1 + $0x218] sm:$0xff]   ;;  %v11171_v25 = vld [vmem:[%s14931_s1 + $0x220] sm:$0xff]  }
  0x1e   :  { %9754 = vmatprep.subr.bf16.mxu1 %v11108_v30  ;;  %v11165_v19 = vld [vmem:[%s14931_s1 + $0x290] sm:$0xff]   ;;  %v11168_v22 = vld [vmem:[%s14931_s1 + $0x2d8] sm:$0xff]   ;;  %v11172_v26 = vld [vmem:[%s14931_s1 + $0x2e0] sm:$0xff]  }
  0x1f   :  { %9733 = vmatpush3.bf16.msra.mxu0 %v11107_v29  ;;  %v11169_v23 = vld [vmem:[%s14931_s1 + $0x298] sm:$0xff]   ;;  %v11173_v27 = vld [vmem:[%s14931_s1 + $0x2a0] sm:$0xff]   ;;  %v11174_v28 = vld [vmem:[%s14931_s1 + $0x268] sm:$0xff]  }
  0x20   :  { %9762 = vmatprep.subr.bf16.mxu0 %v11113_v34  ;;  %v11175_v29 = vld [vmem:[%s14931_s1 + $0x228] sm:$0xff]   ;;  %v11178_v32 = vld [vmem:[%s14931_s1 + $0x270] sm:$0xff]   ;;  %v11182_v36 = vld [vmem:[%s14931_s1 + $0x278] sm:$0xff]  }
  0x21   :  { %9755 = vmatpush3.bf16.msra.mxu1 %v11112_v33  ;;  %v11176_v30 = vld [vmem:[%s14931_s1 + $0x2e8] sm:$0xff]   ;;  %v11179_v33 = vld [vmem:[%s14931_s1 + $0x230] sm:$0xff]  }
  0x22   :  { %1345 = vmatmul.mubr.bf16.vlgmr.msra.gmra.mrb[0].mxu0 %v11109_v31  ;;  %9784 = vmatprep.subr.bf16.mxu1 %v11118_v38  ;;  %v11177_v31 = vld [vmem:[%s14931_s1 + $0x2a8] sm:$0xff]   ;;  %v11180_v34 = vld [vmem:[%s14931_s1 + $0x2f0] sm:$0xff]   ;;  %v11184_v38 = vld [vmem:[%s14931_s1 + $0x2f8] sm:$0xff]  }
  0x23   :  { %9763 = vmatpush3.bf16.msra.mxu0 %v11117_v37  ;;  %1426 = vmatprep.mubr.bf16.mxu0 %v11149_v4  ;;  %v11183_v37 = vld [vmem:[%s14931_s1 + $0x238] sm:$0xff]   ;;  %v11216_v4 = vld [vmem:[%s14931_s1 + $0x370] sm:$0xff]  }
  0x24   :  { %1386 = vmatmul.mubr.bf16.vlgmr.msra.gmra.mrb[0].mxu1 %v11114_v35  ;;  %9764 = vmatprep.subr.bf16.mxu0 %v11120_v40  ;;  %v11181_v35 = vld [vmem:[%s14931_s1 + $0x2b0] sm:$0xff]   ;;  %v11187_v40 = vld [vmem:[%s14932_s0 + $0x24] ss:$72 sps:$4 sm:$0xff]  }
  0x25   :  { %9785 = vmatpush3.bf16.msra.mxu1 %v11119_v39  ;;  %1467 = vmatprep.mubr.bf16.mxu1 %v11154_v8  ;;  %v11185_v39 = vld [vmem:[%s14932_s0 + $0x20] ss:$72 sps:$4 sm:$0xff]   ;;  %v11220_v8 = vld [vmem:[%s14931_s1 + $0x378] sm:$0xff]  }
  0x26   :  { %9786 = vmatprep.subr.bf16.mxu1 %v11122_v42  ;;  %v11189_v42 = vld [vmem:[%s14931_s1 + $0x340] sm:$0xff]  }
  0x27   :  { %9765 = vmatpush3.bf16.msra.mxu0 %v11121_v41  ;;  %v11188_v41 = vld [vmem:[%s14931_s1 + $0x2b8] sm:$0xff]  }
  0x28   :  { %9766 = vmatprep.subr.bf16.mxu0 %v11124_v44  ;;  %v11192_v44 = vld [vmem:[%s14932_s0 + $0x2c] ss:$72 sps:$4 sm:$0xff]  }
  0x29   :  { %9787 = vmatpush3.bf16.msra.mxu1 %v11123_v43  ;;  %v11190_v43 = vld [vmem:[%s14932_s0 + $0x28] ss:$72 sps:$4 sm:$0xff]  }
  0x2a   :  { %9788 = vmatprep.subr.bf16.mxu1 %v11126_v46  ;;  %v11194_v46 = vld [vmem:[%s14931_s1 + $0x3c0] sm:$0xff]  }
  0x2b   :  { %9767 = vmatpush3.bf16.msra.mxu0 %v11125_v45  ;;  %v11193_v45 = vld [vmem:[%s14931_s1 + $0x300] sm:$0xff]  }
  0x2c   :  { %9768 = vmatprep.subr.bf16.mxu0 %v11128_v48  ;;  %v11196_v48 = vld [vmem:[%s14931_s1 + $0x348] sm:$0xff]  }
  0x2d   :  { %9789 = vmatpush3.bf16.msra.mxu1 %v11127_v47  ;;  %v11195_v47 = vld [vmem:[%s14931_s1 + $0x380] sm:$0xff]  }
  0x2e   :  { %9790 = vmatprep.subr.bf16.mxu1 %v11130_v50  ;;  %v11198_v50 = vld [vmem:[%s14931_s1 + $0x3c8] sm:$0xff]  }
  0x2f   :  { %9769 = vmatpush3.bf16.msra.mxu0 %v11129_v49  ;;  %v11197_v49 = vld [vmem:[%s14931_s1 + $0x308] sm:$0xff]  }
  0x30   :  { %9770 = vmatprep.subr.bf16.mxu0 %v11132_v52  ;;  %v11200_v52 = vld [vmem:[%s14931_s1 + $0x350] sm:$0xff]  }
  0x31   :  { %9791 = vmatpush3.bf16.msra.mxu1 %v11131_v51  ;;  %v11199_v51 = vld [vmem:[%s14931_s1 + $0x388] sm:$0xff]  }
  0x32   :  { %9792 = vmatprep.subr.bf16.mxu1 %v11134_v54  ;;  %v11202_v54 = vld [vmem:[%s14931_s1 + $0x3d0] sm:$0xff]  }
  0x33   :  { %9771 = vmatpush3.bf16.msra.mxu0 %v11133_v53  ;;  %v11201_v53 = vld [vmem:[%s14931_s1 + $0x310] sm:$0xff]  }
  0x34   :  { %9772 = vmatprep.subr.bf16.mxu0 %v11136_v56  ;;  %v11204_v56 = vld [vmem:[%s14931_s1 + $0x358] sm:$0xff]  }
  0x35   :  { %9793 = vmatpush3.bf16.msra.mxu1 %v11135_v55  ;;  %v11203_v55 = vld [vmem:[%s14931_s1 + $0x390] sm:$0xff]  }
  0x36   :  { %9794 = vmatprep.subr.bf16.mxu1 %v11138_v58  ;;  %v11206_v58 = vld [vmem:[%s14931_s1 + $0x3d8] sm:$0xff]  }
  0x37   :  { %9773 = vmatpush3.bf16.msra.mxu0 %v11137_v57  ;;  %v11205_v57 = vld [vmem:[%s14931_s1 + $0x318] sm:$0xff]  }
  0x38   :  { %9774 = vmatprep.subr.bf16.mxu0 %v11140_v60  ;;  %v11208_v60 = vld [vmem:[%s14931_s1 + $0x360] sm:$0xff]  }
  0x39   :  { %9795 = vmatpush3.bf16.msra.mxu1 %v11139_v59  ;;  %v11207_v59 = vld [vmem:[%s14931_s1 + $0x398] sm:$0xff]  }
  0x3a   :  { %9796 = vmatprep.subr.bf16.mxu1 %v11142_v62  ;;  %v11210_v62 = vld [vmem:[%s14931_s1 + $0x3e0] sm:$0xff]  }
  0x3b   :  { %9775 = vmatpush3.bf16.msra.mxu0 %v11141_v61  ;;  %v11209_v61 = vld [vmem:[%s14931_s1 + $0x320] sm:$0xff]  }
  0x3c   :  { %9776 = vmatprep.subr.bf16.mxu0 %v11144_v0  ;;  %v11212_v0 = vld [vmem:[%s14931_s1 + $0x368] sm:$0xff]  }
  0x3d   :  { %9797 = vmatpush3.bf16.msra.mxu1 %v11143_v63  ;;  %v11211_v63 = vld [vmem:[%s14931_s1 + $0x3a0] sm:$0xff]  }
  0x3e   :  { %9798 = vmatprep.subr.bf16.mxu1 %v11146_v2  ;;  %v11214_v2 = vld [vmem:[%s14931_s1 + $0x3e8] sm:$0xff]  }
  0x3f   :  { %9777 = vmatpush3.bf16.msra.mxu0 %v11145_v1  ;;  %v11213_v1 = vld [vmem:[%s14931_s1 + $0x328] sm:$0xff]  }
  0x40   :  { %9806 = vmatprep.subr.bf16.mxu0 %v11151_v6  ;;  %v11218_v6 = vld [vmem:[%s14931_s1 + $0x3f0] sm:$0xff]  }
  0x41   :  { %9799 = vmatpush3.bf16.msra.mxu1 %v11150_v5  ;;  %v11217_v5 = vld [vmem:[%s14931_s1 + $0x330] sm:$0xff]  }
  0x42   :  { %1427 = vmatmul.mubr.bf16.vlgmr.msra.gmra.mrb[4].mxu0 %v11147_v3  ;;  %9828 = vmatprep.subr.bf16.mxu1 %v11156_v10  ;;  %v11215_v3 = vld [vmem:[%s14931_s1 + $0x3a8] sm:$0xff]   ;;  %v11222_v10 = vld [vmem:[%s14931_s1 + $0x3f8] sm:$0xff]  }
  0x43   :  { %9807 = vmatpush3.bf16.msra.mxu0 %v11155_v9  ;;  %1508 = vmatprep.mubr.bf16.mxu0 %v11187_v40  ;;  %v11221_v9 = vld [vmem:[%s14931_s1 + $0x338] sm:$0xff]   ;;  %v11254_v40 = vld [vmem:[%s14931_s1 + $0x470] sm:$0xff]  }
  0x44   :  { %1468 = vmatmul.mubr.bf16.vlgmr.msra.gmra.mrb[4].mxu1 %v11152_v7  ;;  %9808 = vmatprep.subr.bf16.mxu0 %v11158_v12  ;;  %v11219_v7 = vld [vmem:[%s14931_s1 + $0x3b0] sm:$0xff]  }
  0x45   :  { %9829 = vmatpush3.bf16.msra.mxu1 %v11157_v11  ;;  %1549 = vmatprep.mubr.bf16.mxu1 %v11192_v44  ;;  %v11223_v11 = vld [vmem:[%s14932_s0 + $0x30] ss:$72 sps:$4 sm:$0xff]   ;;  %v11225_v12 = vld [vmem:[%s14932_s0 + $0x34] ss:$72 sps:$4 sm:$0xff]  }
  0x46   :  { %9830 = vmatprep.subr.bf16.mxu1 %v11160_v14  ;;  %v11227_v14 = vld [vmem:[%s14931_s1 + $0x440] sm:$0xff]   ;;  %v11258_v44 = vld [vmem:[%s14931_s1 + $0x478] sm:$0xff]  }
  0x47   :  { %9809 = vmatpush3.bf16.msra.mxu0 %v11159_v13  ;;  %v11226_v13 = vld [vmem:[%s14931_s1 + $0x3b8] sm:$0xff]  }
  0x48   :  { %9810 = vmatprep.subr.bf16.mxu0 %v11162_v16  ;;  %v11230_v16 = vld [vmem:[%s14932_s0 + $0x3c] ss:$72 sps:$4 sm:$0xff]  }
  0x49   :  { %9831 = vmatpush3.bf16.msra.mxu1 %v11161_v15  ;;  %v11228_v15 = vld [vmem:[%s14932_s0 + $0x38] ss:$72 sps:$4 sm:$0xff]  }
  0x4a   :  { %9832 = vmatprep.subr.bf16.mxu1 %v11164_v18  ;;  %v11232_v18 = vld [vmem:[%s14933_s4 + $0x40] sm:$0xff]  }
  0x4b   :  { %9811 = vmatpush3.bf16.msra.mxu0 %v11163_v17  ;;  %v11231_v17 = vld [vmem:[%s14931_s1 + $0x400] sm:$0xff]  }
  0x4c   :  { %9812 = vmatprep.subr.bf16.mxu0 %v11166_v20  ;;  %v11234_v20 = vld [vmem:[%s14931_s1 + $0x448] sm:$0xff]  }
  0x4d   :  { %9833 = vmatpush3.bf16.msra.mxu1 %v11165_v19  ;;  %v11233_v19 = vld [vmem:[%s14933_s4] sm:$0xff]  }
  0x4e   :  { %9834 = vmatprep.subr.bf16.mxu1 %v11168_v22  ;;  %v11236_v22 = vld [vmem:[%s14933_s4 + $0x48] sm:$0xff]  }
  0x4f   :  { %9813 = vmatpush3.bf16.msra.mxu0 %v11167_v21  ;;  %v11235_v21 = vld [vmem:[%s14931_s1 + $0x408] sm:$0xff]  }
  0x50   :  { %9814 = vmatprep.subr.bf16.mxu0 %v11170_v24  ;;  %v11238_v24 = vld [vmem:[%s14931_s1 + $0x450] sm:$0xff]  }
  0x51   :  { %9835 = vmatpush3.bf16.msra.mxu1 %v11169_v23  ;;  %v11237_v23 = vld [vmem:[%s14933_s4 + $0x8] sm:$0xff]  }
  0x52   :  { %9836 = vmatprep.subr.bf16.mxu1 %v11172_v26  ;;  %v11240_v26 = vld [vmem:[%s14933_s4 + $0x50] sm:$0xff]  }
  0x53   :  { %9815 = vmatpush3.bf16.msra.mxu0 %v11171_v25  ;;  %v11239_v25 = vld [vmem:[%s14931_s1 + $0x410] sm:$0xff]  }
  0x54   :  { %9816 = vmatprep.subr.bf16.mxu0 %v11174_v28  ;;  %v11242_v28 = vld [vmem:[%s14931_s1 + $0x458] sm:$0xff]  }
  0x55   :  { %9837 = vmatpush3.bf16.msra.mxu1 %v11173_v27  ;;  %v11241_v27 = vld [vmem:[%s14933_s4 + $0x10] sm:$0xff]  }
  0x56   :  { %9838 = vmatprep.subr.bf16.mxu1 %v11176_v30  ;;  %v11244_v30 = vld [vmem:[%s14933_s4 + $0x58] sm:$0xff]  }
  0x57   :  { %9817 = vmatpush3.bf16.msra.mxu0 %v11175_v29  ;;  %v11243_v29 = vld [vmem:[%s14931_s1 + $0x418] sm:$0xff]  }
  0x58   :  { %9818 = vmatprep.subr.bf16.mxu0 %v11178_v32  ;;  %v11246_v32 = vld [vmem:[%s14931_s1 + $0x460] sm:$0xff]  }
  0x59   :  { %9839 = vmatpush3.bf16.msra.mxu1 %v11177_v31  ;;  %v11245_v31 = vld [vmem:[%s14933_s4 + $0x18] sm:$0xff]  }
  0x5a   :  { %9840 = vmatprep.subr.bf16.mxu1 %v11180_v34  ;;  %v11248_v34 = vld [vmem:[%s14933_s4 + $0x60] sm:$0xff]  }
  0x5b   :  { %9819 = vmatpush3.bf16.msra.mxu0 %v11179_v33  ;;  %v11247_v33 = vld [vmem:[%s14931_s1 + $0x420] sm:$0xff]  }
  0x5c   :  { %9820 = vmatprep.subr.bf16.mxu0 %v11182_v36  ;;  %v11250_v36 = vld [vmem:[%s14931_s1 + $0x468] sm:$0xff]  }
  0x5d   :  { %9841 = vmatpush3.bf16.msra.mxu1 %v11181_v35  ;;  %v11249_v35 = vld [vmem:[%s14933_s4 + $0x20] sm:$0xff]  }
  0x5e   :  { %9842 = vmatprep.subr.bf16.mxu1 %v11184_v38  ;;  %v11252_v38 = vld [vmem:[%s14933_s4 + $0x68] sm:$0xff]  }
  0x5f   :  { %9821 = vmatpush3.bf16.msra.mxu0 %v11183_v37  ;;  %v11251_v37 = vld [vmem:[%s14931_s1 + $0x428] sm:$0xff]  }
  0x60   :  { %9850 = vmatprep.subr.bf16.mxu0 %v11189_v42  ;;  %v11256_v42 = vld [vmem:[%s14933_s4 + $0x70] sm:$0xff]  }
  0x61   :  { %9843 = vmatpush3.bf16.msra.mxu1 %v11188_v41  ;;  %v11255_v41 = vld [vmem:[%s14931_s1 + $0x430] sm:$0xff]  }
  0x62   :  { %1509 = vmatmul.mubr.bf16.vlgmr.msra.gmra.mrb[8].mxu0 %v11185_v39  ;;  %9872 = vmatprep.subr.bf16.mxu1 %v11194_v46  ;;  %v11253_v39 = vld [vmem:[%s14933_s4 + $0x28] sm:$0xff]   ;;  %v11260_v46 = vld [vmem:[%s14933_s4 + $0x78] sm:$0xff]  }
  0x63   :  { %9851 = vmatpush3.bf16.msra.mxu0 %v11193_v45  ;;  %1590 = vmatprep.mubr.bf16.mxu0 %v11225_v12  ;;  %v11259_v45 = vld [vmem:[%s14931_s1 + $0x438] sm:$0xff]   ;;  %v11287_v12 = vld [vmem:[%s14933_s4 + $0x168] sm:$0xff]  }
  0x64   :  { %1550 = vmatmul.mubr.bf16.vlgmr.msra.gmra.mrb[8].mxu1 %v11190_v43  ;;  %9852 = vmatprep.subr.bf16.mxu0 %v11196_v48  ;;  %v11257_v43 = vld [vmem:[%s14933_s4 + $0x30] sm:$0xff]   ;;  %v11263_v48 = vld [vmem:[%s14932_s0 + $0x44] ss:$72 sps:$4 sm:$0xff]  }
  0x65   :  { %9873 = vmatpush3.bf16.msra.mxu1 %v11195_v47  ;;  %1631 = vmatprep.mubr.bf16.mxu1 %v11230_v16  ;;  %v11261_v47 = vld [vmem:[%s14932_s0 + $0x40] ss:$72 sps:$4 sm:$0xff]   ;;  %v11291_v16 = vld [vmem:[%s14933_s4 + $0x170] sm:$0xff]  }
  0x66   :  { %9874 = vmatprep.subr.bf16.mxu1 %v11198_v50  ;;  %v11265_v50 = vld [vmem:[%s14933_s4 + $0xc0] sm:$0xff]  }
  0x67   :  { %9853 = vmatpush3.bf16.msra.mxu0 %v11197_v49  ;;  %v11264_v49 = vld [vmem:[%s14933_s4 + $0x38] sm:$0xff]  }
  0x68   :  { %9854 = vmatprep.subr.bf16.mxu0 %v11200_v52  ;;  %v1683_v52 = vld [vmem:[%s14934_s3] sm:$0xff] }
  0x69   :  { %9875 = vmatpush3.bf16.msra.mxu1 %v11199_v51  ;;  %v11266_v51 = vld [vmem:[%s14933_s4 + $0x80] sm:$0xff]  }
  0x6a   :  { %9876 = vmatprep.subr.bf16.mxu1 %v11202_v54 }
  0x6b   :  { %9855 = vmatpush3.bf16.msra.mxu0 %v11201_v53  ;;  %v1719_v53 = vld [vmem:[%s14934_s3 + $0x120] sm:$0xff] }
  0x6c   :  { %9856 = vmatprep.subr.bf16.mxu0 %v11204_v56  ;;  %v9066_v54 = vcombine.low %v1683_v52, %v1719_v53  ;;  %v11267_v56 = vld [vmem:[%s14933_s4 + $0x140] sm:$0xff]  }
  0x6d   :  { %9877 = vmatpush3.bf16.msra.mxu1 %v11203_v55  ;;  %v9067_v55 = vcombine.high %v1683_v52, %v1719_v53  ;;  %v11319_v52 = vld [vmem:[%s14933_s4 + $0x268] sm:$0xff]  }
  0x6e   :  { %9878 = vmatprep.subr.bf16.mxu1 %v11206_v58  ;;  %v11269_v58 = vld [vmem:[%s14933_s4 + $0xc8] sm:$0xff]  }
  0x6f   :  { %9857 = vmatpush3.bf16.msra.mxu0 %v11205_v57  ;;  %v11268_v57 = vld [vmem:[%s14933_s4 + $0x100] sm:$0xff]   ;;  %v11320_v53 = vld [vmem:[%s14933_s4 + $0x228] sm:$0xff]  }
  0x70   :  { %9858 = vmatprep.subr.bf16.mxu0 %v11208_v60  ;;  %v11271_v60 = vld [vmem:[%s14933_s4 + $0x148] sm:$0xff]  }
  0x71   :  { %9879 = vmatpush3.bf16.msra.mxu1 %v11207_v59  ;;  %v11270_v59 = vld [vmem:[%s14933_s4 + $0x88] sm:$0xff]  }
  0x72   :  { %9880 = vmatprep.subr.bf16.mxu1 %v11210_v62  ;;  %v11273_v62 = vld [vmem:[%s14933_s4 + $0xd0] sm:$0xff]  }
  0x73   :  { %9859 = vmatpush3.bf16.msra.mxu0 %v11209_v61  ;;  %v11272_v61 = vld [vmem:[%s14933_s4 + $0x108] sm:$0xff]  }
  0x74   :  { %9860 = vmatprep.subr.bf16.mxu0 %v11212_v0  ;;  %v11275_v0 = vld [vmem:[%s14933_s4 + $0x150] sm:$0xff]  }
  0x75   :  { %9881 = vmatpush3.bf16.msra.mxu1 %v11211_v63  ;;  %v11274_v63 = vld [vmem:[%s14933_s4 + $0x90] sm:$0xff]  }
  0x76   :  { %9882 = vmatprep.subr.bf16.mxu1 %v11214_v2  ;;  %v11277_v2 = vld [vmem:[%s14933_s4 + $0xd8] sm:$0xff]  }
  0x77   :  { %9861 = vmatpush3.bf16.msra.mxu0 %v11213_v1  ;;  %v11276_v1 = vld [vmem:[%s14933_s4 + $0x110] sm:$0xff]  }
  0x78   :  { %9862 = vmatprep.subr.bf16.mxu0 %v11216_v4  ;;  %v11279_v4 = vld [vmem:[%s14933_s4 + $0x158] sm:$0xff]  }
  0x79   :  { %9883 = vmatpush3.bf16.msra.mxu1 %v11215_v3  ;;  %v11278_v3 = vld [vmem:[%s14933_s4 + $0x98] sm:$0xff]  }
  0x7a   :  { %9884 = vmatprep.subr.bf16.mxu1 %v11218_v6  ;;  %v11281_v6 = vld [vmem:[%s14933_s4 + $0xe0] sm:$0xff]  }
  0x7b   :  { %9863 = vmatpush3.bf16.msra.mxu0 %v11217_v5  ;;  %v11280_v5 = vld [vmem:[%s14933_s4 + $0x118] sm:$0xff]  }
  0x7c   :  { %9864 = vmatprep.subr.bf16.mxu0 %v11220_v8  ;;  %v11283_v8 = vld [vmem:[%s14933_s4 + $0x160] sm:$0xff]  }
  0x7d   :  { %9885 = vmatpush3.bf16.msra.mxu1 %v11219_v7  ;;  %v11282_v7 = vld [vmem:[%s14933_s4 + $0xa0] sm:$0xff]  }
  0x7e   :  { %9886 = vmatprep.subr.bf16.mxu1 %v11222_v10  ;;  %v11285_v10 = vld [vmem:[%s14933_s4 + $0xe8] sm:$0xff]  }
  0x7f   :  { %9865 = vmatpush3.bf16.msra.mxu0 %v11221_v9  ;;  %v11284_v9 = vld [vmem:[%s14933_s4 + $0x120] sm:$0xff]  }
  0x80   :  { %9894 = vmatprep.subr.bf16.mxu0 %v11227_v14  ;;  %v11289_v14 = vld [vmem:[%s14933_s4 + $0xf0] sm:$0xff]  }
  0x81   :  { %9887 = vmatpush3.bf16.msra.mxu1 %v11226_v13  ;;  %v11288_v13 = vld [vmem:[%s14933_s4 + $0x128] sm:$0xff]  }
  0x82   :  { %1591 = vmatmul.mubr.bf16.vlgmr.msra.gmra.mrb[12].mxu0 %v11223_v11  ;;  %9916 = vmatprep.subr.bf16.mxu1 %v11232_v18  ;;  %v11286_v11 = vld [vmem:[%s14933_s4 + $0xa8] sm:$0xff]   ;;  %v11293_v18 = vld [vmem:[%s14933_s4 + $0xf8] sm:$0xff]  }
  0x83   :  { %9895 = vmatpush3.bf16.msra.mxu0 %v11231_v17  ;;  %1672 = vmatprep.mubr.bf16.mxu0 %v11263_v48  ;;  %v11292_v17 = vld [vmem:[%s14933_s4 + $0x130] sm:$0xff]   ;;  %v11315_v48 = vld [vmem:[%s14933_s4 + $0x260] sm:$0xff]  }
  0x84   :  { %1632 = vmatmul.mubr.bf16.vlgmr.msra.gmra.mrb[12].mxu1 %v11228_v15  ;;  %9896 = vmatprep.subr.bf16.mxu0 %v11234_v20  ;;  %v11290_v15 = vld [vmem:[%s14933_s4 + $0xb0] sm:$0xff]   ;;  %v11295_v20 = vld [vmem:[%s14933_s4 + $0x178] sm:$0xff]  }
  0x85   :  { %9917 = vmatpush3.bf16.msra.mxu1 %v11233_v19  ;;  %6762 = vmatprep.mubr.bf16.mxu1 %v9067_v55  ;;  %v11294_v19 = vld [vmem:[%s14933_s4 + $0xb8] sm:$0xff]   ;;  %v11322_v55 = vld [vmem:[%s14933_s4 + $0x1b0] sm:$0xff]  }
  0x86   :  { %9918 = vmatprep.subr.bf16.mxu1 %v11236_v22  ;;  %v1720_v22 = vld [vmem:[%s14934_s3 + $0x128] sm:$0xff] }
  0x87   :  { %9897 = vmatpush3.bf16.msra.mxu0 %v11235_v21  ;;  %v1684_v21 = vld [vmem:[%s14934_s3 + $0x8] sm:$0xff] }
  0x88   :  { %9898 = vmatprep.subr.bf16.mxu0 %v11238_v24  ;;  %v9069_v24 = vcombine.high %v1684_v21, %v1720_v22 }
  0x89   :  { %9919 = vmatpush3.bf16.msra.mxu1 %v11237_v23  ;;  %v9068_v23 = vcombine.low %v1684_v21, %v1720_v22  ;;  %v11339_v21 = vld [vmem:[%s14933_s4 + $0x350] sm:$0xff]  }
  0x8a   :  { %9920 = vmatprep.subr.bf16.mxu1 %v11240_v26  ;;  %v11297_v26 = vld [vmem:[%s14933_s4 + $0x1c0] sm:$0xff]  }
  0x8b   :  { %9899 = vmatpush3.bf16.msra.mxu0 %v11239_v25  ;;  %v11296_v25 = vld [vmem:[%s14933_s4 + $0x138] sm:$0xff]  }
  0x8c   :  { %9900 = vmatprep.subr.bf16.mxu0 %v11242_v28  ;;  %v1721_v28 = vld [vmem:[%s14934_s3 + $0x130] sm:$0xff] }
  0x8d   :  { %9921 = vmatpush3.bf16.msra.mxu1 %v11241_v27  ;;  %v1685_v27 = vld [vmem:[%s14934_s3 + $0x10] sm:$0xff] }
  0x8e   :  { %9922 = vmatprep.subr.bf16.mxu1 %v11244_v30  ;;  %v9071_v30 = vcombine.high %v1685_v27, %v1721_v28 }
  0x8f   :  { %9901 = vmatpush3.bf16.msra.mxu0 %v11243_v29  ;;  %v9070_v29 = vcombine.low %v1685_v27, %v1721_v28 }
  0x90   :  { %9902 = vmatprep.subr.bf16.mxu0 %v11246_v32  ;;  %v11299_v32 = vld [vmem:[%s14933_s4 + $0x240] sm:$0xff]  }
  0x91   :  { %9923 = vmatpush3.bf16.msra.mxu1 %v11245_v31  ;;  %v11298_v31 = vld [vmem:[%s14933_s4 + $0x180] sm:$0xff]  }
  0x92   :  { %9924 = vmatprep.subr.bf16.mxu1 %v11248_v34  ;;  %v11301_v34 = vld [vmem:[%s14933_s4 + $0x1c8] sm:$0xff]  }
  0x93   :  { %9903 = vmatpush3.bf16.msra.mxu0 %v11247_v33  ;;  %v11300_v33 = vld [vmem:[%s14933_s4 + $0x200] sm:$0xff]  }
  0x94   :  { %9904 = vmatprep.subr.bf16.mxu0 %v11250_v36  ;;  %v11303_v36 = vld [vmem:[%s14933_s4 + $0x248] sm:$0xff]  }
  0x95   :  { %9925 = vmatpush3.bf16.msra.mxu1 %v11249_v35  ;;  %v11302_v35 = vld [vmem:[%s14933_s4 + $0x188] sm:$0xff]  }
  0x96   :  { %9926 = vmatprep.subr.bf16.mxu1 %v11252_v38  ;;  %v11305_v38 = vld [vmem:[%s14933_s4 + $0x1d0] sm:$0xff]  }
  0x97   :  { %9905 = vmatpush3.bf16.msra.mxu0 %v11251_v37  ;;  %v11304_v37 = vld [vmem:[%s14933_s4 + $0x208] sm:$0xff]  }
  0x98   :  { %9906 = vmatprep.subr.bf16.mxu0 %v11254_v40  ;;  %v11307_v40 = vld [vmem:[%s14933_s4 + $0x250] sm:$0xff]  }
  0x99   :  { %9927 = vmatpush3.bf16.msra.mxu1 %v11253_v39  ;;  %v11306_v39 = vld [vmem:[%s14933_s4 + $0x190] sm:$0xff]  }
  0x9a   :  { %9928 = vmatprep.subr.bf16.mxu1 %v11256_v42  ;;  %v11309_v42 = vld [vmem:[%s14933_s4 + $0x1d8] sm:$0xff]  }
  0x9b   :  { %9907 = vmatpush3.bf16.msra.mxu0 %v11255_v41  ;;  %v11308_v41 = vld [vmem:[%s14933_s4 + $0x210] sm:$0xff]  }
  0x9c   :  { %9908 = vmatprep.subr.bf16.mxu0 %v11258_v44  ;;  %v11311_v44 = vld [vmem:[%s14933_s4 + $0x258] sm:$0xff]  }
  0x9d   :  { %9929 = vmatpush3.bf16.msra.mxu1 %v11257_v43  ;;  %v11310_v43 = vld [vmem:[%s14933_s4 + $0x198] sm:$0xff]  }
  0x9e   :  { %9930 = vmatprep.subr.bf16.mxu1 %v11260_v46  ;;  %v11313_v46 = vld [vmem:[%s14933_s4 + $0x1e0] sm:$0xff]  }
  0x9f   :  { %9909 = vmatpush3.bf16.msra.mxu0 %v11259_v45  ;;  %v11312_v45 = vld [vmem:[%s14933_s4 + $0x218] sm:$0xff]  }
  0xa0   :  { %9938 = vmatprep.subr.bf16.mxu0 %v11265_v50  ;;  %v11317_v50 = vld [vmem:[%s14933_s4 + $0x1e8] sm:$0xff]  }
  0xa1   :  { %9931 = vmatpush3.bf16.msra.mxu1 %v11264_v49  ;;  %v11316_v49 = vld [vmem:[%s14933_s4 + $0x220] sm:$0xff]  }
  0xa2   :  { %1673 = vmatmul.mubr.bf16.vlgmr.msra.gmra.mrb[16].mxu0 %v11261_v47  ;;  %9960 = vmatprep.subr.bf16.mxu1 %v11267_v56  ;;  %v11314_v47 = vld [vmem:[%s14933_s4 + $0x1a0] sm:$0xff]   ;;  %v11323_v56 = vld [vmem:[%s14933_s4 + $0x270] sm:$0xff]  }
  0xa3   :  { %9939 = vmatpush3.bf16.msra.mxu0 %v11266_v51  ;;  %6803 = vmatprep.mubr.bf16.mxu0 %v9069_v24  ;;  %v11318_v51 = vld [vmem:[%s14933_s4 + $0x1a8] sm:$0xff]  }
  0xa4   :  { %6763 = vmatmul.mubr.bf16.vlgmr.msra.gmra.mrb[16].mxu1 %v9066_v54  ;;  %9940 = vmatprep.subr.bf16.mxu0 %v11269_v58  ;;  %v11321_v54 = vld [vmem:[%s14933_s4 + $0x1f0] sm:$0xff]   ;;  %v11325_v58 = vld [vmem:[%s14933_s4 + $0x1f8] sm:$0xff]  }
  0xa5   :  { %9961 = vmatpush3.bf16.msra.mxu1 %v11268_v57  ;;  %6844 = vmatprep.mubr.bf16.mxu1 %v9071_v30  ;;  %v11324_v57 = vld [vmem:[%s14933_s4 + $0x230] sm:$0xff]  }
  0xa6   :  { %9962 = vmatprep.subr.bf16.mxu1 %v11271_v60  ;;  %v11327_v60 = vld [vmem:[%s14933_s4 + $0x278] sm:$0xff]  }
  0xa7   :  { %9941 = vmatpush3.bf16.msra.mxu0 %v11270_v59  ;;  %v11326_v59 = vld [vmem:[%s14933_s4 + $0x1b8] sm:$0xff]  }
  0xa8   :  { %9942 = vmatprep.subr.bf16.mxu0 %v11273_v62  ;;  %v1722_v62 = vld [vmem:[%s14934_s3 + $0x138] sm:$0xff] }
  0xa9   :  { %9963 = vmatpush3.bf16.msra.mxu1 %v11272_v61  ;;  %v1686_v61 = vld [vmem:[%s14934_s3 + $0x18] sm:$0xff] }
  0xaa   :  { %9964 = vmatprep.subr.bf16.mxu1 %v11275_v0  ;;  %v9073_v0 = vcombine.high %v1686_v61, %v1722_v62 }
  0xab   :  { %9943 = vmatpush3.bf16.msra.mxu0 %v11274_v63  ;;  %v9072_v63 = vcombine.low %v1686_v61, %v1722_v62  ;;  %v1725_v61 = vld [vmem:[%s14934_s3 + $0x150] sm:$0xff] }
  0xac   :  { %9944 = vmatprep.subr.bf16.mxu0 %v11277_v2  ;;  %v11329_v2 = vld [vmem:[%s14933_s4 + $0x2c0] sm:$0xff]  }
  0xad   :  { %9965 = vmatpush3.bf16.msra.mxu1 %v11276_v1  ;;  %v11328_v1 = vld [vmem:[%s14933_s4 + $0x238] sm:$0xff]  }
  0xae   :  { %9966 = vmatprep.subr.bf16.mxu1 %v11279_v4  ;;  %v1723_v4 = vld [vmem:[%s14934_s3 + $0x140] sm:$0xff] }
  0xaf   :  { %9945 = vmatpush3.bf16.msra.mxu0 %v11278_v3  ;;  %v1687_v3 = vld [vmem:[%s14934_s3 + $0x20] sm:$0xff] }
  0xb0   :  { %9946 = vmatprep.subr.bf16.mxu0 %v11281_v6  ;;  %v9075_v6 = vcombine.high %v1687_v3, %v1723_v4 }
  0xb1   :  { %9967 = vmatpush3.bf16.msra.mxu1 %v11280_v5  ;;  %v9074_v5 = vcombine.low %v1687_v3, %v1723_v4  ;;  %v11365_v3 = vld [vmem:[%s14933_s4 + $0x3c8] sm:$0xff]  }
  0xb2   :  { %9968 = vmatprep.subr.bf16.mxu1 %v11283_v8  ;;  %v11331_v8 = vld [vmem:[%s14933_s4 + $0x340] sm:$0xff]   ;;  %v11366_v4 = vld [vmem:[%s14933_s4 + $0x388] sm:$0xff]  }
  0xb3   :  { %9947 = vmatpush3.bf16.msra.mxu0 %v11282_v7  ;;  %v11330_v7 = vld [vmem:[%s14933_s4 + $0x280] sm:$0xff]  }
  0xb4   :  { %9948 = vmatprep.subr.bf16.mxu0 %v11285_v10  ;;  %v11333_v10 = vld [vmem:[%s14933_s4 + $0x2c8] sm:$0xff]  }
  0xb5   :  { %9969 = vmatpush3.bf16.msra.mxu1 %v11284_v9  ;;  %v11332_v9 = vld [vmem:[%s14933_s4 + $0x300] sm:$0xff]  }
  0xb6   :  { %9970 = vmatprep.subr.bf16.mxu1 %v11287_v12  ;;  %v11335_v12 = vld [vmem:[%s14933_s4 + $0x348] sm:$0xff]  }
  0xb7   :  { %9949 = vmatpush3.bf16.msra.mxu0 %v11286_v11  ;;  %v11334_v11 = vld [vmem:[%s14933_s4 + $0x288] sm:$0xff]  }
  0xb8   :  { %9950 = vmatprep.subr.bf16.mxu0 %v11289_v14  ;;  %v11336_v14 = vld [vmem:[%s14933_s4 + $0x308] sm:$0xff]  }
  0xb9   :  { %9971 = vmatpush3.bf16.msra.mxu1 %v11288_v13 }
  0xba   :  { %9972 = vmatprep.subr.bf16.mxu1 %v11291_v16  ;;  %v11337_v16 = vld [vmem:[%s14933_s4 + $0x2d0] sm:$0xff]  }
  0xbb   :  { %9951 = vmatpush3.bf16.msra.mxu0 %v11290_v15 }
  0xbc   :  { %9952 = vmatprep.subr.bf16.mxu0 %v11293_v18 }
  0xbd   :  { %9973 = vmatpush3.bf16.msra.mxu1 %v11292_v17 }
  0xbe   :  { %9974 = vmatprep.subr.bf16.mxu1 %v11295_v20 }
  0xbf   :  { %9953 = vmatpush3.bf16.msra.mxu0 %v11294_v19  ;;  %v11338_v19 = vld [vmem:[%s14933_s4 + $0x290] sm:$0xff]  }
  0xc0   :  { %9982 = vmatprep.subr.bf16.mxu0 %v11297_v26  ;;  %v11341_v26 = vld [vmem:[%s14933_s4 + $0x2d8] sm:$0xff]  }
  0xc1   :  { %9975 = vmatpush3.bf16.msra.mxu1 %v11296_v25 }
  0xc2   :  { %6804 = vmatmul.mubr.bf16.vlgmr.msra.gmra.mrb[20].mxu0 %v9068_v23  ;;  %10004 = vmatprep.subr.bf16.mxu1 %v11299_v32  ;;  %v11340_v23 = vld [vmem:[%s14933_s4 + $0x310] sm:$0xff]  }
  0xc3   :  { %9983 = vmatpush3.bf16.msra.mxu0 %v11298_v31  ;;  %6885 = vmatprep.mubr.bf16.mxu0 %v9073_v0  ;;  %v11343_v31 = vld [vmem:[%s14933_s4 + $0x358] sm:$0xff]   ;;  %v11362_v0 = vld [vmem:[%s14933_s4 + $0x380] sm:$0xff]  }
  0xc4   :  { %6845 = vmatmul.mubr.bf16.vlgmr.msra.gmra.mrb[20].mxu1 %v9070_v29  ;;  %9984 = vmatprep.subr.bf16.mxu0 %v11301_v34  ;;  %v11342_v29 = vld [vmem:[%s14933_s4 + $0x298] sm:$0xff]   ;;  %v11345_v34 = vld [vmem:[%s14933_s4 + $0x2e0] sm:$0xff]  }
  0xc5   :  { %10005 = vmatpush3.bf16.msra.mxu1 %v11300_v33  ;;  %6926 = vmatprep.mubr.bf16.mxu1 %v9075_v6  ;;  %v11344_v33 = vld [vmem:[%s14933_s4 + $0x318] sm:$0xff]   ;;  %v11368_v6 = vld [vmem:[%s14933_s4 + $0x408] sm:$0xff]  }
  0xc6   :  { %10006 = vmatprep.subr.bf16.mxu1 %v11303_v36  ;;  %v11347_v36 = vld [vmem:[%s14933_s4 + $0x360] sm:$0xff]  }
  0xc7   :  { %9985 = vmatpush3.bf16.msra.mxu0 %v11302_v35  ;;  %v11346_v35 = vld [vmem:[%s14933_s4 + $0x2a0] sm:$0xff]  }
  0xc8   :  { %9986 = vmatprep.subr.bf16.mxu0 %v11305_v38  ;;  %v8902_v38 = vld [vmem:[%s14935_s2] ss:$0 sm:$0xff] }
  0xc9   :  { %10007 = vmatpush3.bf16.msra.mxu1 %v11304_v37  ;;  %v11348_v37 = vld [vmem:[%s14933_s4 + $0x320] sm:$0xff]  }
  0xca   :  { %10008 = vmatprep.subr.bf16.mxu1 %v11307_v40  ;;  %v11349_v40 = vld [vmem:[%s14933_s4 + $0x2e8] sm:$0xff]  }
  0xcb   :  { %9987 = vmatpush3.bf16.msra.mxu0 %v11306_v39 }
  0xcc   :  { %9988 = vmatprep.subr.bf16.mxu0 %v11309_v42  ;;  %v11350_v42 = vld [vmem:[%s14933_s4 + $0x2a8] sm:$0xff]  }
  0xcd   :  { %10009 = vmatpush3.bf16.msra.mxu1 %v11308_v41 }
  0xce   :  { %10010 = vmatprep.subr.bf16.mxu1 %v11311_v44  ;;  %v11351_v44 = vld [vmem:[%s14933_s4 + $0x368] sm:$0xff]  }
  0xcf   :  { %9989 = vmatpush3.bf16.msra.mxu0 %v11310_v43 }
  0xd0   :  { %9990 = vmatprep.subr.bf16.mxu0 %v11313_v46  ;;  %v11352_v46 = vld [vmem:[%s14933_s4 + $0x328] sm:$0xff]  }
  0xd1   :  { %10011 = vmatpush3.bf16.msra.mxu1 %v11312_v45 }
  0xd2   :  { %10012 = vmatprep.subr.bf16.mxu1 %v11315_v48  ;;  %v11354_v48 = vld [vmem:[%s14933_s4 + $0x2b0] sm:$0xff]  }
  0xd3   :  { %9991 = vmatpush3.bf16.msra.mxu0 %v11314_v47  ;;  %v11353_v47 = vld [vmem:[%s14933_s4 + $0x2f0] sm:$0xff]  }
  0xd4   :  { %9992 = vmatprep.subr.bf16.mxu0 %v11317_v50  ;;  %v11356_v50 = vld [vmem:[%s14933_s4 + $0x330] sm:$0xff]  }
  0xd5   :  { %10013 = vmatpush3.bf16.msra.mxu1 %v11316_v49  ;;  %v11355_v49 = vld [vmem:[%s14933_s4 + $0x370] sm:$0xff]  }
  0xd6   :  { %10014 = vmatprep.subr.bf16.mxu1 %v11319_v52  ;;  %v11358_v52 = vld [vmem:[%s14933_s4 + $0x2b8] sm:$0xff]  }
  0xd7   :  { %9993 = vmatpush3.bf16.msra.mxu0 %v11318_v51  ;;  %v11357_v51 = vld [vmem:[%s14933_s4 + $0x2f8] sm:$0xff]  }
  0xd8   :  { %9994 = vmatprep.subr.bf16.mxu0 %v11321_v54  ;;  %v1688_v54 = vld [vmem:[%s14934_s3 + $0x28] sm:$0xff] }
  0xd9   :  { %10015 = vmatpush3.bf16.msra.mxu1 %v11320_v53  ;;  %v11359_v53 = vld [vmem:[%s14933_s4 + $0x378] sm:$0xff]  }
  0xda   :  { %10016 = vmatprep.subr.bf16.mxu1 %v11323_v56 }
  0xdb   :  { %9995 = vmatpush3.bf16.msra.mxu0 %v11322_v55  ;;  %v1724_v55 = vld [vmem:[%s14934_s3 + $0x148] sm:$0xff] }
  0xdc   :  { %9996 = vmatprep.subr.bf16.mxu0 %v11325_v58  ;;  %v9076_v56 = vcombine.low %v1688_v54, %v1724_v55  ;;  %v11360_v58 = vld [vmem:[%s14933_s4 + $0x338] sm:$0xff]  }
  0xdd   :  { %10017 = vmatpush3.bf16.msra.mxu1 %v11324_v57  ;;  %v9077_v57 = vcombine.high %v1688_v54, %v1724_v55 }
  0xde   :  { %10018 = vmatprep.subr.bf16.mxu1 %v11327_v60  ;;  %v1689_v60 = vld [vmem:[%s14934_s3 + $0x30] sm:$0xff] }
  0xdf   :  { %9997 = vmatpush3.bf16.msra.mxu0 %v11326_v59  ;;  %v11361_v59 = vld [vmem:[%s14933_s4 + $0x3c0] sm:$0xff]   ;;  %v9078_v62 = vcombine.low %v1689_v60, %v1725_v61 }
  0xe0   :  { %10026 = vmatprep.subr.bf16.mxu0 %v11329_v2  ;;  %v11364_v2 = vld [vmem:[%s14933_s4 + $0x400] sm:$0xff]  }
  0xe1   :  { %10019 = vmatpush3.bf16.msra.mxu1 %v11328_v1  ;;  %v11363_v1 = vld [vmem:[%s14933_s4 + $0x440] sm:$0xff]  }
  0xe2   :  { %6886 = vmatmul.mubr.bf16.vlgmr.msra.gmra.mrb[24].mxu0 %v9072_v63  ;;  %10048 = vmatprep.subr.bf16.mxu1 %v11331_v8  ;;  %v9079_v63 = vcombine.high %v1689_v60, %v1725_v61  ;;  %v11369_v8 = vld [vmem:[%s14933_s4 + $0x3d0] sm:$0xff]   ;;  %v11398_v60 = vld [vmem:[%s14933_s4 + $0x488] sm:$0xff]  }
  0xe3   :  { %10027 = vmatpush3.bf16.msra.mxu0 %v11330_v7  ;;  %6967 = vmatprep.mubr.bf16.mxu0 %v9077_v57  ;;  %v11395_v57 = vld [vmem:[%s14933_s4 + $0x540] sm:$0xff]   ;;  %v11399_v61 = vld [vmem:[%s14933_s4 + $0x548] sm:$0xff]  }
  0xe4   :  { %6927 = vmatmul.mubr.bf16.vlgmr.msra.gmra.mrb[24].mxu1 %v9074_v5  ;;  %10028 = vmatprep.subr.bf16.mxu0 %v11333_v10  ;;  %v11367_v5 = vld [vmem:[%s14933_s4 + $0x448] sm:$0xff]   ;;  %v11370_v10 = vld [vmem:[%s14933_s4 + $0x390] sm:$0xff]  }
  0xe5   :  { %10049 = vmatpush3.bf16.msra.mxu1 %v11332_v9  ;;  %7008 = vmatprep.mubr.bf16.mxu1 %v9079_v63  ;;  %v11401_v63 = vld [vmem:[%s14933_s4 + $0x4d0] sm:$0xff]  }
  0xe6   :  { %10050 = vmatprep.subr.bf16.mxu1 %v11335_v12 }
  0xe7   :  { %10029 = vmatpush3.bf16.msra.mxu0 %v11334_v11 }
  0xe8   :  { %10030 = vmatprep.subr.bf16.mxu0 %v11337_v16 }
  0xe9   :  { %10051 = vmatpush3.bf16.msra.mxu1 %v11336_v14 }
  0xea   :  { %10052 = vmatprep.subr.bf16.mxu1 %v11339_v21  ;;  %v11374_v21 = vld [vmem:[%s14933_s4 + $0x398] sm:$0xff]  }
  0xeb   :  { %10031 = vmatpush3.bf16.msra.mxu0 %v11338_v19  ;;  %v11373_v19 = vld [vmem:[%s14933_s4 + $0x3d8] sm:$0xff]  }
  0xec   :  { %10032 = vmatprep.subr.bf16.mxu0 %v11341_v26 }
  0xed   :  { %10053 = vmatpush3.bf16.msra.mxu1 %v11340_v23 }
  0xee   :  { %10054 = vmatprep.subr.bf16.mxu1 %v11343_v31  ;;  %v11378_v31 = vld [vmem:[%s14933_s4 + $0x3a0] sm:$0xff]  }
  0xef   :  { %10033 = vmatpush3.bf16.msra.mxu0 %v11342_v29 }
  0xf0   :  { %10034 = vmatprep.subr.bf16.mxu0 %v11345_v34  ;;  %v11380_v34 = vld [vmem:[%s14933_s4 + $0x420] sm:$0xff]  }
  0xf1   :  { %10055 = vmatpush3.bf16.msra.mxu1 %v11344_v33  ;;  %v11379_v33 = vld [vmem:[%s14933_s4 + $0x460] sm:$0xff]  }
  0xf2   :  { %10056 = vmatprep.subr.bf16.mxu1 %v11347_v36  ;;  %v11382_v36 = vld [vmem:[%s14933_s4 + $0x3a8] sm:$0xff]  }
  0xf3   :  { %10035 = vmatpush3.bf16.msra.mxu0 %v11346_v35  ;;  %v11381_v35 = vld [vmem:[%s14933_s4 + $0x3e8] sm:$0xff]  }
  0xf4   :  { %10036 = vmatprep.subr.bf16.mxu0 %v11349_v40  ;;  %v11386_v40 = vld [vmem:[%s14933_s4 + $0x3b0] sm:$0xff]  }
  0xf5   :  { %v9734_v13 = vpop.f32.mrb[0].mxu0  ;;  %10057 = vmatpush3.bf16.msra.mxu1 %v11348_v37  ;;  %v11383_v37 = vld [vmem:[%s14933_s4 + $0x468] sm:$0xff]  }
  0xf6   :  { %v9735_v15 = vpop.f32.mrb[1].mxu0  ;;  %10058 = vmatprep.subr.bf16.mxu1 %v11351_v44  ;;  %v11390_v44 = vld [vmem:[%s14933_s4 + $0x3b8] sm:$0xff]  }
  0xf7   :  { %v9736_v17 = vadd.f32 %v9735_v15, %v9734_v13  ;;  %v9737_v18 = vpop.f32.mrb[2].mxu0  ;;  %v9756_v20 = vpop.f32.mrb[0].mxu1  ;;  %10037 = vmatpush3.bf16.msra.mxu0 %v11350_v42  ;;  %v11371_v13 = vld [vmem:[%s14933_s4 + $0x450] sm:$0xff]  }
  0xf8   :  { %v9738_v22 = vpop.f32.mrb[3].mxu0  ;;  %v9757_v25 = vpop.f32.mrb[1].mxu1  ;;  %10038 = vmatprep.subr.bf16.mxu0 %v11353_v47  ;;  %v11372_v15 = vld [vmem:[%s14933_s4 + $0x410] sm:$0xff]   ;;  %v1726_v47 = vld [vmem:[%s14934_s3 + $0x158] sm:$0xff] }
  0xf9   :  { %v9739_v24 = vadd.f32 %v9738_v22, %v9737_v18  ;;  %v9758_v27 = vadd.f32 %v9757_v25, %v9756_v20  ;;  %v9759_v28 = vpop.f32.mrb[2].mxu1  ;;  %v1347_v39 = vadd.f32 %v9736_v17, %v8902_v38  ;;  %10059 = vmatpush3.bf16.msra.mxu1 %v11352_v46  ;;  %v11375_v25 = vld [vmem:[%s14933_s4 + $0x458] sm:$0xff]   ;;  %v11388_v42 = vld [vmem:[%s14933_s4 + $0x430] sm:$0xff]  }
  0xfa   :  { %v9760_v30 = vpop.f32.mrb[3].mxu1  ;;  %10060 = vmatprep.subr.bf16.mxu1 %v11355_v49  ;;  %v1690_v46 = vld [vmem:[%s14934_s3 + $0x38] sm:$0xff] }
  0xfb   :  { %v9761_v32 = vadd.f32 %v9760_v30, %v9759_v28  ;;  %v1350_v41 = vadd.f32 %v9739_v24, %v8902_v38  ;;  %v1388_v43 = vadd.f32 %v9758_v27, %v1347_v39  ;;  %10039 = vmatpush3.bf16.msra.mxu0 %v11354_v48  ;;  %v11376_v27 = vld [vmem:[%s14933_s4 + $0x418] sm:$0xff]   ;;  %v11377_v30 = vld [vmem:[%s14933_s4 + $0x3e0] sm:$0xff]   ;;  %v11384_v38 = vld [vmem:[%s14933_s4 + $0x428] sm:$0xff]   ;;  %v9080_v48 = vcombine.low %v1690_v46, %v1726_v47 }
  0xfc   :  { %10040 = vmatprep.subr.bf16.mxu0 %v11357_v51  ;;  %v11385_v39 = vld [vmem:[%s14933_s4 + $0x3f0] sm:$0xff]   ;;  %v9081_v49 = vcombine.high %v1690_v46, %v1726_v47  ;;  %v11393_v51 = vld [vmem:[%s14933_s4 + $0x4c0] sm:$0xff]  }
  0xfd   :  { %v12744_v45 = vadd.f32 %v9761_v32, %v1350_v41  ;;  %10061 = vmatpush3.bf16.msra.mxu1 %v11356_v50  ;;  %v11387_v41 = vld [vmem:[%s14933_s4 + $0x470] sm:$0xff]   ;;  %v11392_v50 = vld [vmem:[%s14933_s4 + $0x438] sm:$0xff]  }
  0xfe   :  { %10062 = vmatprep.subr.bf16.mxu1 %v11359_v53  ;;  %v1727_v53 = vld [vmem:[%s14934_s3 + $0x160] sm:$0xff] }
  0xff   :  { %10041 = vmatpush3.bf16.msra.mxu0 %v11358_v52  ;;  %v1691_v52 = vld [vmem:[%s14934_s3 + $0x40] sm:$0xff] }
 0x100   :  { %10070 = vmatprep.subr.bf16.mxu0 %v11361_v59  ;;  %v9082_v54 = vcombine.low %v1691_v52, %v1727_v53  ;;  %v9083_v55 = vcombine.high %v1691_v52, %v1727_v53  ;;  %v11397_v59 = vld [vmem:[%s14933_s4 + $0x4c8] sm:$0xff]  }
 0x101   :  { %10063 = vmatpush3.bf16.msra.mxu1 %v11360_v58  ;;  %v11396_v58 = vld [vmem:[%s14933_s4 + $0x500] sm:$0xff]   ;;  %v11430_v52 = vld [vmem:[%s14933_s4 + $0x588] sm:$0xff]  }
 0x102   :  { %6968 = vmatmul.mubr.bf16.vlgmr.msra.gmra.mrb[28].mxu0 %v9076_v56  ;;  %10092 = vmatprep.subr.bf16.mxu1 %v11363_v1  ;;  %v11394_v56 = vld [vmem:[%s14933_s4 + $0x480] sm:$0xff]   ;;  %v11402_v1 = vld [vmem:[%s14933_s4 + $0x490] sm:$0xff]   ;;  %v11431_v53 = vld [vmem:[%s14933_s4 + $0x648] sm:$0xff]  }
 0x103   :  { %10071 = vmatpush3.bf16.msra.mxu0 %v11362_v0  ;;  %7049 = vmatprep.mubr.bf16.mxu0 %v9081_v49  ;;  %v11427_v49 = vld [vmem:[%s14933_s4 + $0x640] sm:$0xff]  }
 0x104   :  { %7009 = vmatmul.mubr.bf16.vlgmr.msra.gmra.mrb[28].mxu1 %v9078_v62  ;;  %10072 = vmatprep.subr.bf16.mxu0 %v11365_v3  ;;  %v11400_v62 = vld [vmem:[%s14933_s4 + $0x508] sm:$0xff]   ;;  %v11403_v3 = vld [vmem:[%s14933_s4 + $0x550] sm:$0xff]  }
 0x105   :  { %10093 = vmatpush3.bf16.msra.mxu1 %v11364_v2  ;;  %7090 = vmatprep.mubr.bf16.mxu1 %v9083_v55  ;;  %v11433_v55 = vld [vmem:[%s14933_s4 + $0x5d0] sm:$0xff]  }
 0x106   :  { %10094 = vmatprep.subr.bf16.mxu1 %v11367_v5 }
 0x107   :  { %10073 = vmatpush3.bf16.msra.mxu0 %v11366_v4 }
 0x108   :  { %10074 = vmatprep.subr.bf16.mxu0 %v11369_v8  ;;  %v11405_v8 = vld [vmem:[%s14933_s4 + $0x4d8] sm:$0xff]  }
 0x109   :  { %10095 = vmatpush3.bf16.msra.mxu1 %v11368_v6  ;;  %v11404_v6 = vld [vmem:[%s14933_s4 + $0x510] sm:$0xff]  }
 0x10a   :  { %10096 = vmatprep.subr.bf16.mxu1 %v11371_v13 }
 0x10b   :  { %10075 = vmatpush3.bf16.msra.mxu0 %v11370_v10 }
 0x10c   :  { %10076 = vmatprep.subr.bf16.mxu0 %v11373_v19 }
 0x10d   :  { %10097 = vmatpush3.bf16.msra.mxu1 %v11372_v15 }
 0x10e   :  { %10098 = vmatprep.subr.bf16.mxu1 %v11375_v25 }
 0x10f   :  { %10077 = vmatpush3.bf16.msra.mxu0 %v11374_v21 }
 0x110   :  { %10078 = vmatprep.subr.bf16.mxu0 %v11377_v30  ;;  %v11416_v30 = vld [vmem:[%s14933_s4 + $0x528] sm:$0xff]  }
 0x111   :  { %10099 = vmatpush3.bf16.msra.mxu1 %v11376_v27  ;;  %v11413_v27 = vld [vmem:[%s14933_s4 + $0x4e8] sm:$0xff]  }
 0x112   :  { %10100 = vmatprep.subr.bf16.mxu1 %v11379_v33  ;;  %v11419_v33 = vld [vmem:[%s14933_s4 + $0x570] sm:$0xff]  }
 0x113   :  { %10079 = vmatpush3.bf16.msra.mxu0 %v11378_v31  ;;  %v11417_v31 = vld [vmem:[%s14933_s4 + $0x4f0] sm:$0xff]  }
 0x114   :  { %10080 = vmatprep.subr.bf16.mxu0 %v11381_v35  ;;  %v11421_v35 = vld [vmem:[%s14933_s4 + $0x4f8] sm:$0xff]  }
 0x115   :  { %v9778_v7 = vpop.f32.mrb[4].mxu0  ;;  %10101 = vmatpush3.bf16.msra.mxu1 %v11380_v34  ;;  %v11420_v34 = vld [vmem:[%s14933_s4 + $0x530] sm:$0xff]  }
 0x116   :  { %v9779_v9 = vpop.f32.mrb[5].mxu0  ;;  %10102 = vmatprep.subr.bf16.mxu1 %v11383_v37  ;;  %v11423_v37 = vld [vmem:[%s14933_s4 + $0x578] sm:$0xff]  }
 0x117   :  { %v9780_v11 = vadd.f32 %v9779_v9, %v9778_v7  ;;  %v9781_v12 = vpop.f32.mrb[6].mxu0  ;;  %v9800_v17 = vpop.f32.mrb[4].mxu1  ;;  %10081 = vmatpush3.bf16.msra.mxu0 %v11382_v36  ;;  %v11422_v36 = vld [vmem:[%s14933_s4 + $0x4b8] sm:$0xff]  }
 0x118   :  { %v9782_v14 = vpop.f32.mrb[7].mxu0  ;;  %v9801_v20 = vpop.f32.mrb[5].mxu1  ;;  %10082 = vmatprep.subr.bf16.mxu0 %v11385_v39  ;;  %v1728_v39 = vld [vmem:[%s14934_s3 + $0x168] sm:$0xff] }
 0x119   :  { %v1429_v16 = vadd.f32 %v9780_v11, %v1388_v43  ;;  %v9783_v18 = vadd.f32 %v9782_v14, %v9781_v12  ;;  %v9802_v23 = vadd.f32 %v9801_v20, %v9800_v17  ;;  %v9803_v24 = vpop.f32.mrb[6].mxu1  ;;  %10103 = vmatpush3.bf16.msra.mxu1 %v11384_v38  ;;  %v11389_v43 = vld [vmem:[%s14933_s4 + $0x3f8] sm:$0xff]   ;;  %v11409_v20 = vld [vmem:[%s14933_s4 + $0x4e0] sm:$0xff]   ;;  %v1692_v38 = vld [vmem:[%s14934_s3 + $0x48] sm:$0xff] }
 0x11a   :  { %v9804_v26 = vpop.f32.mrb[7].mxu1  ;;  %10104 = vmatprep.subr.bf16.mxu1 %v11387_v41  ;;  %v11406_v11 = vld [vmem:[%s14933_s4 + $0x498] sm:$0xff]   ;;  %v9085_v41 = vcombine.high %v1692_v38, %v1728_v39 }
 0x11b   :  { %v1432_v22 = vadd.f32 %v9783_v18, %v12744_v45  ;;  %v12834_v28 = vadd.f32 %v9802_v23, %v1429_v16  ;;  %v9805_v29 = vadd.f32 %v9804_v26, %v9803_v24  ;;  %10083 = vmatpush3.bf16.msra.mxu0 %v11386_v40  ;;  %v11391_v45 = vld [vmem:[%s14933_s4 + $0x478] sm:$0xff]   ;;  %v11410_v23 = vld [vmem:[%s14933_s4 + $0x4a0] sm:$0xff]   ;;  %v9084_v40 = vcombine.low %v1692_v38, %v1728_v39 }
 0x11c   :  { %10084 = vmatprep.subr.bf16.mxu0 %v11389_v43  ;;  %v11407_v14 = vld [vmem:[%s14933_s4 + $0x558] sm:$0xff]   ;;  %v11411_v24 = vld [vmem:[%s14933_s4 + $0x560] sm:$0xff]  }
 0x11d   :  { %v12842_v32 = vadd.f32 %v9805_v29, %v1432_v22  ;;  %10105 = vmatpush3.bf16.msra.mxu1 %v11388_v42  ;;  %v11408_v17 = vld [vmem:[%s14933_s4 + $0x518] sm:$0xff]   ;;  %v11412_v26 = vld [vmem:[%s14933_s4 + $0x520] sm:$0xff]   ;;  %v11415_v29 = vld [vmem:[%s14933_s4 + $0x568] sm:$0xff]  }
 0x11e   :  { %10106 = vmatprep.subr.bf16.mxu1 %v11391_v45  ;;  %v11424_v42 = vld [vmem:[%s14933_s4 + $0x538] sm:$0xff]   ;;  %v11425_v43 = vld [vmem:[%s14933_s4 + $0x5c0] sm:$0xff]   ;;  %v1729_v45 = vld [vmem:[%s14934_s3 + $0x170] sm:$0xff] }
 0x11f   :  { %10085 = vmatpush3.bf16.msra.mxu0 %v11390_v44  ;;  %v1693_v44 = vld [vmem:[%s14934_s3 + $0x50] sm:$0xff] }
 0x120   :  { %10114 = vmatprep.subr.bf16.mxu0 %v11393_v51  ;;  %v9086_v46 = vcombine.low %v1693_v44, %v1729_v45  ;;  %v9087_v47 = vcombine.high %v1693_v44, %v1729_v45  ;;  %v11429_v51 = vld [vmem:[%s14933_s4 + $0x5c8] sm:$0xff]  }
 0x121   :  { %10107 = vmatpush3.bf16.msra.mxu1 %v11392_v50  ;;  %v11428_v50 = vld [vmem:[%s14933_s4 + $0x600] sm:$0xff]   ;;  %v11462_v44 = vld [vmem:[%s14933_s4 + $0x688] sm:$0xff]  }
 0x122   :  { %7050 = vmatmul.mubr.bf16.vlgmr.msra.gmra.mrb[32].mxu0 %v9080_v48  ;;  %10136 = vmatprep.subr.bf16.mxu1 %v11395_v57  ;;  %v11426_v48 = vld [vmem:[%s14933_s4 + $0x580] sm:$0xff]   ;;  %v11435_v57 = vld [vmem:[%s14933_s4 + $0x650] sm:$0xff]   ;;  %v11463_v45 = vld [vmem:[%s14933_s4 + $0x748] sm:$0xff]  }
 0x123   :  { %10115 = vmatpush3.bf16.msra.mxu0 %v11394_v56  ;;  %7131 = vmatprep.mubr.bf16.mxu0 %v9085_v41  ;;  %v11434_v56 = vld [vmem:[%s14933_s4 + $0x590] sm:$0xff]   ;;  %v11459_v41 = vld [vmem:[%s14933_s4 + $0x740] sm:$0xff]  }
 0x124   :  { %7091 = vmatmul.mubr.bf16.vlgmr.msra.gmra.mrb[32].mxu1 %v9082_v54  ;;  %10116 = vmatprep.subr.bf16.mxu0 %v11397_v59  ;;  %v11432_v54 = vld [vmem:[%s14933_s4 + $0x608] sm:$0xff]   ;;  %v11436_v59 = vld [vmem:[%s14933_s4 + $0x610] sm:$0xff]  }
 0x125   :  { %10137 = vmatpush3.bf16.msra.mxu1 %v11396_v58  ;;  %7172 = vmatprep.mubr.bf16.mxu1 %v9087_v47  ;;  %v11465_v47 = vld [vmem:[%s14933_s4 + $0x6d0] sm:$0xff]  }
 0x126   :  { %10138 = vmatprep.subr.bf16.mxu1 %v11399_v61  ;;  %v11437_v61 = vld [vmem:[%s14933_s4 + $0x5d8] sm:$0xff]  }
 0x127   :  { %10117 = vmatpush3.bf16.msra.mxu0 %v11398_v60 }
 0x128   :  { %10118 = vmatprep.subr.bf16.mxu0 %v11401_v63 }
 0x129   :  { %10139 = vmatpush3.bf16.msra.mxu1 %v11400_v62 }
 0x12a   :  { %10140 = vmatprep.subr.bf16.mxu1 %v11403_v3 }
 0x12b   :  { %10119 = vmatpush3.bf16.msra.mxu0 %v11402_v1 }
 0x12c   :  { %10120 = vmatprep.subr.bf16.mxu0 %v11405_v8  ;;  %v11441_v8 = vld [vmem:[%s14933_s4 + $0x5e0] sm:$0xff]  }
 0x12d   :  { %10141 = vmatpush3.bf16.msra.mxu1 %v11404_v6 }
 0x12e   :  { %10142 = vmatprep.subr.bf16.mxu1 %v11407_v14  ;;  %v11443_v14 = vld [vmem:[%s14933_s4 + $0x660] sm:$0xff]  }
 0x12f   :  { %10121 = vmatpush3.bf16.msra.mxu0 %v11406_v11  ;;  %v11442_v11 = vld [vmem:[%s14933_s4 + $0x5a0] sm:$0xff]  }
 0x130   :  { %10122 = vmatprep.subr.bf16.mxu0 %v11409_v20  ;;  %v11446_v20 = vld [vmem:[%s14933_s4 + $0x5a8] sm:$0xff]  }
 0x131   :  { %10143 = vmatpush3.bf16.msra.mxu1 %v11408_v17  ;;  %v11444_v17 = vld [vmem:[%s14933_s4 + $0x620] sm:$0xff]  }
 0x132   :  { %10144 = vmatprep.subr.bf16.mxu1 %v11411_v24  ;;  %v11450_v24 = vld [vmem:[%s14933_s4 + $0x5b0] sm:$0xff]  }
 0x133   :  { %10123 = vmatpush3.bf16.msra.mxu0 %v11410_v23  ;;  %v11449_v23 = vld [vmem:[%s14933_s4 + $0x5f0] sm:$0xff]  }
 0x134   :  { %10124 = vmatprep.subr.bf16.mxu0 %v11413_v27  ;;  %v11453_v27 = vld [vmem:[%s14933_s4 + $0x5f8] sm:$0xff]  }
 0x135   :  { %v9822_v0 = vpop.f32.mrb[8].mxu0  ;;  %10145 = vmatpush3.bf16.msra.mxu1 %v11412_v26  ;;  %v11452_v26 = vld [vmem:[%s14933_s4 + $0x630] sm:$0xff]  }
 0x136   :  { %v9823_v2 = vpop.f32.mrb[9].mxu0  ;;  %10146 = vmatprep.subr.bf16.mxu1 %v11415_v29  ;;  %v11455_v29 = vld [vmem:[%s14933_s4 + $0x678] sm:$0xff]  }
 0x137   :  { %v9824_v4 = vadd.f32 %v9823_v2, %v9822_v0  ;;  %v9825_v5 = vpop.f32.mrb[10].mxu0  ;;  %v9844_v7 = vpop.f32.mrb[8].mxu1  ;;  %v11438_v0 = vld [vmem:[%s14933_s4 + $0x598] sm:$0xff]  }
 0x138   :  { %v9826_v10 = vpop.f32.mrb[11].mxu0  ;;  %v9845_v13 = vpop.f32.mrb[9].mxu1  ;;  %v11439_v2 = vld [vmem:[%s14933_s4 + $0x658] sm:$0xff]  }
 0x139   :  { %v1511_v9 = vadd.f32 %v9824_v4, %v12834_v28  ;;  %v9827_v12 = vadd.f32 %v9826_v10, %v9825_v5  ;;  %v9846_v15 = vadd.f32 %v9845_v13, %v9844_v7  ;;  %v9847_v16 = vpop.f32.mrb[10].mxu1  ;;  %v11414_v28 = vld [vmem:[%s14933_s4 + $0x4a8] sm:$0xff]   ;;  %10147 = vmatpush3.bf16.msra.mxu1 %v11416_v30  ;;  %v11440_v5 = vld [vmem:[%s14933_s4 + $0x618] sm:$0xff]  }
 0x13a   :  { %v9848_v19 = vpop.f32.mrb[11].mxu1  ;;  %10125 = vmatpush3.bf16.msra.mxu0 %v11414_v28  ;;  %10148 = vmatprep.subr.bf16.mxu1 %v11419_v33  ;;  %v11454_v28 = vld [vmem:[%s14933_s4 + $0x5b8] sm:$0xff]  }
 0x13b   :  { %v1514_v18 = vadd.f32 %v9827_v12, %v12842_v32  ;;  %v12951_v21 = vadd.f32 %v9846_v15, %v1511_v9  ;;  %v9849_v22 = vadd.f32 %v9848_v19, %v9847_v16  ;;  %v11418_v32 = vld [vmem:[%s14933_s4 + $0x4b0] sm:$0xff]   ;;  %10126 = vmatprep.subr.bf16.mxu0 %v11417_v31  ;;  %v1694_v30 = vld [vmem:[%s14934_s3 + $0x58] sm:$0xff] }
 0x13c   :  { %v1730_v31 = vld [vmem:[%s14934_s3 + $0x178] sm:$0xff] }
 0x13d   :  { %v12959_v25 = vadd.f32 %v9849_v22, %v1514_v18  ;;  %10149 = vmatpush3.bf16.msra.mxu1 %v11420_v34  ;;  %v11445_v18 = vld [vmem:[%s14933_s4 + $0x5e8] sm:$0xff]   ;;  %v9089_v33 = vcombine.high %v1694_v30, %v1730_v31  ;;  %v11456_v34 = vld [vmem:[%s14933_s4 + $0x638] sm:$0xff]  }
 0x13e   :  { %10127 = vmatpush3.bf16.msra.mxu0 %v11418_v32  ;;  %10150 = vmatprep.subr.bf16.mxu1 %v11423_v37  ;;  %v11448_v22 = vld [vmem:[%s14933_s4 + $0x628] sm:$0xff]   ;;  %v9088_v32 = vcombine.low %v1694_v30, %v1730_v31  ;;  %v1731_v37 = vld [vmem:[%s14934_s3 + $0x180] sm:$0xff] }
 0x13f   :  { %10128 = vmatprep.subr.bf16.mxu0 %v11421_v35  ;;  %v11457_v35 = vld [vmem:[%s14933_s4 + $0x6c0] sm:$0xff]  }
 0x140   :  { %v11490_v30 = vld [vmem:[%s14933_s4 + $0x780] sm:$0xff]  }
 0x141   :  { %10151 = vmatpush3.bf16.msra.mxu1 %v11424_v42  ;;  %v11460_v42 = vld [vmem:[%s14933_s4 + $0x700] sm:$0xff]  }
 0x142   :  { %10129 = vmatpush3.bf16.msra.mxu0 %v11422_v36  ;;  %10180 = vmatprep.subr.bf16.mxu1 %v11427_v49  ;;  %v1695_v36 = vld [vmem:[%s14934_s3 + $0x60] sm:$0xff]  ;;  %v11467_v49 = vld [vmem:[%s14933_s4 + $0x750] sm:$0xff]  }
 0x143   :  { %10158 = vmatprep.subr.bf16.mxu0 %v11425_v43  ;;  %v9090_v38 = vcombine.low %v1695_v36, %v1731_v37  ;;  %v9091_v39 = vcombine.high %v1695_v36, %v1731_v37  ;;  %v11461_v43 = vld [vmem:[%s14933_s4 + $0x6c8] sm:$0xff]   ;;  %v11491_v31 = vld [vmem:[%s14933_s4 + $0x840] sm:$0xff]   ;;  %v11497_v37 = vld [vmem:[%s14933_s4 + $0x7d0] sm:$0xff]  }
 0x144   :  { %7173 = vmatmul.mubr.bf16.vlgmr.msra.gmra.mrb[36].mxu1 %v9086_v46  ;;  %v11464_v46 = vld [vmem:[%s14933_s4 + $0x708] sm:$0xff]  }
 0x145   :  { %7132 = vmatmul.mubr.bf16.vlgmr.msra.gmra.mrb[36].mxu0 %v9084_v40  ;;  %10181 = vmatpush3.bf16.msra.mxu1 %v11428_v50  ;;  %v11458_v40 = vld [vmem:[%s14933_s4 + $0x680] sm:$0xff]   ;;  %v11468_v50 = vld [vmem:[%s14933_s4 + $0x710] sm:$0xff]   ;;  %v11496_v36 = vld [vmem:[%s14933_s4 + $0x808] sm:$0xff]  }
 0x146   :  { %10159 = vmatpush3.bf16.msra.mxu0 %v11426_v48  ;;  %10182 = vmatprep.subr.bf16.mxu1 %v11431_v53  ;;  %v11466_v48 = vld [vmem:[%s14933_s4 + $0x690] sm:$0xff]  }
 0x147   :  { %10160 = vmatprep.subr.bf16.mxu0 %v11429_v51  ;;  %7213 = vmatprep.mubr.bf16.mxu0 %v9089_v33  ;;  %v11493_v33 = vld [vmem:[%s14933_s4 + $0x7c8] sm:$0xff]  }
 0x148   :  { %7254 = vmatprep.mubr.bf16.mxu1 %v9091_v39  ;;  %v11499_v39 = vld [vmem:[%s14933_s4 + $0x850] sm:$0xff]  }
 0x149   :  { %10183 = vmatpush3.bf16.msra.mxu1 %v11432_v54  ;;  %v11470_v54 = vld [vmem:[%s14933_s4 + $0x698] sm:$0xff]  }
 0x14a   :  { %10161 = vmatpush3.bf16.msra.mxu0 %v11430_v52  ;;  %10184 = vmatprep.subr.bf16.mxu1 %v11435_v57  ;;  %v11469_v52 = vld [vmem:[%s14933_s4 + $0x6d8] sm:$0xff]  }
 0x14b   :  { %10162 = vmatprep.subr.bf16.mxu0 %v11433_v55  ;;  %v11471_v57 = vld [vmem:[%s14933_s4 + $0x758] sm:$0xff]  }
 0x14d   :  { %10185 = vmatpush3.bf16.msra.mxu1 %v11436_v59  ;;  %v11472_v59 = vld [vmem:[%s14933_s4 + $0x718] sm:$0xff]  }
 0x14e   :  { %10163 = vmatpush3.bf16.msra.mxu0 %v11434_v56  ;;  %10186 = vmatprep.subr.bf16.mxu1 %v11439_v2  ;;  %v11475_v2 = vld [vmem:[%s14933_s4 + $0x760] sm:$0xff]  }
 0x14f   :  { %10164 = vmatprep.subr.bf16.mxu0 %v11437_v61 }
 0x151   :  { %10187 = vmatpush3.bf16.msra.mxu1 %v11440_v5 }
 0x152   :  { %10165 = vmatpush3.bf16.msra.mxu0 %v11438_v0  ;;  %10188 = vmatprep.subr.bf16.mxu1 %v11443_v14  ;;  %v11474_v0 = vld [vmem:[%s14933_s4 + $0x6a0] sm:$0xff]   ;;  %v11482_v14 = vld [vmem:[%s14933_s4 + $0x6b0] sm:$0xff]  }
 0x153   :  { %10166 = vmatprep.subr.bf16.mxu0 %v11441_v8  ;;  %v11478_v8 = vld [vmem:[%s14933_s4 + $0x6a8] sm:$0xff]  }
 0x155   :  { %v9866_v58 = vpop.f32.mrb[12].mxu0  ;;  %10189 = vmatpush3.bf16.msra.mxu1 %v11444_v17  ;;  %v11485_v17 = vld [vmem:[%s14933_s4 + $0x6f8] sm:$0xff]  }
 0x156   :  { %v9867_v60 = vpop.f32.mrb[13].mxu0  ;;  %10167 = vmatpush3.bf16.msra.mxu0 %v11442_v11 }
 0x157   :  { %v9868_v62 = vadd.f32 %v9867_v60, %v9866_v58  ;;  %v9869_v63 = vpop.f32.mrb[14].mxu0  ;;  %v9888_v1 = vpop.f32.mrb[12].mxu1  ;;  %10168 = vmatprep.subr.bf16.mxu0 %v11445_v18  ;;  %v11486_v18 = vld [vmem:[%s14933_s4 + $0x6b8] sm:$0xff]  }
 0x158   :  { %v9870_v4 = vpop.f32.mrb[15].mxu0  ;;  %v9889_v7 = vpop.f32.mrb[13].mxu1 }
 0x159   :  { %v1593_v3 = vadd.f32 %v9868_v62, %v12951_v21  ;;  %v9871_v6 = vadd.f32 %v9870_v4, %v9869_v63  ;;  %v9890_v9 = vadd.f32 %v9889_v7, %v9888_v1  ;;  %v9891_v10 = vpop.f32.mrb[14].mxu1  ;;  %v11447_v21 = vld [vmem:[%s14933_s4 + $0x668] sm:$0xff]   ;;  %v11473_v62 = vld [vmem:[%s14933_s4 + $0x6e0] sm:$0xff]  }
 0x15a   :  { %v9892_v13 = vpop.f32.mrb[15].mxu1  ;;  %10169 = vmatpush3.bf16.msra.mxu0 %v11446_v20  ;;  %10190 = vmatprep.subr.bf16.mxu1 %v11447_v21  ;;  %v11476_v4 = vld [vmem:[%s14933_s4 + $0x720] sm:$0xff]   ;;  %v1696_v20 = vld [vmem:[%s14934_s3 + $0x68] sm:$0xff] }
 0x15b   :  { %v1596_v12 = vadd.f32 %v9871_v6, %v12959_v25  ;;  %v13071_v15 = vadd.f32 %v9890_v9, %v1593_v3  ;;  %v9893_v16 = vadd.f32 %v9892_v13, %v9891_v10  ;;  %10191 = vmatpush3.bf16.msra.mxu1 %v11448_v22  ;;  %10170 = vmatprep.subr.bf16.mxu0 %v11449_v23  ;;  %v11451_v25 = vld [vmem:[%s14933_s4 + $0x670] sm:$0xff]   ;;  %v11477_v6 = vld [vmem:[%s14933_s4 + $0x6e8] sm:$0xff]  }
 0x15c   :  { %10192 = vmatprep.subr.bf16.mxu1 %v11451_v25  ;;  %v11479_v10 = vld [vmem:[%s14933_s4 + $0x768] sm:$0xff]   ;;  %v11481_v13 = vld [vmem:[%s14933_s4 + $0x6f0] sm:$0xff]   ;;  %v11489_v25 = vld [vmem:[%s14933_s4 + $0x7c0] sm:$0xff]  }
 0x15d   :  { %v13079_v19 = vadd.f32 %v9893_v16, %v1596_v12  ;;  %v11480_v12 = vld [vmem:[%s14933_s4 + $0x728] sm:$0xff]   ;;  %v11484_v16 = vld [vmem:[%s14933_s4 + $0x730] sm:$0xff]  }
 0x15e   :  { %10171 = vmatpush3.bf16.msra.mxu0 %v11450_v24  ;;  %v1732_v21 = vld [vmem:[%s14934_s3 + $0x188] sm:$0xff]  ;;  %v11488_v24 = vld [vmem:[%s14933_s4 + $0x738] sm:$0xff]  }
 0x15f   :  { %10193 = vmatpush3.bf16.msra.mxu1 %v11452_v26  ;;  %10172 = vmatprep.subr.bf16.mxu0 %v11453_v27  ;;  %v9092_v22 = vcombine.low %v1696_v20, %v1732_v21  ;;  %v9093_v23 = vcombine.high %v1696_v20, %v1732_v21  ;;  %v1697_v26 = vld [vmem:[%s14934_s3 + $0x70] sm:$0xff]  ;;  %v11520_v21 = vld [vmem:[%s14933_s4 + $0x838] sm:$0xff]  }
 0x160   :  { %10194 = vmatprep.subr.bf16.mxu1 %v11455_v29  ;;  %v1733_v27 = vld [vmem:[%s14934_s3 + $0x190] sm:$0xff] }
 0x161   :  { %v9095_v29 = vcombine.high %v1697_v26, %v1733_v27 }
 0x162   :  { %10173 = vmatpush3.bf16.msra.mxu0 %v11454_v28  ;;  %v9094_v28 = vcombine.low %v1697_v26, %v1733_v27  ;;  %v11522_v27 = vld [vmem:[%s14933_s4 + $0x880] sm:$0xff]  }
 0x163   :  { %10195 = vmatpush3.bf16.msra.mxu1 %v11456_v34  ;;  %10202 = vmatprep.subr.bf16.mxu0 %v11457_v35  ;;  %v11494_v34 = vld [vmem:[%s14933_s4 + $0x788] sm:$0xff]  }
 0x164   :  { %10224 = vmatprep.subr.bf16.mxu1 %v11459_v41  ;;  %v11495_v35 = vld [vmem:[%s14933_s4 + $0x848] sm:$0xff]   ;;  %v11501_v41 = vld [vmem:[%s14933_s4 + $0x7d8] sm:$0xff]  }
 0x165   :  { %7214 = vmatmul.mubr.bf16.vlgmr.msra.gmra.mrb[40].mxu0 %v9088_v32  ;;  %v11492_v32 = vld [vmem:[%s14933_s4 + $0x800] sm:$0xff]  }
 0x166   :  { %10203 = vmatpush3.bf16.msra.mxu0 %v11458_v40  ;;  %7255 = vmatmul.mubr.bf16.vlgmr.msra.gmra.mrb[40].mxu1 %v9090_v38  ;;  %v11498_v38 = vld [vmem:[%s14933_s4 + $0x790] sm:$0xff]  }
 0x167   :  { %10225 = vmatpush3.bf16.msra.mxu1 %v11460_v42  ;;  %10204 = vmatprep.subr.bf16.mxu0 %v11461_v43  ;;  %v11500_v40 = vld [vmem:[%s14933_s4 + $0x810] sm:$0xff]   ;;  %v11502_v43 = vld [vmem:[%s14933_s4 + $0x798] sm:$0xff]  }
 0x168   :  { %10226 = vmatprep.subr.bf16.mxu1 %v11463_v45  ;;  %7295 = vmatprep.mubr.bf16.mxu0 %v9093_v23  ;;  %v11503_v45 = vld [vmem:[%s14933_s4 + $0x858] sm:$0xff]   ;;  %v1699_v23 = vld [vmem:[%s14934_s3 + $0x80] sm:$0xff] }
 0x169   :  { %7336 = vmatprep.mubr.bf16.mxu1 %v9095_v29  ;;  %v11524_v29 = vld [vmem:[%s14933_s4 + $0x900] sm:$0xff]  }
 0x16a   :  { %10205 = vmatpush3.bf16.msra.mxu0 %v11462_v44 }
 0x16b   :  { %10227 = vmatpush3.bf16.msra.mxu1 %v11464_v46  ;;  %10206 = vmatprep.subr.bf16.mxu0 %v11465_v47 }
 0x16c   :  { %10228 = vmatprep.subr.bf16.mxu1 %v11467_v49  ;;  %v9065_v49 = vld [vmem:[%s14936_s5] ss:$0 sm:$0xff] }
 0x16e   :  { %10207 = vmatpush3.bf16.msra.mxu0 %v11466_v48  ;;  %v11504_v48 = vld [vmem:[%s14933_s4 + $0x818] sm:$0xff]  }
 0x16f   :  { %10229 = vmatpush3.bf16.msra.mxu1 %v11468_v50  ;;  %10208 = vmatprep.subr.bf16.mxu0 %v11469_v52  ;;  %v11505_v52 = vld [vmem:[%s14933_s4 + $0x7e0] sm:$0xff]  }
 0x170   :  { %10230 = vmatprep.subr.bf16.mxu1 %v11471_v57 }
 0x172   :  { %10209 = vmatpush3.bf16.msra.mxu0 %v11470_v54  ;;  %v11506_v54 = vld [vmem:[%s14933_s4 + $0x7a0] sm:$0xff]  }
 0x173   :  { %10231 = vmatpush3.bf16.msra.mxu1 %v11472_v59  ;;  %10210 = vmatprep.subr.bf16.mxu0 %v11473_v62 }
 0x174   :  { %10232 = vmatprep.subr.bf16.mxu1 %v11475_v2 }
 0x175   :  { %v9910_v51 = vpop.f32.mrb[16].mxu0 }
 0x176   :  { %v9911_v53 = vpop.f32.mrb[17].mxu0  ;;  %10211 = vmatpush3.bf16.msra.mxu0 %v11474_v0 }
 0x177   :  { %v9912_v55 = vadd.f32 %v9911_v53, %v9910_v51  ;;  %v9913_v56 = vpop.f32.mrb[18].mxu0  ;;  %v9932_v63 = vpop.f32.mrb[16].mxu1  ;;  %10233 = vmatpush3.bf16.msra.mxu1 %v11476_v4  ;;  %10212 = vmatprep.subr.bf16.mxu0 %v11477_v6  ;;  %v11510_v6 = vld [vmem:[%s14933_s4 + $0x7a8] sm:$0xff]  }
 0x178   :  { %v9914_v58 = vpop.f32.mrb[19].mxu0  ;;  %v9933_v3 = vpop.f32.mrb[17].mxu1  ;;  %10234 = vmatprep.subr.bf16.mxu1 %v11479_v10  ;;  %v11513_v10 = vld [vmem:[%s14933_s4 + $0x7f0] sm:$0xff]  }
 0x179   :  { %v13175_v60 = vadd.f32 %v9912_v55, %v13071_v15  ;;  %v9915_v61 = vadd.f32 %v9914_v58, %v9913_v56  ;;  %v13192_v5 = vadd.f32 %v9933_v3, %v9932_v63  ;;  %v9935_v7 = vpop.f32.mrb[18].mxu1  ;;  %v11483_v15 = vld [vmem:[%s14933_s4 + $0x770] sm:$0xff]   ;;  %v11507_v58 = vld [vmem:[%s14933_s4 + $0x860] sm:$0xff]   ;;  %v11509_v3 = vld [vmem:[%s14933_s4 + $0x7e8] sm:$0xff]  }
 0x17a   :  { %v9936_v9 = vpop.f32.mrb[19].mxu1  ;;  %10213 = vmatpush3.bf16.msra.mxu0 %v11478_v8  ;;  %v11508_v63 = vld [vmem:[%s14933_s4 + $0x820] sm:$0xff]  }
 0x17b   :  { %v13184_v1 = vadd.f32 %v9915_v61, %v13079_v19  ;;  %v13203_v11 = vadd.f32 %v9936_v9, %v9935_v7  ;;  %10235 = vmatpush3.bf16.msra.mxu1 %v11480_v12  ;;  %10214 = vmatprep.subr.bf16.mxu0 %v11481_v13  ;;  %v11487_v19 = vld [vmem:[%s14933_s4 + $0x778] sm:$0xff]   ;;  %v6765_v51 = vadd.f32 %v13192_v5, %v9065_v49  ;;  %v11511_v7 = vld [vmem:[%s14933_s4 + $0x868] sm:$0xff]   ;;  %v11515_v12 = vld [vmem:[%s14933_s4 + $0x870] sm:$0xff]  }
 0x17c   :  { %10236 = vmatprep.subr.bf16.mxu1 %v11483_v15  ;;  %v11512_v9 = vld [vmem:[%s14933_s4 + $0x828] sm:$0xff]   ;;  %v11516_v13 = vld [vmem:[%s14933_s4 + $0x830] sm:$0xff]   ;;  %v11518_v15 = vld [vmem:[%s14933_s4 + $0x7b8] sm:$0xff]  }
 0x17d   :  { %v6768_v55 = vadd.f32 %v13203_v11, %v9065_v49  ;;  %v11514_v11 = vld [vmem:[%s14933_s4 + $0x7b0] sm:$0xff]  }
 0x17e   :  { %10215 = vmatpush3.bf16.msra.mxu0 %v11482_v14  ;;  %v11517_v14 = vld [vmem:[%s14933_s4 + $0x7f8] sm:$0xff]  }
 0x17f   :  { %10237 = vmatpush3.bf16.msra.mxu1 %v11484_v16  ;;  %10216 = vmatprep.subr.bf16.mxu0 %v11485_v17  ;;  %v11519_v16 = vld [vmem:[%s14933_s4 + $0x878] sm:$0xff]  }
 0x180   :  { %10238 = vmatprep.subr.bf16.mxu1 %v11487_v19  ;;  %v1698_v17 = vld [vmem:[%s14934_s3 + $0x78] sm:$0xff] }
 0x182   :  { %10217 = vmatpush3.bf16.msra.mxu0 %v11486_v18  ;;  %v1734_v18 = vld [vmem:[%s14934_s3 + $0x198] sm:$0xff] }
 0x183   :  { %10239 = vmatpush3.bf16.msra.mxu1 %v11488_v24  ;;  %10246 = vmatprep.subr.bf16.mxu0 %v11489_v25  ;;  %v9096_v19 = vcombine.low %v1698_v17, %v1734_v18  ;;  %v9097_v20 = vcombine.high %v1698_v17, %v1734_v18  ;;  %v1735_v24 = vld [vmem:[%s14934_s3 + $0x1a0] sm:$0xff]  ;;  %v1701_v17 = vld [vmem:[%s14934_s3 + $0x90] sm:$0xff] }
 0x184   :  { %10268 = vmatprep.subr.bf16.mxu1 %v11491_v31  ;;  %v9098_v25 = vcombine.low %v1699_v23, %v1735_v24  ;;  %v9099_v26 = vcombine.high %v1699_v23, %v1735_v24  ;;  %v11526_v31 = vld [vmem:[%s14933_s4 + $0x888] sm:$0xff]   ;;  %v1737_v18 = vld [vmem:[%s14934_s3 + $0x1b0] sm:$0xff]  ;;  %v11556_v23 = vld [vmem:[%s14933_s4 + $0xa00] sm:$0xff]  }
 0x185   :  { %7296 = vmatmul.mubr.bf16.vlgmr.msra.gmra.mrb[44].mxu0 %v9092_v22  ;;  %v11521_v22 = vld [vmem:[%s14933_s4 + $0x8c0] sm:$0xff]   ;;  %v11557_v24 = vld [vmem:[%s14933_s4 + $0x9c8] sm:$0xff]  }
 0x186   :  { %10247 = vmatpush3.bf16.msra.mxu0 %v11490_v30  ;;  %7337 = vmatmul.mubr.bf16.vlgmr.msra.gmra.mrb[44].mxu1 %v9094_v28  ;;  %v11523_v28 = vld [vmem:[%s14933_s4 + $0x940] sm:$0xff]   ;;  %v11525_v30 = vld [vmem:[%s14933_s4 + $0x8c8] sm:$0xff]  }
 0x187   :  { %10269 = vmatpush3.bf16.msra.mxu1 %v11492_v32  ;;  %10248 = vmatprep.subr.bf16.mxu0 %v11493_v33  ;;  %v11527_v32 = vld [vmem:[%s14933_s4 + $0x948] sm:$0xff]  }
 0x188   :  { %10270 = vmatprep.subr.bf16.mxu1 %v11495_v35  ;;  %7377 = vmatprep.mubr.bf16.mxu0 %v9097_v20  ;;  %v11528_v33 = vld [vmem:[%s14933_s4 + $0x908] sm:$0xff]   ;;  %v11530_v35 = vld [vmem:[%s14933_s4 + $0x890] sm:$0xff]   ;;  %v9103_v20 = vcombine.high %v1701_v17, %v1737_v18 }
 0x189   :  { %7418 = vmatprep.mubr.bf16.mxu1 %v9099_v26  ;;  %v11559_v26 = vld [vmem:[%s14933_s4 + $0xa48] sm:$0xff]  }
 0x18a   :  { %10249 = vmatpush3.bf16.msra.mxu0 %v11494_v34  ;;  %v11529_v34 = vld [vmem:[%s14933_s4 + $0x8d0] sm:$0xff]  }
 0x18b   :  { %10271 = vmatpush3.bf16.msra.mxu1 %v11496_v36  ;;  %10250 = vmatprep.subr.bf16.mxu0 %v11497_v37  ;;  %v11531_v36 = vld [vmem:[%s14933_s4 + $0x950] sm:$0xff]  }
 0x18c   :  { %10272 = vmatprep.subr.bf16.mxu1 %v11499_v39  ;;  %v11532_v37 = vld [vmem:[%s14933_s4 + $0x910] sm:$0xff]  }
 0x18e   :  { %10251 = vmatpush3.bf16.msra.mxu0 %v11498_v38  ;;  %v11533_v38 = vld [vmem:[%s14933_s4 + $0x8d8] sm:$0xff]  }
 0x18f   :  { %10273 = vmatpush3.bf16.msra.mxu1 %v11500_v40  ;;  %10252 = vmatprep.subr.bf16.mxu0 %v11501_v41  ;;  %v11534_v40 = vld [vmem:[%s14933_s4 + $0x898] sm:$0xff]  }
 0x190   :  { %10274 = vmatprep.subr.bf16.mxu1 %v11503_v45  ;;  %v11536_v45 = vld [vmem:[%s14933_s4 + $0x918] sm:$0xff]  }
 0x192   :  { %10253 = vmatpush3.bf16.msra.mxu0 %v11502_v43 }
 0x193   :  { %10275 = vmatpush3.bf16.msra.mxu1 %v11504_v48  ;;  %10254 = vmatprep.subr.bf16.mxu0 %v11505_v52 }
 0x194   :  { %10276 = vmatprep.subr.bf16.mxu1 %v11507_v58 }
 0x195   :  { %v9954_v42 = vpop.f32.mrb[20].mxu0 }
 0x196   :  { %v9955_v44 = vpop.f32.mrb[21].mxu0  ;;  %10255 = vmatpush3.bf16.msra.mxu0 %v11506_v54 }
 0x197   :  { %v9956_v46 = vadd.f32 %v9955_v44, %v9954_v42  ;;  %v9957_v47 = vpop.f32.mrb[22].mxu0  ;;  %v9976_v50 = vpop.f32.mrb[20].mxu1  ;;  %10277 = vmatpush3.bf16.msra.mxu1 %v11508_v63  ;;  %10256 = vmatprep.subr.bf16.mxu0 %v11509_v3  ;;  %v11535_v42 = vld [vmem:[%s14933_s4 + $0x958] sm:$0xff]   ;;  %v11542_v63 = vld [vmem:[%s14933_s4 + $0x8a8] sm:$0xff]  }
 0x198   :  { %v9958_v53 = vpop.f32.mrb[23].mxu0  ;;  %v9977_v57 = vpop.f32.mrb[21].mxu1  ;;  %10278 = vmatprep.subr.bf16.mxu1 %v11511_v7  ;;  %v11544_v3 = vld [vmem:[%s14933_s4 + $0x928] sm:$0xff]   ;;  %v11548_v7 = vld [vmem:[%s14933_s4 + $0x930] sm:$0xff]  }
 0x199   :  { %v9959_v56 = vadd.f32 %v9958_v53, %v9957_v47  ;;  %v6806_v59 = vadd.f32 %v9956_v46, %v6765_v51  ;;  %v9978_v61 = vadd.f32 %v9977_v57, %v9976_v50  ;;  %v9979_v62 = vpop.f32.mrb[22].mxu1  ;;  %v11537_v47 = vld [vmem:[%s14933_s4 + $0x8e0] sm:$0xff]  }
 0x19a   :  { %v9980_v2 = vpop.f32.mrb[23].mxu1  ;;  %10257 = vmatpush3.bf16.msra.mxu0 %v11510_v6  ;;  %v11538_v50 = vld [vmem:[%s14933_s4 + $0x8a0] sm:$0xff]   ;;  %v11547_v6 = vld [vmem:[%s14933_s4 + $0x970] sm:$0xff]  }
 0x19b   :  { %v6809_v0 = vadd.f32 %v9959_v56, %v6768_v55  ;;  %v13312_v4 = vadd.f32 %v9978_v61, %v6806_v59  ;;  %v9981_v5 = vadd.f32 %v9980_v2, %v9979_v62  ;;  %10279 = vmatpush3.bf16.msra.mxu1 %v11512_v9  ;;  %10258 = vmatprep.subr.bf16.mxu0 %v11513_v10  ;;  %v11539_v53 = vld [vmem:[%s14933_s4 + $0x960] sm:$0xff]   ;;  %v11541_v59 = vld [vmem:[%s14933_s4 + $0x8e8] sm:$0xff]   ;;  %v11550_v9 = vld [vmem:[%s14933_s4 + $0x8b8] sm:$0xff]  }
 0x19c   :  { %10280 = vmatprep.subr.bf16.mxu1 %v11515_v12  ;;  %v11540_v56 = vld [vmem:[%s14933_s4 + $0x920] sm:$0xff]   ;;  %v11551_v10 = vld [vmem:[%s14933_s4 + $0x978] sm:$0xff]   ;;  %v1736_v12 = vld [vmem:[%s14934_s3 + $0x1a8] sm:$0xff] }
 0x19d   :  { %v13320_v8 = vadd.f32 %v9981_v5, %v6809_v0  ;;  %v11543_v0 = vld [vmem:[%s14933_s4 + $0x968] sm:$0xff]   ;;  %v11546_v5 = vld [vmem:[%s14933_s4 + $0x8b0] sm:$0xff]  }
 0x19e   :  { %10259 = vmatpush3.bf16.msra.mxu0 %v11514_v11  ;;  %v1700_v11 = vld [vmem:[%s14934_s3 + $0x88] sm:$0xff] }
 0x19f   :  { %10281 = vmatpush3.bf16.msra.mxu1 %v11516_v13  ;;  %10260 = vmatprep.subr.bf16.mxu0 %v11517_v14  ;;  %v9100_v13 = vcombine.low %v1700_v11, %v1736_v12  ;;  %v9101_v14 = vcombine.high %v1700_v11, %v1736_v12  ;;  %v1703_v11 = vld [vmem:[%s14934_s3 + $0xa0] sm:$0xff] }
 0x1a0   :  { %10282 = vmatprep.subr.bf16.mxu1 %v11519_v16  ;;  %v11553_v16 = vld [vmem:[%s14933_s4 + $0x9c0] sm:$0xff]  }
 0x1a1   :  { %v1739_v12 = vld [vmem:[%s14934_s3 + $0x1c0] sm:$0xff] }
 0x1a2   :  { %10261 = vmatpush3.bf16.msra.mxu0 %v11518_v15  ;;  %v11552_v15 = vld [vmem:[%s14933_s4 + $0x938] sm:$0xff]  }
 0x1a3   :  { %10283 = vmatpush3.bf16.msra.mxu1 %v11520_v21  ;;  %10290 = vmatprep.subr.bf16.mxu0 %v11521_v22  ;;  %v11554_v21 = vld [vmem:[%s14933_s4 + $0x980] sm:$0xff]  }
 0x1a4   :  { %10312 = vmatprep.subr.bf16.mxu1 %v11523_v28  ;;  %v11555_v22 = vld [vmem:[%s14933_s4 + $0xa40] sm:$0xff]   ;;  %v11561_v28 = vld [vmem:[%s14933_s4 + $0x9d0] sm:$0xff]  }
 0x1a5   :  { %7378 = vmatmul.mubr.bf16.vlgmr.msra.gmra.mrb[48].mxu0 %v9096_v19  ;;  %v9102_v19 = vcombine.low %v1701_v17, %v1737_v18  ;;  %v11588_v17 = vld [vmem:[%s14933_s4 + $0xb00] sm:$0xff]   ;;  %v11589_v18 = vld [vmem:[%s14933_s4 + $0xac8] sm:$0xff]  }
 0x1a6   :  { %10291 = vmatpush3.bf16.msra.mxu0 %v11522_v27  ;;  %7419 = vmatmul.mubr.bf16.vlgmr.msra.gmra.mrb[48].mxu1 %v9098_v25  ;;  %v11558_v25 = vld [vmem:[%s14933_s4 + $0x988] sm:$0xff]  }
 0x1a7   :  { %10313 = vmatpush3.bf16.msra.mxu1 %v11524_v29  ;;  %10292 = vmatprep.subr.bf16.mxu0 %v11525_v30  ;;  %v11560_v27 = vld [vmem:[%s14933_s4 + $0xa08] sm:$0xff]   ;;  %v11562_v29 = vld [vmem:[%s14933_s4 + $0x990] sm:$0xff]  }
 0x1a8   :  { %10314 = vmatprep.subr.bf16.mxu1 %v11527_v32  ;;  %7459 = vmatprep.mubr.bf16.mxu0 %v9101_v14  ;;  %v11563_v30 = vld [vmem:[%s14933_s4 + $0xa50] sm:$0xff]   ;;  %v11565_v32 = vld [vmem:[%s14933_s4 + $0x9d8] sm:$0xff]   ;;  %v9107_v14 = vcombine.high %v1703_v11, %v1739_v12 }
 0x1a9   :  { %7500 = vmatprep.mubr.bf16.mxu1 %v9103_v20  ;;  %v11591_v20 = vld [vmem:[%s14933_s4 + $0xb48] sm:$0xff]  }
 0x1aa   :  { %10293 = vmatpush3.bf16.msra.mxu0 %v11526_v31  ;;  %v11564_v31 = vld [vmem:[%s14933_s4 + $0xa10] sm:$0xff]  }
 0x1ab   :  { %10315 = vmatpush3.bf16.msra.mxu1 %v11528_v33  ;;  %10294 = vmatprep.subr.bf16.mxu0 %v11529_v34  ;;  %v11566_v34 = vld [vmem:[%s14933_s4 + $0x998] sm:$0xff]  }
 0x1ac   :  { %10316 = vmatprep.subr.bf16.mxu1 %v11531_v36  ;;  %v11567_v36 = vld [vmem:[%s14933_s4 + $0xa58] sm:$0xff]  }
 0x1ae   :  { %10295 = vmatpush3.bf16.msra.mxu0 %v11530_v35 }
 0x1af   :  { %10317 = vmatpush3.bf16.msra.mxu1 %v11532_v37  ;;  %10296 = vmatprep.subr.bf16.mxu0 %v11533_v38 }
 0x1b0   :  { %10318 = vmatprep.subr.bf16.mxu1 %v11535_v42 }
 0x1b2   :  { %10297 = vmatpush3.bf16.msra.mxu0 %v11534_v40 }
 0x1b3   :  { %10319 = vmatpush3.bf16.msra.mxu1 %v11536_v45  ;;  %10298 = vmatprep.subr.bf16.mxu0 %v11537_v47  ;;  %v11571_v47 = vld [vmem:[%s14933_s4 + $0xa60] sm:$0xff]  }
 0x1b4   :  { %10320 = vmatprep.subr.bf16.mxu1 %v11539_v53  ;;  %v11573_v53 = vld [vmem:[%s14933_s4 + $0x9e8] sm:$0xff]  }
 0x1b5   :  { %v9998_v39 = vpop.f32.mrb[24].mxu0 }
 0x1b6   :  { %v9999_v41 = vpop.f32.mrb[25].mxu0  ;;  %10299 = vmatpush3.bf16.msra.mxu0 %v11538_v50  ;;  %v11572_v50 = vld [vmem:[%s14933_s4 + $0xa20] sm:$0xff]  }
 0x1b7   :  { %v10000_v43 = vadd.f32 %v9999_v41, %v9998_v39  ;;  %v10001_v44 = vpop.f32.mrb[26].mxu0  ;;  %v10020_v46 = vpop.f32.mrb[24].mxu1  ;;  %10321 = vmatpush3.bf16.msra.mxu1 %v11540_v56  ;;  %10300 = vmatprep.subr.bf16.mxu0 %v11541_v59  ;;  %v11568_v39 = vld [vmem:[%s14933_s4 + $0xa18] sm:$0xff]   ;;  %v11569_v41 = vld [vmem:[%s14933_s4 + $0x9e0] sm:$0xff]   ;;  %v11574_v56 = vld [vmem:[%s14933_s4 + $0x9a8] sm:$0xff]  }
 0x1b8   :  { %v10002_v49 = vpop.f32.mrb[27].mxu0  ;;  %v10021_v52 = vpop.f32.mrb[25].mxu1  ;;  %10322 = vmatprep.subr.bf16.mxu1 %v11543_v0  ;;  %v11576_v59 = vld [vmem:[%s14933_s4 + $0xa28] sm:$0xff]   ;;  %v11580_v0 = vld [vmem:[%s14933_s4 + $0xa30] sm:$0xff]  }
 0x1b9   :  { %v6888_v48 = vadd.f32 %v10000_v43, %v13312_v4  ;;  %v10003_v51 = vadd.f32 %v10002_v49, %v10001_v44  ;;  %v10022_v54 = vadd.f32 %v10021_v52, %v10020_v46  ;;  %v10023_v55 = vpop.f32.mrb[26].mxu1  ;;  %v11545_v4 = vld [vmem:[%s14933_s4 + $0x8f0] sm:$0xff]   ;;  %v11570_v44 = vld [vmem:[%s14933_s4 + $0x9a0] sm:$0xff]  }
 0x1ba   :  { %v10024_v58 = vpop.f32.mrb[27].mxu1  ;;  %10301 = vmatpush3.bf16.msra.mxu0 %v11542_v63  ;;  %v11579_v63 = vld [vmem:[%s14933_s4 + $0xa70] sm:$0xff]  }
 0x1bb   :  { %v6891_v57 = vadd.f32 %v10003_v51, %v13320_v8  ;;  %v13426_v61 = vadd.f32 %v10022_v54, %v6888_v48  ;;  %v10025_v62 = vadd.f32 %v10024_v58, %v10023_v55  ;;  %10323 = vmatpush3.bf16.msra.mxu1 %v11544_v3  ;;  %10302 = vmatprep.subr.bf16.mxu0 %v11545_v4  ;;  %v11549_v8 = vld [vmem:[%s14933_s4 + $0x8f8] sm:$0xff]  }
 0x1bc   :  { %10324 = vmatprep.subr.bf16.mxu1 %v11547_v6  ;;  %v11582_v3 = vld [vmem:[%s14933_s4 + $0x9b8] sm:$0xff]  }
 0x1bd   :  { %v13434_v2 = vadd.f32 %v10025_v62, %v6891_v57  ;;  %v11575_v57 = vld [vmem:[%s14933_s4 + $0xa68] sm:$0xff]   ;;  %v11578_v62 = vld [vmem:[%s14933_s4 + $0x9b0] sm:$0xff]   ;;  %v11583_v4 = vld [vmem:[%s14933_s4 + $0xa78] sm:$0xff]  }
 0x1be   :  { %10303 = vmatpush3.bf16.msra.mxu0 %v11546_v5  ;;  %v1702_v5 = vld [vmem:[%s14934_s3 + $0x98] sm:$0xff] }
 0x1bf   :  { %10325 = vmatpush3.bf16.msra.mxu1 %v11548_v7  ;;  %10304 = vmatprep.subr.bf16.mxu0 %v11549_v8  ;;  %v1738_v6 = vld [vmem:[%s14934_s3 + $0x1b8] sm:$0xff] }
 0x1c0   :  { %10326 = vmatprep.subr.bf16.mxu1 %v11551_v10  ;;  %v9104_v7 = vcombine.low %v1702_v5, %v1738_v6  ;;  %v9105_v8 = vcombine.high %v1702_v5, %v1738_v6  ;;  %v11585_v10 = vld [vmem:[%s14933_s4 + $0xac0] sm:$0xff]   ;;  %v1705_v5 = vld [vmem:[%s14934_s3 + $0xb0] sm:$0xff] }
 0x1c1   :  { %v1741_v6 = vld [vmem:[%s14934_s3 + $0x1d0] sm:$0xff] }
 0x1c2   :  { %10305 = vmatpush3.bf16.msra.mxu0 %v11550_v9  ;;  %v11584_v9 = vld [vmem:[%s14933_s4 + $0xa38] sm:$0xff]  }
 0x1c3   :  { %10327 = vmatpush3.bf16.msra.mxu1 %v11552_v15  ;;  %10334 = vmatprep.subr.bf16.mxu0 %v11553_v16  ;;  %v11586_v15 = vld [vmem:[%s14933_s4 + $0xa80] sm:$0xff]  }
 0x1c4   :  { %10356 = vmatprep.subr.bf16.mxu1 %v11555_v22  ;;  %v11587_v16 = vld [vmem:[%s14933_s4 + $0xb40] sm:$0xff]   ;;  %v11593_v22 = vld [vmem:[%s14933_s4 + $0xad0] sm:$0xff]  }
 0x1c5   :  { %7460 = vmatmul.mubr.bf16.vlgmr.msra.gmra.mrb[52].mxu0 %v9100_v13  ;;  %v9106_v13 = vcombine.low %v1703_v11, %v1739_v12  ;;  %v11620_v11 = vld [vmem:[%s14933_s4 + $0xc00] sm:$0xff]   ;;  %v11621_v12 = vld [vmem:[%s14933_s4 + $0xbc8] sm:$0xff]  }
 0x1c6   :  { %10335 = vmatpush3.bf16.msra.mxu0 %v11554_v21  ;;  %7501 = vmatmul.mubr.bf16.vlgmr.msra.gmra.mrb[52].mxu1 %v9102_v19  ;;  %v11590_v19 = vld [vmem:[%s14933_s4 + $0xa88] sm:$0xff]  }
 0x1c7   :  { %10357 = vmatpush3.bf16.msra.mxu1 %v11556_v23  ;;  %10336 = vmatprep.subr.bf16.mxu0 %v11557_v24  ;;  %v11592_v21 = vld [vmem:[%s14933_s4 + $0xb08] sm:$0xff]   ;;  %v11594_v23 = vld [vmem:[%s14933_s4 + $0xa90] sm:$0xff]  }
 0x1c8   :  { %10358 = vmatprep.subr.bf16.mxu1 %v11559_v26  ;;  %7541 = vmatprep.mubr.bf16.mxu0 %v9105_v8  ;;  %v11595_v24 = vld [vmem:[%s14933_s4 + $0xb50] sm:$0xff]   ;;  %v11597_v26 = vld [vmem:[%s14933_s4 + $0xad8] sm:$0xff]   ;;  %v9111_v8 = vcombine.high %v1705_v5, %v1741_v6 }
 0x1c9   :  { %7582 = vmatprep.mubr.bf16.mxu1 %v9107_v14  ;;  %v11623_v14 = vld [vmem:[%s14933_s4 + $0xc48] sm:$0xff]  }
 0x1ca   :  { %10337 = vmatpush3.bf16.msra.mxu0 %v11558_v25  ;;  %v11596_v25 = vld [vmem:[%s14933_s4 + $0xb10] sm:$0xff]  }
 0x1cb   :  { %10359 = vmatpush3.bf16.msra.mxu1 %v11560_v27  ;;  %10338 = vmatprep.subr.bf16.mxu0 %v11561_v28  ;;  %v11598_v28 = vld [vmem:[%s14933_s4 + $0xa98] sm:$0xff]  }
 0x1cc   :  { %10360 = vmatprep.subr.bf16.mxu1 %v11563_v30  ;;  %v11599_v30 = vld [vmem:[%s14933_s4 + $0xb58] sm:$0xff]  }
 0x1ce   :  { %10339 = vmatpush3.bf16.msra.mxu0 %v11562_v29 }
 0x1cf   :  { %10361 = vmatpush3.bf16.msra.mxu1 %v11564_v31  ;;  %10340 = vmatprep.subr.bf16.mxu0 %v11565_v32 }
 0x1d0   :  { %10362 = vmatprep.subr.bf16.mxu1 %v11567_v36 }
 0x1d2   :  { %10341 = vmatpush3.bf16.msra.mxu0 %v11566_v34 }
 0x1d3   :  { %10363 = vmatpush3.bf16.msra.mxu1 %v11568_v39  ;;  %10342 = vmatprep.subr.bf16.mxu0 %v11569_v41  ;;  %v11603_v41 = vld [vmem:[%s14933_s4 + $0xb60] sm:$0xff]  }
 0x1d4   :  { %10364 = vmatprep.subr.bf16.mxu1 %v11571_v47  ;;  %v11605_v47 = vld [vmem:[%s14933_s4 + $0xae8] sm:$0xff]  }
 0x1d5   :  { %v10042_v33 = vpop.f32.mrb[28].mxu0 }
 0x1d6   :  { %v10043_v35 = vpop.f32.mrb[29].mxu0  ;;  %10343 = vmatpush3.bf16.msra.mxu0 %v11570_v44  ;;  %v11604_v44 = vld [vmem:[%s14933_s4 + $0xb20] sm:$0xff]  }
 0x1d7   :  { %v10044_v37 = vadd.f32 %v10043_v35, %v10042_v33  ;;  %v10045_v38 = vpop.f32.mrb[30].mxu0  ;;  %v10064_v40 = vpop.f32.mrb[28].mxu1  ;;  %10365 = vmatpush3.bf16.msra.mxu1 %v11572_v50  ;;  %10344 = vmatprep.subr.bf16.mxu0 %v11573_v53  ;;  %v11600_v33 = vld [vmem:[%s14933_s4 + $0xb18] sm:$0xff]   ;;  %v11601_v35 = vld [vmem:[%s14933_s4 + $0xae0] sm:$0xff]   ;;  %v11606_v50 = vld [vmem:[%s14933_s4 + $0xaa8] sm:$0xff]  }
 0x1d8   :  { %v10046_v43 = vpop.f32.mrb[31].mxu0  ;;  %v10065_v46 = vpop.f32.mrb[29].mxu1  ;;  %10366 = vmatprep.subr.bf16.mxu1 %v11575_v57  ;;  %v11608_v53 = vld [vmem:[%s14933_s4 + $0xb28] sm:$0xff]   ;;  %v11612_v57 = vld [vmem:[%s14933_s4 + $0xb30] sm:$0xff]  }
 0x1d9   :  { %v6970_v42 = vadd.f32 %v10044_v37, %v13426_v61  ;;  %v10047_v45 = vadd.f32 %v10046_v43, %v10045_v38  ;;  %v10066_v48 = vadd.f32 %v10065_v46, %v10064_v40  ;;  %v10067_v49 = vpop.f32.mrb[30].mxu1  ;;  %v11577_v61 = vld [vmem:[%s14933_s4 + $0x9f0] sm:$0xff]   ;;  %v11602_v38 = vld [vmem:[%s14933_s4 + $0xaa0] sm:$0xff]  }
 0x1da   :  { %v10068_v52 = vpop.f32.mrb[31].mxu1  ;;  %10345 = vmatpush3.bf16.msra.mxu0 %v11574_v56  ;;  %v11611_v56 = vld [vmem:[%s14933_s4 + $0xb70] sm:$0xff]  }
 0x1db   :  { %v6973_v51 = vadd.f32 %v10047_v45, %v13434_v2  ;;  %v13540_v54 = vadd.f32 %v10066_v48, %v6970_v42  ;;  %v10069_v55 = vadd.f32 %v10068_v52, %v10067_v49  ;;  %10367 = vmatpush3.bf16.msra.mxu1 %v11576_v59  ;;  %10346 = vmatprep.subr.bf16.mxu0 %v11577_v61  ;;  %v11581_v2 = vld [vmem:[%s14933_s4 + $0x9f8] sm:$0xff]  }
 0x1dc   :  { %10368 = vmatprep.subr.bf16.mxu1 %v11579_v63  ;;  %v11614_v59 = vld [vmem:[%s14933_s4 + $0xab8] sm:$0xff]   ;;  %v1740_v63 = vld [vmem:[%s14934_s3 + $0x1c8] sm:$0xff] }
 0x1dd   :  { %v13548_v58 = vadd.f32 %v10069_v55, %v6973_v51  ;;  %v11607_v51 = vld [vmem:[%s14933_s4 + $0xb68] sm:$0xff]   ;;  %v11610_v55 = vld [vmem:[%s14933_s4 + $0xab0] sm:$0xff]   ;;  %v11615_v61 = vld [vmem:[%s14933_s4 + $0xb78] sm:$0xff]  }
 0x1de   :  { %10347 = vmatpush3.bf16.msra.mxu0 %v11578_v62  ;;  %v1704_v62 = vld [vmem:[%s14934_s3 + $0xa8] sm:$0xff] }
 0x1df   :  { %10369 = vmatpush3.bf16.msra.mxu1 %v11580_v0  ;;  %10348 = vmatprep.subr.bf16.mxu0 %v11581_v2  ;;  %v9108_v0 = vcombine.low %v1704_v62, %v1740_v63  ;;  %v9109_v2 = vcombine.high %v1704_v62, %v1740_v63  ;;  %v1707_v62 = vld [vmem:[%s14934_s3 + $0xc0] sm:$0xff] }
 0x1e0   :  { %10370 = vmatprep.subr.bf16.mxu1 %v11583_v4  ;;  %v11617_v4 = vld [vmem:[%s14933_s4 + $0xbc0] sm:$0xff]  }
 0x1e1   :  { %v1743_v63 = vld [vmem:[%s14934_s3 + $0x1e0] sm:$0xff] }
 0x1e2   :  { %10349 = vmatpush3.bf16.msra.mxu0 %v11582_v3  ;;  %v11616_v3 = vld [vmem:[%s14933_s4 + $0xb38] sm:$0xff]  }
 0x1e3   :  { %10371 = vmatpush3.bf16.msra.mxu1 %v11584_v9  ;;  %10378 = vmatprep.subr.bf16.mxu0 %v11585_v10  ;;  %v11618_v9 = vld [vmem:[%s14933_s4 + $0xb80] sm:$0xff]  }
 0x1e4   :  { %10400 = vmatprep.subr.bf16.mxu1 %v11587_v16  ;;  %v11619_v10 = vld [vmem:[%s14933_s4 + $0xc40] sm:$0xff]   ;;  %v11625_v16 = vld [vmem:[%s14933_s4 + $0xbd0] sm:$0xff]  }
 0x1e5   :  { %7542 = vmatmul.mubr.bf16.vlgmr.msra.gmra.mrb[56].mxu0 %v9104_v7  ;;  %v9110_v7 = vcombine.low %v1705_v5, %v1741_v6  ;;  %v11652_v5 = vld [vmem:[%s14933_s4 + $0xd00] sm:$0xff]   ;;  %v11653_v6 = vld [vmem:[%s14933_s4 + $0xcc8] sm:$0xff]  }
 0x1e6   :  { %10379 = vmatpush3.bf16.msra.mxu0 %v11586_v15  ;;  %7583 = vmatmul.mubr.bf16.vlgmr.msra.gmra.mrb[56].mxu1 %v9106_v13  ;;  %v11622_v13 = vld [vmem:[%s14933_s4 + $0xb88] sm:$0xff]  }
 0x1e7   :  { %10401 = vmatpush3.bf16.msra.mxu1 %v11588_v17  ;;  %10380 = vmatprep.subr.bf16.mxu0 %v11589_v18  ;;  %v11624_v15 = vld [vmem:[%s14933_s4 + $0xc08] sm:$0xff]   ;;  %v11626_v17 = vld [vmem:[%s14933_s4 + $0xb90] sm:$0xff]  }
 0x1e8   :  { %10402 = vmatprep.subr.bf16.mxu1 %v11591_v20  ;;  %7623 = vmatprep.mubr.bf16.mxu0 %v9109_v2  ;;  %v11627_v18 = vld [vmem:[%s14933_s4 + $0xc50] sm:$0xff]   ;;  %v11629_v20 = vld [vmem:[%s14933_s4 + $0xbd8] sm:$0xff]   ;;  %v9115_v2 = vcombine.high %v1707_v62, %v1743_v63 }
 0x1e9   :  { %7664 = vmatprep.mubr.bf16.mxu1 %v9111_v8  ;;  %v11655_v8 = vld [vmem:[%s14933_s4 + $0xd48] sm:$0xff]  }
 0x1ea   :  { %10381 = vmatpush3.bf16.msra.mxu0 %v11590_v19  ;;  %v11628_v19 = vld [vmem:[%s14933_s4 + $0xc10] sm:$0xff]  }
 0x1eb   :  { %10403 = vmatpush3.bf16.msra.mxu1 %v11592_v21  ;;  %10382 = vmatprep.subr.bf16.mxu0 %v11593_v22  ;;  %v11630_v22 = vld [vmem:[%s14933_s4 + $0xb98] sm:$0xff]  }
 0x1ec   :  { %10404 = vmatprep.subr.bf16.mxu1 %v11595_v24  ;;  %v11631_v24 = vld [vmem:[%s14933_s4 + $0xc58] sm:$0xff]  }
 0x1ee   :  { %10383 = vmatpush3.bf16.msra.mxu0 %v11594_v23 }
 0x1ef   :  { %10405 = vmatpush3.bf16.msra.mxu1 %v11596_v25  ;;  %10384 = vmatprep.subr.bf16.mxu0 %v11597_v26 }
 0x1f0   :  { %10406 = vmatprep.subr.bf16.mxu1 %v11599_v30 }
 0x1f2   :  { %10385 = vmatpush3.bf16.msra.mxu0 %v11598_v28 }
 0x1f3   :  { %10407 = vmatpush3.bf16.msra.mxu1 %v11600_v33  ;;  %10386 = vmatprep.subr.bf16.mxu0 %v11601_v35  ;;  %v11635_v35 = vld [vmem:[%s14933_s4 + $0xc60] sm:$0xff]  }
 0x1f4   :  { %10408 = vmatprep.subr.bf16.mxu1 %v11603_v41  ;;  %v11637_v41 = vld [vmem:[%s14933_s4 + $0xbe8] sm:$0xff]  }
 0x1f5   :  { %v10086_v27 = vpop.f32.mrb[32].mxu0 }
 0x1f6   :  { %v10087_v29 = vpop.f32.mrb[33].mxu0  ;;  %10387 = vmatpush3.bf16.msra.mxu0 %v11602_v38  ;;  %v11636_v38 = vld [vmem:[%s14933_s4 + $0xc20] sm:$0xff]  }
 0x1f7   :  { %v10088_v31 = vadd.f32 %v10087_v29, %v10086_v27  ;;  %v10089_v32 = vpop.f32.mrb[34].mxu0  ;;  %v10108_v34 = vpop.f32.mrb[32].mxu1  ;;  %10409 = vmatpush3.bf16.msra.mxu1 %v11604_v44  ;;  %10388 = vmatprep.subr.bf16.mxu0 %v11605_v47  ;;  %v11632_v27 = vld [vmem:[%s14933_s4 + $0xc18] sm:$0xff]   ;;  %v11633_v29 = vld [vmem:[%s14933_s4 + $0xbe0] sm:$0xff]   ;;  %v11638_v44 = vld [vmem:[%s14933_s4 + $0xba8] sm:$0xff]  }
 0x1f8   :  { %v10090_v37 = vpop.f32.mrb[35].mxu0  ;;  %v10109_v40 = vpop.f32.mrb[33].mxu1  ;;  %10410 = vmatprep.subr.bf16.mxu1 %v11607_v51  ;;  %v11640_v47 = vld [vmem:[%s14933_s4 + $0xc28] sm:$0xff]   ;;  %v11644_v51 = vld [vmem:[%s14933_s4 + $0xc30] sm:$0xff]  }
 0x1f9   :  { %v7052_v36 = vadd.f32 %v10088_v31, %v13540_v54  ;;  %v10091_v39 = vadd.f32 %v10090_v37, %v10089_v32  ;;  %v10110_v42 = vadd.f32 %v10109_v40, %v10108_v34  ;;  %v10111_v43 = vpop.f32.mrb[34].mxu1  ;;  %v11609_v54 = vld [vmem:[%s14933_s4 + $0xaf0] sm:$0xff]   ;;  %v11634_v32 = vld [vmem:[%s14933_s4 + $0xba0] sm:$0xff]  }
 0x1fa   :  { %v10112_v46 = vpop.f32.mrb[35].mxu1  ;;  %10389 = vmatpush3.bf16.msra.mxu0 %v11606_v50  ;;  %v11643_v50 = vld [vmem:[%s14933_s4 + $0xc70] sm:$0xff]  }
 0x1fb   :  { %v7055_v45 = vadd.f32 %v10091_v39, %v13548_v58  ;;  %v13654_v48 = vadd.f32 %v10110_v42, %v7052_v36  ;;  %v10113_v49 = vadd.f32 %v10112_v46, %v10111_v43  ;;  %10411 = vmatpush3.bf16.msra.mxu1 %v11608_v53  ;;  %10390 = vmatprep.subr.bf16.mxu0 %v11609_v54  ;;  %v11613_v58 = vld [vmem:[%s14933_s4 + $0xaf8] sm:$0xff]  }
 0x1fc   :  { %10412 = vmatprep.subr.bf16.mxu1 %v11611_v56  ;;  %v11646_v53 = vld [vmem:[%s14933_s4 + $0xbb8] sm:$0xff]  }
 0x1fd   :  { %v13662_v52 = vadd.f32 %v10113_v49, %v7055_v45  ;;  %v11639_v45 = vld [vmem:[%s14933_s4 + $0xc68] sm:$0xff]   ;;  %v11642_v49 = vld [vmem:[%s14933_s4 + $0xbb0] sm:$0xff]   ;;  %v11647_v54 = vld [vmem:[%s14933_s4 + $0xc78] sm:$0xff]  }
 0x1fe   :  { %10391 = vmatpush3.bf16.msra.mxu0 %v11610_v55  ;;  %v1706_v55 = vld [vmem:[%s14934_s3 + $0xb8] sm:$0xff] }
 0x1ff   :  { %10413 = vmatpush3.bf16.msra.mxu1 %v11612_v57  ;;  %10392 = vmatprep.subr.bf16.mxu0 %v11613_v58  ;;  %v1742_v56 = vld [vmem:[%s14934_s3 + $0x1d8] sm:$0xff] }
 0x200   :  { %10414 = vmatprep.subr.bf16.mxu1 %v11615_v61  ;;  %v9112_v57 = vcombine.low %v1706_v55, %v1742_v56  ;;  %v9113_v58 = vcombine.high %v1706_v55, %v1742_v56  ;;  %v11649_v61 = vld [vmem:[%s14933_s4 + $0xcc0] sm:$0xff]   ;;  %v1709_v55 = vld [vmem:[%s14934_s3 + $0xd0] sm:$0xff] }
 0x201   :  { %v1745_v56 = vld [vmem:[%s14934_s3 + $0x1f0] sm:$0xff] }
 0x202   :  { %10393 = vmatpush3.bf16.msra.mxu0 %v11614_v59  ;;  %v11648_v59 = vld [vmem:[%s14933_s4 + $0xc38] sm:$0xff]  }
 0x203   :  { %10415 = vmatpush3.bf16.msra.mxu1 %v11616_v3  ;;  %10422 = vmatprep.subr.bf16.mxu0 %v11617_v4  ;;  %v11650_v3 = vld [vmem:[%s14933_s4 + $0xc80] sm:$0xff]  }
 0x204   :  { %10444 = vmatprep.subr.bf16.mxu1 %v11619_v10  ;;  %v11651_v4 = vld [vmem:[%s14933_s4 + $0xd40] sm:$0xff]   ;;  %v11657_v10 = vld [vmem:[%s14933_s4 + $0xcd0] sm:$0xff]  }
 0x205   :  { %7624 = vmatmul.mubr.bf16.vlgmr.msra.gmra.mrb[60].mxu0 %v9108_v0  ;;  %v9114_v0 = vcombine.low %v1707_v62, %v1743_v63  ;;  %v11684_v62 = vld [vmem:[%s14933_s4 + $0xe00] sm:$0xff]   ;;  %v11685_v63 = vld [vmem:[%s14933_s4 + $0xdc8] sm:$0xff]  }
 0x206   :  { %10423 = vmatpush3.bf16.msra.mxu0 %v11618_v9  ;;  %7665 = vmatmul.mubr.bf16.vlgmr.msra.gmra.mrb[60].mxu1 %v9110_v7  ;;  %v11654_v7 = vld [vmem:[%s14933_s4 + $0xc88] sm:$0xff]  }
 0x207   :  { %10445 = vmatpush3.bf16.msra.mxu1 %v11620_v11  ;;  %10424 = vmatprep.subr.bf16.mxu0 %v11621_v12  ;;  %v11656_v9 = vld [vmem:[%s14933_s4 + $0xd08] sm:$0xff]   ;;  %v11658_v11 = vld [vmem:[%s14933_s4 + $0xc90] sm:$0xff]  }
 0x208   :  { %10446 = vmatprep.subr.bf16.mxu1 %v11623_v14  ;;  %7705 = vmatprep.mubr.bf16.mxu0 %v9113_v58  ;;  %v11659_v12 = vld [vmem:[%s14933_s4 + $0xd50] sm:$0xff]   ;;  %v11661_v14 = vld [vmem:[%s14933_s4 + $0xcd8] sm:$0xff]   ;;  %v9119_v58 = vcombine.high %v1709_v55, %v1745_v56 }
 0x209   :  { %7746 = vmatprep.mubr.bf16.mxu1 %v9115_v2  ;;  %v11687_v2 = vld [vmem:[%s14933_s4 + $0xe48] sm:$0xff]  }
 0x20a   :  { %10425 = vmatpush3.bf16.msra.mxu0 %v11622_v13  ;;  %v11660_v13 = vld [vmem:[%s14933_s4 + $0xd10] sm:$0xff]  }
 0x20b   :  { %10447 = vmatpush3.bf16.msra.mxu1 %v11624_v15  ;;  %10426 = vmatprep.subr.bf16.mxu0 %v11625_v16  ;;  %v11662_v16 = vld [vmem:[%s14933_s4 + $0xc98] sm:$0xff]  }
 0x20c   :  { %10448 = vmatprep.subr.bf16.mxu1 %v11627_v18  ;;  %v11663_v18 = vld [vmem:[%s14933_s4 + $0xd58] sm:$0xff]  }
 0x20e   :  { %10427 = vmatpush3.bf16.msra.mxu0 %v11626_v17 }
 0x20f   :  { %10449 = vmatpush3.bf16.msra.mxu1 %v11628_v19  ;;  %10428 = vmatprep.subr.bf16.mxu0 %v11629_v20 }
 0x210   :  { %10450 = vmatprep.subr.bf16.mxu1 %v11631_v24 }
 0x212   :  { %10429 = vmatpush3.bf16.msra.mxu0 %v11630_v22 }
 0x213   :  { %10451 = vmatpush3.bf16.msra.mxu1 %v11632_v27  ;;  %10430 = vmatprep.subr.bf16.mxu0 %v11633_v29  ;;  %v11667_v29 = vld [vmem:[%s14933_s4 + $0xd60] sm:$0xff]  }
 0x214   :  { %10452 = vmatprep.subr.bf16.mxu1 %v11635_v35  ;;  %v11669_v35 = vld [vmem:[%s14933_s4 + $0xce8] sm:$0xff]  }
 0x216   :  { %10431 = vmatpush3.bf16.msra.mxu0 %v11634_v32  ;;  %v11668_v32 = vld [vmem:[%s14933_s4 + $0xd20] sm:$0xff]  }
 0x217   :  { %v10152_v28 = vpop.f32.mrb[36].mxu1  ;;  %10453 = vmatpush3.bf16.msra.mxu1 %v11636_v38  ;;  %10432 = vmatprep.subr.bf16.mxu0 %v11637_v41  ;;  %v11670_v38 = vld [vmem:[%s14933_s4 + $0xca8] sm:$0xff]  }
 0x218   :  { %v10130_v21 = vpop.f32.mrb[36].mxu0  ;;  %v10153_v34 = vpop.f32.mrb[37].mxu1  ;;  %10454 = vmatprep.subr.bf16.mxu1 %v11639_v45  ;;  %v11672_v41 = vld [vmem:[%s14933_s4 + $0xd28] sm:$0xff]   ;;  %v11676_v45 = vld [vmem:[%s14933_s4 + $0xd30] sm:$0xff]  }
 0x219   :  { %v10131_v23 = vpop.f32.mrb[37].mxu0  ;;  %v10154_v36 = vadd.f32 %v10153_v34, %v10152_v28  ;;  %v10155_v37 = vpop.f32.mrb[38].mxu1 }
 0x21a   :  { %v10132_v25 = vadd.f32 %v10131_v23, %v10130_v21  ;;  %v10133_v26 = vpop.f32.mrb[38].mxu0  ;;  %v10156_v40 = vpop.f32.mrb[39].mxu1  ;;  %10433 = vmatpush3.bf16.msra.mxu0 %v11638_v44  ;;  %v11664_v21 = vld [vmem:[%s14933_s4 + $0xd18] sm:$0xff]   ;;  %v11665_v23 = vld [vmem:[%s14933_s4 + $0xce0] sm:$0xff]   ;;  %v11675_v44 = vld [vmem:[%s14933_s4 + $0xd70] sm:$0xff]  }
 0x21b   :  { %v10134_v31 = vpop.f32.mrb[39].mxu0  ;;  %v10157_v43 = vadd.f32 %v10156_v40, %v10155_v37  ;;  %10455 = vmatpush3.bf16.msra.mxu1 %v11640_v47  ;;  %v11678_v47 = vld [vmem:[%s14933_s4 + $0xcb8] sm:$0xff]  }
 0x21c   :  { %v7134_v30 = vadd.f32 %v10132_v25, %v13654_v48  ;;  %v10135_v33 = vadd.f32 %v10134_v31, %v10133_v26  ;;  %v11641_v48 = vld [vmem:[%s14933_s4 + $0xbf0] sm:$0xff]   ;;  %10456 = vmatprep.subr.bf16.mxu1 %v11643_v50  ;;  %v11666_v26 = vld [vmem:[%s14933_s4 + $0xca0] sm:$0xff]   ;;  %v1744_v50 = vld [vmem:[%s14934_s3 + $0x1e8] sm:$0xff] }
 0x21d   :  { %10434 = vmatprep.subr.bf16.mxu0 %v11641_v48  ;;  %v11679_v48 = vld [vmem:[%s14933_s4 + $0xd78] sm:$0xff]  }
 0x21e   :  { %v7137_v39 = vadd.f32 %v10135_v33, %v13662_v52  ;;  %v13768_v42 = vadd.f32 %v10154_v36, %v7134_v30  ;;  %10435 = vmatpush3.bf16.msra.mxu0 %v11642_v49  ;;  %v11645_v52 = vld [vmem:[%s14933_s4 + $0xbf8] sm:$0xff]   ;;  %v1708_v49 = vld [vmem:[%s14934_s3 + $0xc8] sm:$0xff] }
 0x21f   :  { %10457 = vmatpush3.bf16.msra.mxu1 %v11644_v51  ;;  %10436 = vmatprep.subr.bf16.mxu0 %v11645_v52  ;;  %v9116_v51 = vcombine.low %v1708_v49, %v1744_v50  ;;  %v9117_v52 = vcombine.high %v1708_v49, %v1744_v50  ;;  %v1711_v49 = vld [vmem:[%s14934_s3 + $0xe0] sm:$0xff] }
 0x220   :  { %v13776_v46 = vadd.f32 %v10157_v43, %v7137_v39  ;;  %10458 = vmatprep.subr.bf16.mxu1 %v11647_v54  ;;  %v11671_v39 = vld [vmem:[%s14933_s4 + $0xd68] sm:$0xff]   ;;  %v11674_v43 = vld [vmem:[%s14933_s4 + $0xcb0] sm:$0xff]   ;;  %v11681_v54 = vld [vmem:[%s14933_s4 + $0xdc0] sm:$0xff]  }
 0x221   :  { %v1747_v50 = vld [vmem:[%s14934_s3 + $0x200] sm:$0xff] }
 0x222   :  { %10437 = vmatpush3.bf16.msra.mxu0 %v11646_v53  ;;  %v11680_v53 = vld [vmem:[%s14933_s4 + $0xd38] sm:$0xff]  }
 0x223   :  { %10459 = vmatpush3.bf16.msra.mxu1 %v11648_v59  ;;  %10466 = vmatprep.subr.bf16.mxu0 %v11649_v61  ;;  %v11682_v59 = vld [vmem:[%s14933_s4 + $0xd80] sm:$0xff]  }
 0x224   :  { %10488 = vmatprep.subr.bf16.mxu1 %v11651_v4  ;;  %v11683_v61 = vld [vmem:[%s14933_s4 + $0xe40] sm:$0xff]   ;;  %v11689_v4 = vld [vmem:[%s14933_s4 + $0xdd0] sm:$0xff]  }
 0x225   :  { %7706 = vmatmul.mubr.bf16.vlgmr.msra.gmra.mrb[64].mxu0 %v9112_v57  ;;  %v9118_v57 = vcombine.low %v1709_v55, %v1745_v56  ;;  %v11716_v55 = vld [vmem:[%s14933_s4 + $0xf00] sm:$0xff]   ;;  %v11717_v56 = vld [vmem:[%s14933_s4 + $0xec8] sm:$0xff]  }
 0x226   :  { %10467 = vmatpush3.bf16.msra.mxu0 %v11650_v3  ;;  %7747 = vmatmul.mubr.bf16.vlgmr.msra.gmra.mrb[64].mxu1 %v9114_v0  ;;  %v11686_v0 = vld [vmem:[%s14933_s4 + $0xd88] sm:$0xff]  }
 0x227   :  { %10489 = vmatpush3.bf16.msra.mxu1 %v11652_v5  ;;  %10468 = vmatprep.subr.bf16.mxu0 %v11653_v6  ;;  %v11688_v3 = vld [vmem:[%s14933_s4 + $0xe08] sm:$0xff]   ;;  %v11690_v5 = vld [vmem:[%s14933_s4 + $0xd90] sm:$0xff]  }
 0x228   :  { %10490 = vmatprep.subr.bf16.mxu1 %v11655_v8  ;;  %7787 = vmatprep.mubr.bf16.mxu0 %v9117_v52  ;;  %v11691_v6 = vld [vmem:[%s14933_s4 + $0xe50] sm:$0xff]   ;;  %v11693_v8 = vld [vmem:[%s14933_s4 + $0xdd8] sm:$0xff]   ;;  %v9123_v52 = vcombine.high %v1711_v49, %v1747_v50 }
 0x229   :  { %7828 = vmatprep.mubr.bf16.mxu1 %v9119_v58  ;;  %v11719_v58 = vld [vmem:[%s14933_s4 + $0xf48] sm:$0xff]  }
 0x22a   :  { %10469 = vmatpush3.bf16.msra.mxu0 %v11654_v7  ;;  %v11692_v7 = vld [vmem:[%s14933_s4 + $0xe10] sm:$0xff]  }
 0x22b   :  { %10491 = vmatpush3.bf16.msra.mxu1 %v11656_v9  ;;  %10470 = vmatprep.subr.bf16.mxu0 %v11657_v10  ;;  %v11694_v10 = vld [vmem:[%s14933_s4 + $0xd98] sm:$0xff]  }
 0x22c   :  { %10492 = vmatprep.subr.bf16.mxu1 %v11659_v12  ;;  %v11695_v12 = vld [vmem:[%s14933_s4 + $0xe58] sm:$0xff]  }
 0x22e   :  { %10471 = vmatpush3.bf16.msra.mxu0 %v11658_v11 }
 0x22f   :  { %10493 = vmatpush3.bf16.msra.mxu1 %v11660_v13  ;;  %10472 = vmatprep.subr.bf16.mxu0 %v11661_v14 }
 0x230   :  { %10494 = vmatprep.subr.bf16.mxu1 %v11663_v18 }
 0x232   :  { %10473 = vmatpush3.bf16.msra.mxu0 %v11662_v16 }
 0x233   :  { %10495 = vmatpush3.bf16.msra.mxu1 %v11664_v21  ;;  %10474 = vmatprep.subr.bf16.mxu0 %v11665_v23  ;;  %v11699_v23 = vld [vmem:[%s14933_s4 + $0xe60] sm:$0xff]  }
 0x234   :  { %10496 = vmatprep.subr.bf16.mxu1 %v11667_v29  ;;  %v11701_v29 = vld [vmem:[%s14933_s4 + $0xde8] sm:$0xff]  }
 0x236   :  { %10475 = vmatpush3.bf16.msra.mxu0 %v11666_v26  ;;  %v11700_v26 = vld [vmem:[%s14933_s4 + $0xe20] sm:$0xff]  }
 0x237   :  { %10497 = vmatpush3.bf16.msra.mxu1 %v11668_v32  ;;  %10476 = vmatprep.subr.bf16.mxu0 %v11669_v35  ;;  %v11702_v32 = vld [vmem:[%s14933_s4 + $0xda8] sm:$0xff]  }
 0x238   :  { %v10174_v15 = vpop.f32.mrb[40].mxu0  ;;  %10498 = vmatprep.subr.bf16.mxu1 %v11671_v39  ;;  %v11704_v35 = vld [vmem:[%s14933_s4 + $0xe28] sm:$0xff]   ;;  %v11708_v39 = vld [vmem:[%s14933_s4 + $0xe30] sm:$0xff]  }
 0x239   :  { %v10175_v17 = vpop.f32.mrb[41].mxu0  ;;  %v10196_v22 = vpop.f32.mrb[40].mxu1 }
 0x23a   :  { %v10176_v19 = vadd.f32 %v10175_v17, %v10174_v15  ;;  %v10177_v20 = vpop.f32.mrb[42].mxu0  ;;  %v10197_v28 = vpop.f32.mrb[41].mxu1  ;;  %10477 = vmatpush3.bf16.msra.mxu0 %v11670_v38  ;;  %v11696_v15 = vld [vmem:[%s14933_s4 + $0xe18] sm:$0xff]   ;;  %v11697_v17 = vld [vmem:[%s14933_s4 + $0xde0] sm:$0xff]   ;;  %v11707_v38 = vld [vmem:[%s14933_s4 + $0xe70] sm:$0xff]  }
 0x23b   :  { %v10178_v25 = vpop.f32.mrb[43].mxu0  ;;  %v10198_v30 = vadd.f32 %v10197_v28, %v10196_v22  ;;  %v10199_v31 = vpop.f32.mrb[42].mxu1  ;;  %10499 = vmatpush3.bf16.msra.mxu1 %v11672_v41  ;;  %v11710_v41 = vld [vmem:[%s14933_s4 + $0xdb8] sm:$0xff]  }
 0x23c   :  { %v7216_v24 = vadd.f32 %v10176_v19, %v13768_v42  ;;  %v10179_v27 = vadd.f32 %v10178_v25, %v10177_v20  ;;  %v10200_v34 = vpop.f32.mrb[43].mxu1  ;;  %v11673_v42 = vld [vmem:[%s14933_s4 + $0xcf0] sm:$0xff]   ;;  %10500 = vmatprep.subr.bf16.mxu1 %v11675_v44  ;;  %v11698_v20 = vld [vmem:[%s14933_s4 + $0xda0] sm:$0xff]   ;;  %v1746_v44 = vld [vmem:[%s14934_s3 + $0x1f8] sm:$0xff] }
 0x23d   :  { %v10201_v37 = vadd.f32 %v10200_v34, %v10199_v31  ;;  %10478 = vmatprep.subr.bf16.mxu0 %v11673_v42  ;;  %v11711_v42 = vld [vmem:[%s14933_s4 + $0xe78] sm:$0xff]  }
 0x23e   :  { %v7219_v33 = vadd.f32 %v10179_v27, %v13776_v46  ;;  %v13882_v36 = vadd.f32 %v10198_v30, %v7216_v24  ;;  %10479 = vmatpush3.bf16.msra.mxu0 %v11674_v43  ;;  %v11677_v46 = vld [vmem:[%s14933_s4 + $0xcf8] sm:$0xff]  }
 0x23f   :  { %10501 = vmatpush3.bf16.msra.mxu1 %v11676_v45  ;;  %10480 = vmatprep.subr.bf16.mxu0 %v11677_v46  ;;  %v1710_v43 = vld [vmem:[%s14934_s3 + $0xd8] sm:$0xff] }
 0x240   :  { %v13890_v40 = vadd.f32 %v10201_v37, %v7219_v33  ;;  %10502 = vmatprep.subr.bf16.mxu1 %v11679_v48  ;;  %v11703_v33 = vld [vmem:[%s14933_s4 + $0xe68] sm:$0xff]   ;;  %v11706_v37 = vld [vmem:[%s14933_s4 + $0xdb0] sm:$0xff]   ;;  %v9120_v45 = vcombine.low %v1710_v43, %v1746_v44  ;;  %v9121_v46 = vcombine.high %v1710_v43, %v1746_v44  ;;  %v11713_v48 = vld [vmem:[%s14933_s4 + $0xec0] sm:$0xff]  }
 0x241   :  { %v1713_v43 = vld [vmem:[%s14934_s3 + $0xf0] sm:$0xff] }
 0x242   :  { %10481 = vmatpush3.bf16.msra.mxu0 %v11678_v47  ;;  %v11712_v47 = vld [vmem:[%s14933_s4 + $0xe38] sm:$0xff]   ;;  %v1749_v44 = vld [vmem:[%s14934_s3 + $0x210] sm:$0xff] }
 0x243   :  { %10503 = vmatpush3.bf16.msra.mxu1 %v11680_v53  ;;  %10510 = vmatprep.subr.bf16.mxu0 %v11681_v54  ;;  %v11714_v53 = vld [vmem:[%s14933_s4 + $0xe80] sm:$0xff]  }
 0x244   :  { %10532 = vmatprep.subr.bf16.mxu1 %v11683_v61  ;;  %v11715_v54 = vld [vmem:[%s14933_s4 + $0xf40] sm:$0xff]   ;;  %v11721_v61 = vld [vmem:[%s14933_s4 + $0xed0] sm:$0xff]  }
 0x245   :  { %7788 = vmatmul.mubr.bf16.vlgmr.msra.gmra.mrb[68].mxu0 %v9116_v51  ;;  %v9122_v51 = vcombine.low %v1711_v49, %v1747_v50  ;;  %v11748_v49 = vld [vmem:[%s14933_s4 + $0x1000] sm:$0xff]   ;;  %v11749_v50 = vld [vmem:[%s14933_s4 + $0xfc8] sm:$0xff]  }
 0x246   :  { %10511 = vmatpush3.bf16.msra.mxu0 %v11682_v59  ;;  %7829 = vmatmul.mubr.bf16.vlgmr.msra.gmra.mrb[68].mxu1 %v9118_v57  ;;  %v11718_v57 = vld [vmem:[%s14933_s4 + $0xe88] sm:$0xff]  }
 0x247   :  { %10533 = vmatpush3.bf16.msra.mxu1 %v11684_v62  ;;  %10512 = vmatprep.subr.bf16.mxu0 %v11685_v63  ;;  %v11720_v59 = vld [vmem:[%s14933_s4 + $0xf08] sm:$0xff]   ;;  %v11722_v62 = vld [vmem:[%s14933_s4 + $0xe90] sm:$0xff]  }
 0x248   :  { %10534 = vmatprep.subr.bf16.mxu1 %v11687_v2  ;;  %7869 = vmatprep.mubr.bf16.mxu0 %v9121_v46  ;;  %v11723_v63 = vld [vmem:[%s14933_s4 + $0xf50] sm:$0xff]   ;;  %v11725_v2 = vld [vmem:[%s14933_s4 + $0xed8] sm:$0xff]   ;;  %v9127_v46 = vcombine.high %v1713_v43, %v1749_v44 }
 0x249   :  { %7910 = vmatprep.mubr.bf16.mxu1 %v9123_v52  ;;  %v11751_v52 = vld [vmem:[%s14933_s4 + $0x1048] sm:$0xff]  }
 0x24a   :  { %10513 = vmatpush3.bf16.msra.mxu0 %v11686_v0  ;;  %v11724_v0 = vld [vmem:[%s14933_s4 + $0xf10] sm:$0xff]  }
 0x24b   :  { %10535 = vmatpush3.bf16.msra.mxu1 %v11688_v3  ;;  %10514 = vmatprep.subr.bf16.mxu0 %v11689_v4  ;;  %v11726_v3 = vld [vmem:[%s14933_s4 + $0xe98] sm:$0xff]  }
 0x24c   :  { %10536 = vmatprep.subr.bf16.mxu1 %v11691_v6 }
 0x24e   :  { %10515 = vmatpush3.bf16.msra.mxu0 %v11690_v5  ;;  %v11727_v5 = vld [vmem:[%s14933_s4 + $0xf58] sm:$0xff]  }
 0x24f   :  { %10537 = vmatpush3.bf16.msra.mxu1 %v11692_v7  ;;  %10516 = vmatprep.subr.bf16.mxu0 %v11693_v8  ;;  %v11728_v7 = vld [vmem:[%s14933_s4 + $0xf18] sm:$0xff]  }
 0x250   :  { %10538 = vmatprep.subr.bf16.mxu1 %v11695_v12  ;;  %v11730_v12 = vld [vmem:[%s14933_s4 + $0xea0] sm:$0xff]  }
 0x252   :  { %10517 = vmatpush3.bf16.msra.mxu0 %v11694_v10  ;;  %v11729_v10 = vld [vmem:[%s14933_s4 + $0xee0] sm:$0xff]  }
 0x253   :  { %10539 = vmatpush3.bf16.msra.mxu1 %v11696_v15  ;;  %10518 = vmatprep.subr.bf16.mxu0 %v11697_v17  ;;  %v11731_v15 = vld [vmem:[%s14933_s4 + $0xf60] sm:$0xff]  }
 0x254   :  { %10540 = vmatprep.subr.bf16.mxu1 %v11699_v23 }
 0x256   :  { %10519 = vmatpush3.bf16.msra.mxu0 %v11698_v20 }
 0x257   :  { %10541 = vmatpush3.bf16.msra.mxu1 %v11700_v26  ;;  %10520 = vmatprep.subr.bf16.mxu0 %v11701_v29 }
 0x258   :  { %v10218_v9 = vpop.f32.mrb[44].mxu0  ;;  %10542 = vmatprep.subr.bf16.mxu1 %v11703_v33  ;;  %v11740_v33 = vld [vmem:[%s14933_s4 + $0xf30] sm:$0xff]  }
 0x259   :  { %v10219_v11 = vpop.f32.mrb[45].mxu0  ;;  %v10240_v16 = vpop.f32.mrb[44].mxu1 }
 0x25a   :  { %v10220_v13 = vadd.f32 %v10219_v11, %v10218_v9  ;;  %v10221_v14 = vpop.f32.mrb[46].mxu0  ;;  %v10241_v22 = vpop.f32.mrb[45].mxu1  ;;  %10521 = vmatpush3.bf16.msra.mxu0 %v11702_v32  ;;  %v11739_v32 = vld [vmem:[%s14933_s4 + $0xf70] sm:$0xff]  }
 0x25b   :  { %v10222_v19 = vpop.f32.mrb[47].mxu0  ;;  %v10242_v24 = vadd.f32 %v10241_v22, %v10240_v16  ;;  %v10243_v25 = vpop.f32.mrb[46].mxu1  ;;  %10543 = vmatpush3.bf16.msra.mxu1 %v11704_v35  ;;  %v11742_v35 = vld [vmem:[%s14933_s4 + $0xeb8] sm:$0xff]  }
 0x25c   :  { %v7298_v18 = vadd.f32 %v10220_v13, %v13882_v36  ;;  %v10223_v21 = vadd.f32 %v10222_v19, %v10221_v14  ;;  %v10244_v28 = vpop.f32.mrb[47].mxu1  ;;  %v11705_v36 = vld [vmem:[%s14933_s4 + $0xdf0] sm:$0xff]   ;;  %10544 = vmatprep.subr.bf16.mxu1 %v11707_v38  ;;  %v1748_v38 = vld [vmem:[%s14934_s3 + $0x208] sm:$0xff] }
 0x25d   :  { %v10245_v31 = vadd.f32 %v10244_v28, %v10243_v25  ;;  %10522 = vmatprep.subr.bf16.mxu0 %v11705_v36  ;;  %v11736_v28 = vld [vmem:[%s14933_s4 + $0xf28] sm:$0xff]   ;;  %v11743_v36 = vld [vmem:[%s14933_s4 + $0xf78] sm:$0xff]  }
 0x25e   :  { %v7301_v27 = vadd.f32 %v10223_v21, %v13890_v40  ;;  %v13996_v30 = vadd.f32 %v10242_v24, %v7298_v18  ;;  %10523 = vmatpush3.bf16.msra.mxu0 %v11706_v37  ;;  %v11709_v40 = vld [vmem:[%s14933_s4 + $0xdf8] sm:$0xff]   ;;  %v11732_v18 = vld [vmem:[%s14933_s4 + $0xf20] sm:$0xff]   ;;  %v11733_v21 = vld [vmem:[%s14933_s4 + $0xee8] sm:$0xff]  }
 0x25f   :  { %10545 = vmatpush3.bf16.msra.mxu1 %v11708_v39  ;;  %10524 = vmatprep.subr.bf16.mxu0 %v11709_v40  ;;  %v11734_v24 = vld [vmem:[%s14933_s4 + $0xea8] sm:$0xff]  }
 0x260   :  { %v14004_v34 = vadd.f32 %v10245_v31, %v7301_v27  ;;  %10546 = vmatprep.subr.bf16.mxu1 %v11711_v42  ;;  %v11735_v27 = vld [vmem:[%s14933_s4 + $0xf68] sm:$0xff]   ;;  %v11738_v31 = vld [vmem:[%s14933_s4 + $0xeb0] sm:$0xff]   ;;  %v11745_v42 = vld [vmem:[%s14933_s4 + $0xfc0] sm:$0xff]  }
 0x261   :  { %v1712_v37 = vld [vmem:[%s14934_s3 + $0xe8] sm:$0xff] }
 0x262   :  { %10525 = vmatpush3.bf16.msra.mxu0 %v11710_v41  ;;  %v9124_v39 = vcombine.low %v1712_v37, %v1748_v38  ;;  %v9125_v40 = vcombine.high %v1712_v37, %v1748_v38  ;;  %v11744_v41 = vld [vmem:[%s14933_s4 + $0xf38] sm:$0xff]   ;;  %v1715_v37 = vld [vmem:[%s14934_s3 + $0x100] sm:$0xff] }
 0x263   :  { %10547 = vmatpush3.bf16.msra.mxu1 %v11712_v47  ;;  %10554 = vmatprep.subr.bf16.mxu0 %v11713_v48  ;;  %v11746_v47 = vld [vmem:[%s14933_s4 + $0xf80] sm:$0xff]  }
 0x264   :  { %10576 = vmatprep.subr.bf16.mxu1 %v11715_v54  ;;  %v11747_v48 = vld [vmem:[%s14933_s4 + $0x1040] sm:$0xff]   ;;  %v11753_v54 = vld [vmem:[%s14933_s4 + $0xfd0] sm:$0xff]  }
 0x265   :  { %7870 = vmatmul.mubr.bf16.vlgmr.msra.gmra.mrb[72].mxu0 %v9120_v45  ;;  %v9126_v45 = vcombine.low %v1713_v43, %v1749_v44  ;;  %v1751_v38 = vld [vmem:[%s14934_s3 + $0x220] sm:$0xff]  ;;  %v11781_v44 = vld [vmem:[%s14933_s4 + $0x10c8] sm:$0xff]  }
 0x266   :  { %10555 = vmatpush3.bf16.msra.mxu0 %v11714_v53  ;;  %7911 = vmatmul.mubr.bf16.vlgmr.msra.gmra.mrb[72].mxu1 %v9122_v51  ;;  %v11750_v51 = vld [vmem:[%s14933_s4 + $0xf88] sm:$0xff]   ;;  %v11780_v43 = vld [vmem:[%s14933_s4 + $0x1100] sm:$0xff]  }
 0x267   :  { %10577 = vmatpush3.bf16.msra.mxu1 %v11716_v55  ;;  %10556 = vmatprep.subr.bf16.mxu0 %v11717_v56  ;;  %v11752_v53 = vld [vmem:[%s14933_s4 + $0x1008] sm:$0xff]   ;;  %v11754_v55 = vld [vmem:[%s14933_s4 + $0xf90] sm:$0xff]  }
 0x268   :  { %10578 = vmatprep.subr.bf16.mxu1 %v11719_v58  ;;  %7951 = vmatprep.mubr.bf16.mxu0 %v9125_v40  ;;  %v11755_v56 = vld [vmem:[%s14933_s4 + $0x1050] sm:$0xff]   ;;  %v11757_v58 = vld [vmem:[%s14933_s4 + $0xfd8] sm:$0xff]   ;;  %v9131_v40 = vcombine.high %v1715_v37, %v1751_v38 }
 0x269   :  { %7992 = vmatprep.mubr.bf16.mxu1 %v9127_v46  ;;  %v11783_v46 = vld [vmem:[%s14933_s4 + $0x1148] sm:$0xff]  }
 0x26a   :  { %10557 = vmatpush3.bf16.msra.mxu0 %v11718_v57  ;;  %v11756_v57 = vld [vmem:[%s14933_s4 + $0x1010] sm:$0xff]  }
 0x26b   :  { %10579 = vmatpush3.bf16.msra.mxu1 %v11720_v59  ;;  %10558 = vmatprep.subr.bf16.mxu0 %v11721_v61  ;;  %v11758_v61 = vld [vmem:[%s14933_s4 + $0xf98] sm:$0xff]  }
 0x26c   :  { %10580 = vmatprep.subr.bf16.mxu1 %v11723_v63  ;;  %v11759_v63 = vld [vmem:[%s14933_s4 + $0x1058] sm:$0xff]  }
 0x26e   :  { %10559 = vmatpush3.bf16.msra.mxu0 %v11722_v62 }
 0x26f   :  { %10581 = vmatpush3.bf16.msra.mxu1 %v11724_v0  ;;  %10560 = vmatprep.subr.bf16.mxu0 %v11725_v2 }
 0x270   :  { %10582 = vmatprep.subr.bf16.mxu1 %v11727_v5  ;;  %v11761_v5 = vld [vmem:[%s14933_s4 + $0xfe0] sm:$0xff]  }
 0x272   :  { %10561 = vmatpush3.bf16.msra.mxu0 %v11726_v3  ;;  %v11760_v3 = vld [vmem:[%s14933_s4 + $0x1018] sm:$0xff]  }
 0x273   :  { %10583 = vmatpush3.bf16.msra.mxu1 %v11728_v7  ;;  %10562 = vmatprep.subr.bf16.mxu0 %v11729_v10 }
 0x274   :  { %10584 = vmatprep.subr.bf16.mxu1 %v11731_v15 }
 0x276   :  { %10563 = vmatpush3.bf16.msra.mxu0 %v11730_v12 }
 0x277   :  { %10585 = vmatpush3.bf16.msra.mxu1 %v11732_v18  ;;  %10564 = vmatprep.subr.bf16.mxu0 %v11733_v21  ;;  %v11767_v21 = vld [vmem:[%s14933_s4 + $0x1068] sm:$0xff]  }
 0x278   :  { %v10262_v4 = vpop.f32.mrb[48].mxu0  ;;  %10586 = vmatprep.subr.bf16.mxu1 %v11735_v27  ;;  %v11772_v27 = vld [vmem:[%s14933_s4 + $0x1030] sm:$0xff]  }
 0x279   :  { %v10263_v6 = vpop.f32.mrb[49].mxu0  ;;  %v10284_v11 = vpop.f32.mrb[48].mxu1 }
 0x27a   :  { %v10264_v8 = vadd.f32 %v10263_v6, %v10262_v4  ;;  %v10265_v9 = vpop.f32.mrb[50].mxu0  ;;  %v10285_v17 = vpop.f32.mrb[49].mxu1  ;;  %10565 = vmatpush3.bf16.msra.mxu0 %v11734_v24  ;;  %v11769_v24 = vld [vmem:[%s14933_s4 + $0xff0] sm:$0xff]  }
 0x27b   :  { %v10266_v14 = vpop.f32.mrb[51].mxu0  ;;  %v10286_v19 = vadd.f32 %v10285_v17, %v10284_v11  ;;  %v10287_v20 = vpop.f32.mrb[50].mxu1  ;;  %10587 = vmatpush3.bf16.msra.mxu1 %v11736_v28  ;;  %v11763_v11 = vld [vmem:[%s14933_s4 + $0x1060] sm:$0xff]   ;;  %v11765_v17 = vld [vmem:[%s14933_s4 + $0xfe8] sm:$0xff]   ;;  %v11773_v28 = vld [vmem:[%s14933_s4 + $0xff8] sm:$0xff]  }
 0x27c   :  { %v7380_v13 = vadd.f32 %v10264_v8, %v13996_v30  ;;  %v10267_v16 = vadd.f32 %v10266_v14, %v10265_v9  ;;  %v10288_v23 = vpop.f32.mrb[51].mxu1  ;;  %v11737_v30 = vld [vmem:[%s14933_s4 + $0xef0] sm:$0xff]   ;;  %10588 = vmatprep.subr.bf16.mxu1 %v11739_v32  ;;  %v11762_v8 = vld [vmem:[%s14933_s4 + $0xfa0] sm:$0xff]   ;;  %v1750_v32 = vld [vmem:[%s14934_s3 + $0x218] sm:$0xff] }
 0x27d   :  { %v10289_v26 = vadd.f32 %v10288_v23, %v10287_v20  ;;  %10566 = vmatprep.subr.bf16.mxu0 %v11737_v30  ;;  %v11764_v14 = vld [vmem:[%s14933_s4 + $0x1020] sm:$0xff]   ;;  %v11766_v20 = vld [vmem:[%s14933_s4 + $0xfa8] sm:$0xff]   ;;  %v11775_v30 = vld [vmem:[%s14933_s4 + $0x1078] sm:$0xff]  }
 0x27e   :  { %v7383_v22 = vadd.f32 %v10267_v16, %v14004_v34  ;;  %v14113_v25 = vadd.f32 %v10286_v19, %v7380_v13  ;;  %10567 = vmatpush3.bf16.msra.mxu0 %v11738_v31  ;;  %v11741_v34 = vld [vmem:[%s14933_s4 + $0xef8] sm:$0xff]   ;;  %v11768_v23 = vld [vmem:[%s14933_s4 + $0x1028] sm:$0xff]  }
 0x27f   :  { %10589 = vmatpush3.bf16.msra.mxu1 %v11740_v33  ;;  %10568 = vmatprep.subr.bf16.mxu0 %v11741_v34  ;;  %v1714_v31 = vld [vmem:[%s14934_s3 + $0xf8] sm:$0xff] }
 0x280   :  { %v14121_v29 = vadd.f32 %v10289_v26, %v7383_v22  ;;  %10590 = vmatprep.subr.bf16.mxu1 %v11743_v36  ;;  %v11771_v26 = vld [vmem:[%s14933_s4 + $0x1070] sm:$0xff]   ;;  %v9128_v33 = vcombine.low %v1714_v31, %v1750_v32  ;;  %v9129_v34 = vcombine.high %v1714_v31, %v1750_v32  ;;  %v11777_v36 = vld [vmem:[%s14933_s4 + $0x10c0] sm:$0xff]  }
 0x281   :  { %v1717_v31 = vld [vmem:[%s14934_s3 + $0x110] sm:$0xff] }
 0x282   :  { %10569 = vmatpush3.bf16.msra.mxu0 %v11742_v35  ;;  %v11776_v35 = vld [vmem:[%s14933_s4 + $0x1038] sm:$0xff]   ;;  %v1753_v32 = vld [vmem:[%s14934_s3 + $0x230] sm:$0xff] }
 0x283   :  { %10591 = vmatpush3.bf16.msra.mxu1 %v11744_v41  ;;  %10598 = vmatprep.subr.bf16.mxu0 %v11745_v42  ;;  %v11778_v41 = vld [vmem:[%s14933_s4 + $0x1080] sm:$0xff]  }
 0x284   :  { %10620 = vmatprep.subr.bf16.mxu1 %v11747_v48  ;;  %v11779_v42 = vld [vmem:[%s14933_s4 + $0x1140] sm:$0xff]   ;;  %v11785_v48 = vld [vmem:[%s14933_s4 + $0x10d0] sm:$0xff]  }
 0x285   :  { %7952 = vmatmul.mubr.bf16.vlgmr.msra.gmra.mrb[76].mxu0 %v9124_v39  ;;  %v9130_v39 = vcombine.low %v1715_v37, %v1751_v38  ;;  %v11812_v37 = vld [vmem:[%s14933_s4 + $0x1188] sm:$0xff]   ;;  %v11813_v38 = vld [vmem:[%s14933_s4 + $0x11d0] sm:$0xff]  }
 0x286   :  { %10599 = vmatpush3.bf16.msra.mxu0 %v11746_v47  ;;  %7993 = vmatmul.mubr.bf16.vlgmr.msra.gmra.mrb[76].mxu1 %v9126_v45  ;;  %v11782_v45 = vld [vmem:[%s14933_s4 + $0x1088] sm:$0xff]  }
 0x287   :  { %10621 = vmatpush3.bf16.msra.mxu1 %v11748_v49  ;;  %10600 = vmatprep.subr.bf16.mxu0 %v11749_v50  ;;  %v11784_v47 = vld [vmem:[%s14933_s4 + $0x1108] sm:$0xff]   ;;  %v11786_v49 = vld [vmem:[%s14933_s4 + $0x1090] sm:$0xff]  }
 0x288   :  { %10622 = vmatprep.subr.bf16.mxu1 %v11751_v52  ;;  %8033 = vmatprep.mubr.bf16.mxu0 %v9129_v34  ;;  %v11787_v50 = vld [vmem:[%s14933_s4 + $0x1150] sm:$0xff]   ;;  %v11789_v52 = vld [vmem:[%s14933_s4 + $0x10d8] sm:$0xff]   ;;  %v9135_v34 = vcombine.high %v1717_v31, %v1753_v32 }
 0x289   :  { %8074 = vmatprep.mubr.bf16.mxu1 %v9131_v40  ;;  %v11815_v40 = vld [vmem:[%s14933_s4 + $0x11d8] sm:$0xff]  }
 0x28a   :  { %10601 = vmatpush3.bf16.msra.mxu0 %v11750_v51  ;;  %v11788_v51 = vld [vmem:[%s14933_s4 + $0x1110] sm:$0xff]  }
 0x28b   :  { %10623 = vmatpush3.bf16.msra.mxu1 %v11752_v53  ;;  %10602 = vmatprep.subr.bf16.mxu0 %v11753_v54  ;;  %v11790_v54 = vld [vmem:[%s14933_s4 + $0x1098] sm:$0xff]  }
 0x28c   :  { %10624 = vmatprep.subr.bf16.mxu1 %v11755_v56  ;;  %v11791_v56 = vld [vmem:[%s14933_s4 + $0x1158] sm:$0xff]  }
 0x28e   :  { %10603 = vmatpush3.bf16.msra.mxu0 %v11754_v55 }
 0x28f   :  { %10625 = vmatpush3.bf16.msra.mxu1 %v11756_v57  ;;  %10604 = vmatprep.subr.bf16.mxu0 %v11757_v58 }
 0x290   :  { %10626 = vmatprep.subr.bf16.mxu1 %v11759_v63 }
 0x292   :  { %10605 = vmatpush3.bf16.msra.mxu0 %v11758_v61 }
 0x293   :  { %10627 = vmatpush3.bf16.msra.mxu1 %v11760_v3  ;;  %10606 = vmatprep.subr.bf16.mxu0 %v11761_v5  ;;  %v11795_v5 = vld [vmem:[%s14933_s4 + $0x1160] sm:$0xff]  }
 0x294   :  { %10628 = vmatprep.subr.bf16.mxu1 %v11763_v11  ;;  %v11797_v11 = vld [vmem:[%s14933_s4 + $0x10e8] sm:$0xff]  }
 0x296   :  { %10607 = vmatpush3.bf16.msra.mxu0 %v11762_v8  ;;  %v11796_v8 = vld [vmem:[%s14933_s4 + $0x1120] sm:$0xff]  }
 0x297   :  { %10629 = vmatpush3.bf16.msra.mxu1 %v11764_v14  ;;  %10608 = vmatprep.subr.bf16.mxu0 %v11765_v17  ;;  %v11798_v14 = vld [vmem:[%s14933_s4 + $0x10a8] sm:$0xff]  }
 0x298   :  { %v10306_v59 = vpop.f32.mrb[52].mxu0  ;;  %10630 = vmatprep.subr.bf16.mxu1 %v11767_v21  ;;  %v11800_v17 = vld [vmem:[%s14933_s4 + $0x1128] sm:$0xff]   ;;  %v11804_v21 = vld [vmem:[%s14933_s4 + $0x1130] sm:$0xff]  }
 0x299   :  { %v10307_v62 = vpop.f32.mrb[53].mxu0  ;;  %v10328_v4 = vpop.f32.mrb[52].mxu1 }
 0x29a   :  { %v10308_v0 = vadd.f32 %v10307_v62, %v10306_v59  ;;  %v10309_v2 = vpop.f32.mrb[54].mxu0  ;;  %v10329_v10 = vpop.f32.mrb[53].mxu1  ;;  %10609 = vmatpush3.bf16.msra.mxu0 %v11766_v20  ;;  %v11792_v59 = vld [vmem:[%s14933_s4 + $0x1118] sm:$0xff]   ;;  %v11793_v62 = vld [vmem:[%s14933_s4 + $0x10e0] sm:$0xff]   ;;  %v11803_v20 = vld [vmem:[%s14933_s4 + $0x1170] sm:$0xff]  }
 0x29b   :  { %v10310_v7 = vpop.f32.mrb[55].mxu0  ;;  %v10330_v12 = vadd.f32 %v10329_v10, %v10328_v4  ;;  %v10331_v13 = vpop.f32.mrb[54].mxu1  ;;  %10631 = vmatpush3.bf16.msra.mxu1 %v11768_v23  ;;  %10610 = vmatprep.subr.bf16.mxu0 %v11769_v24  ;;  %v11806_v23 = vld [vmem:[%s14933_s4 + $0x10b8] sm:$0xff]  }
 0x29c   :  { %v7462_v6 = vadd.f32 %v10308_v0, %v14113_v25  ;;  %v10311_v9 = vadd.f32 %v10310_v7, %v10309_v2  ;;  %v10332_v16 = vpop.f32.mrb[55].mxu1  ;;  %v11770_v25 = vld [vmem:[%s14933_s4 + $0xfb0] sm:$0xff]   ;;  %10632 = vmatprep.subr.bf16.mxu1 %v11771_v26  ;;  %v11794_v2 = vld [vmem:[%s14933_s4 + $0x10a0] sm:$0xff]   ;;  %v11807_v24 = vld [vmem:[%s14933_s4 + $0x1178] sm:$0xff]  }
 0x29d   :  { %v10333_v19 = vadd.f32 %v10332_v16, %v10331_v13  ;;  %v1752_v26 = vld [vmem:[%s14934_s3 + $0x228] sm:$0xff] }
 0x29e   :  { %v7465_v15 = vadd.f32 %v10311_v9, %v14121_v29  ;;  %v14224_v18 = vadd.f32 %v10330_v12, %v7462_v6  ;;  %10611 = vmatpush3.bf16.msra.mxu0 %v11770_v25  ;;  %v11774_v29 = vld [vmem:[%s14933_s4 + $0xfb8] sm:$0xff]   ;;  %v1716_v25 = vld [vmem:[%s14934_s3 + $0x108] sm:$0xff] }
 0x29f   :  { %10633 = vmatpush3.bf16.msra.mxu1 %v11772_v27  ;;  %10612 = vmatprep.subr.bf16.mxu0 %v11773_v28  ;;  %v9132_v27 = vcombine.low %v1716_v25, %v1752_v26  ;;  %v9133_v28 = vcombine.high %v1716_v25, %v1752_v26 }
 0x2a0   :  { %v14232_v22 = vadd.f32 %v10333_v19, %v7465_v15  ;;  %10634 = vmatprep.subr.bf16.mxu1 %v11775_v30  ;;  %v11799_v15 = vld [vmem:[%s14933_s4 + $0x1168] sm:$0xff]   ;;  %v11802_v19 = vld [vmem:[%s14933_s4 + $0x10b0] sm:$0xff]   ;;  %v11809_v30 = vld [vmem:[%s14933_s4 + $0x11c0] sm:$0xff]  }
 0x2a2   :  { %10613 = vmatpush3.bf16.msra.mxu0 %v11774_v29  ;;  %v11808_v29 = vld [vmem:[%s14933_s4 + $0x1138] sm:$0xff]  }
 0x2a3   :  { %10635 = vmatpush3.bf16.msra.mxu1 %v11776_v35  ;;  %10642 = vmatprep.subr.bf16.mxu0 %v11777_v36  ;;  %v11810_v35 = vld [vmem:[%s14933_s4 + $0x1180] sm:$0xff]   ;;  %v11811_v36 = vld [vmem:[%s14933_s4 + $0x11c8] sm:$0xff]  }
 0x2a4   :  { %10664 = vmatprep.subr.bf16.mxu1 %v11779_v42  ;;  %v11817_v42 = vld [vmem:[%s14933_s4 + $0x11e0] sm:$0xff]  }
 0x2a5   :  { %8034 = vmatmul.mubr.bf16.vlgmr.msra.gmra.mrb[80].mxu0 %v9128_v33  ;;  %v9134_v33 = vcombine.low %v1717_v31, %v1753_v32 }
 0x2a6   :  { %10643 = vmatpush3.bf16.msra.mxu0 %v11778_v41  ;;  %8075 = vmatmul.mubr.bf16.vlgmr.msra.gmra.mrb[80].mxu1 %v9130_v39  ;;  %v11814_v39 = vld [vmem:[%s14933_s4 + $0x1190] sm:$0xff]   ;;  %v11816_v41 = vld [vmem:[%s14933_s4 + $0x1198] sm:$0xff]  }
 0x2a7   :  { %10665 = vmatpush3.bf16.msra.mxu1 %v11780_v43  ;;  %10644 = vmatprep.subr.bf16.mxu0 %v11781_v44  ;;  %v11818_v44 = vld [vmem:[%s14933_s4 + $0x11a0] sm:$0xff]  }
 0x2a8   :  { %10666 = vmatprep.subr.bf16.mxu1 %v11783_v46  ;;  %8115 = vmatprep.mubr.bf16.mxu0 %v9133_v28 }
 0x2a9   :  { %8156 = vmatprep.mubr.bf16.mxu1 %v9135_v34 }
 0x2aa   :  { %10645 = vmatpush3.bf16.msra.mxu0 %v11782_v45 }
 0x2ab   :  { %10667 = vmatpush3.bf16.msra.mxu1 %v11784_v47  ;;  %10646 = vmatprep.subr.bf16.mxu0 %v11785_v48 }
 0x2ac   :  { %10668 = vmatprep.subr.bf16.mxu1 %v11787_v50 }
 0x2ae   :  { %10647 = vmatpush3.bf16.msra.mxu0 %v11786_v49  ;;  %v11819_v49 = vld [vmem:[%s14933_s4 + $0x11e8] sm:$0xff]  }
 0x2af   :  { %10669 = vmatpush3.bf16.msra.mxu1 %v11788_v51  ;;  %10648 = vmatprep.subr.bf16.mxu0 %v11789_v52  ;;  %v1718_v52 = vld [vmem:[%s14934_s3 + $0x118] sm:$0xff] }
 0x2b0   :  { %10670 = vmatprep.subr.bf16.mxu1 %v11791_v56 }
 0x2b2   :  { %10649 = vmatpush3.bf16.msra.mxu0 %v11790_v54 }
 0x2b3   :  { %10671 = vmatpush3.bf16.msra.mxu1 %v11792_v59  ;;  %10650 = vmatprep.subr.bf16.mxu0 %v11793_v62 }
 0x2b4   :  { %10672 = vmatprep.subr.bf16.mxu1 %v11795_v5  ;;  %v11823_v5 = vld [vmem:[%s14933_s4 + $0x11f8] sm:$0xff]  }
 0x2b6   :  { %10651 = vmatpush3.bf16.msra.mxu0 %v11794_v2  ;;  %v11821_v2 = vld [vmem:[%s14933_s4 + $0x11f0] sm:$0xff]  }
 0x2b7   :  { %10673 = vmatpush3.bf16.msra.mxu1 %v11796_v8  ;;  %10652 = vmatprep.subr.bf16.mxu0 %v11797_v11 }
 0x2b8   :  { %v10350_v53 = vpop.f32.mrb[56].mxu0  ;;  %10674 = vmatprep.subr.bf16.mxu1 %v11799_v15 }
 0x2b9   :  { %v10351_v55 = vpop.f32.mrb[57].mxu0  ;;  %v10372_v61 = vpop.f32.mrb[56].mxu1 }
 0x2ba   :  { %v10352_v57 = vadd.f32 %v10351_v55, %v10350_v53  ;;  %v10353_v58 = vpop.f32.mrb[58].mxu0  ;;  %v10373_v4 = vpop.f32.mrb[57].mxu1  ;;  %10653 = vmatpush3.bf16.msra.mxu0 %v11798_v14  ;;  %v1754_v53 = vld [vmem:[%s14934_s3 + $0x238] sm:$0xff] }
 0x2bb   :  { %v10354_v0 = vpop.f32.mrb[59].mxu0  ;;  %v10374_v6 = vadd.f32 %v10373_v4, %v10372_v61  ;;  %v10375_v7 = vpop.f32.mrb[58].mxu1  ;;  %10675 = vmatpush3.bf16.msra.mxu1 %v11800_v17  ;;  %v9137_v59 = vcombine.high %v1718_v52, %v1754_v53  ;;  %v11820_v61 = vld [vmem:[%s14933_s4 + $0x11a8] sm:$0xff]   ;;  %v11822_v4 = vld [vmem:[%s14933_s4 + $0x11b0] sm:$0xff]  }
 0x2bc   :  { %v7544_v63 = vadd.f32 %v10352_v57, %v14224_v18  ;;  %v10355_v3 = vadd.f32 %v10354_v0, %v10353_v58  ;;  %v10376_v10 = vpop.f32.mrb[59].mxu1  ;;  %v11801_v18 = vld [vmem:[%s14933_s4 + $0x10f0] sm:$0xff]   ;;  %10676 = vmatprep.subr.bf16.mxu1 %v11803_v20 }
 0x2bd   :  { %v10377_v13 = vadd.f32 %v10376_v10, %v10375_v7  ;;  %10654 = vmatprep.subr.bf16.mxu0 %v11801_v18  ;;  %v9136_v7 = vcombine.low %v1718_v52, %v1754_v53  ;;  %v8271_v53 = vld [vmem:[%s14937_s9 + $0x48] sm:$0xff] }
 0x2be   :  { %v7547_v9 = vadd.f32 %v10355_v3, %v14232_v22  ;;  %v14338_v12 = vadd.f32 %v10374_v6, %v7544_v63  ;;  %10655 = vmatpush3.bf16.msra.mxu0 %v11802_v19  ;;  %v11805_v22 = vld [vmem:[%s14933_s4 + $0x10f8] sm:$0xff]  }
 0x2bf   :  { %10677 = vmatpush3.bf16.msra.mxu1 %v11804_v21  ;;  %10656 = vmatprep.subr.bf16.mxu0 %v11805_v22  ;;  %v11824_v6 = vld [vmem:[%s14933_s4 + $0x11b8] sm:$0xff]  }
 0x2c0   :  { %v14346_v16 = vadd.f32 %v10377_v13, %v7547_v9  ;;  %10678 = vmatprep.subr.bf16.mxu1 %v11807_v24 }
 0x2c2   :  { %10657 = vmatpush3.bf16.msra.mxu0 %v11806_v23 }
 0x2c3   :  { %10679 = vmatpush3.bf16.msra.mxu1 %v11808_v29  ;;  %10686 = vmatprep.subr.bf16.mxu0 %v11809_v30 }
 0x2c5   :  { %8116 = vmatmul.mubr.bf16.vlgmr.msra.gmra.mrb[84].mxu0 %v9132_v27 }
 0x2c6   :  { %10687 = vmatpush3.bf16.msra.mxu0 %v11810_v35  ;;  %8157 = vmatmul.mubr.bf16.vlgmr.msra.gmra.mrb[84].mxu1 %v9134_v33 }
 0x2c7   :  { %10688 = vmatprep.subr.bf16.mxu0 %v11811_v36  ;;  %8197 = vmatprep.mubr.bf16.mxu0 %v9137_v59  ;;  %v8278_v59 = vld [vmem:[%s14937_s9 + $0x80] sm:$0xff] }
 0x2ca   :  { %10689 = vmatpush3.bf16.msra.mxu0 %v11812_v37 }
 0x2cb   :  { %10690 = vmatprep.subr.bf16.mxu0 %v11813_v38 }
 0x2ce   :  { %10691 = vmatpush3.bf16.msra.mxu0 %v11814_v39 }
 0x2cf   :  { %10692 = vmatprep.subr.bf16.mxu0 %v11815_v40  ;;  %v8263_v40 = vld [vmem:[%s14937_s9 + $0x8] sm:$0xff] }
 0x2d2   :  { %10693 = vmatpush3.bf16.msra.mxu0 %v11816_v41  ;;  %v8266_v41 = vld [vmem:[%s14937_s9 + $0x20] sm:$0xff] }
 0x2d3   :  { %10694 = vmatprep.subr.bf16.mxu0 %v11817_v42  ;;  %v10867_v42 = vpack.c.bf16 %v8266_v41, %v8263_v40  ;;  %v8301_v40 = vld [vmem:[%s14937_s9 + $0x138] sm:$0xff] }
 0x2d5   :  { %10868 = vmatprep.subr.bf16.mxu1 %v10867_v42 }
 0x2d6   :  { %10695 = vmatpush3.bf16.msra.mxu0 %v11818_v44  ;;  %v8265_v44 = vld [vmem:[%s14937_s9 + $0x18] sm:$0xff] }
 0x2d7   :  { %10696 = vmatprep.subr.bf16.mxu0 %v11819_v49  ;;  %v8269_v49 = vld [vmem:[%s14937_s9 + $0x38] sm:$0xff] }
 0x2d8   :  { %v10394_v43 = vpop.f32.mrb[60].mxu0 }
 0x2d9   :  { %v10395_v45 = vpop.f32.mrb[61].mxu0  ;;  %v10416_v48 = vpop.f32.mrb[60].mxu1 }
 0x2da   :  { %v10396_v46 = vadd.f32 %v10395_v45, %v10394_v43  ;;  %v10397_v47 = vpop.f32.mrb[62].mxu0  ;;  %v10417_v51 = vpop.f32.mrb[61].mxu1  ;;  %10697 = vmatpush3.bf16.msra.mxu0 %v11820_v61  ;;  %v8262_v43 = vld [vmem:[%s14937_s9] sm:$0xff] }
 0x2db   :  { %v10398_v50 = vpop.f32.mrb[63].mxu0  ;;  %v10418_v56 = vadd.f32 %v10417_v51, %v10416_v48  ;;  %v10419_v57 = vpop.f32.mrb[62].mxu1  ;;  %10698 = vmatprep.subr.bf16.mxu0 %v11821_v2  ;;  %v10869_v45 = vpack.c.bf16 %v8265_v44, %v8262_v43  ;;  %v8268_v51 = vld [vmem:[%s14937_s9 + $0x30] sm:$0xff]  ;;  %v8274_v61 = vld [vmem:[%s14937_s9 + $0x60] sm:$0xff]  ;;  %v8279_v2 = vld [vmem:[%s14937_s9 + $0x88] sm:$0xff] }
 0x2dc   :  { %v7626_v54 = vadd.f32 %v10396_v46, %v14338_v12  ;;  %v10399_v55 = vadd.f32 %v10398_v50, %v10397_v47  ;;  %v10420_v58 = vpop.f32.mrb[63].mxu1  ;;  %v8264_v46 = vld [vmem:[%s14937_s9 + $0x10] sm:$0xff]  ;;  %v8267_v47 = vld [vmem:[%s14937_s9 + $0x28] sm:$0xff] }
 0x2dd   :  { %v10421_v0 = vadd.f32 %v10420_v58, %v10419_v57  ;;  %v10899_v48 = vpack.c.bf16 %v8267_v47, %v8264_v46  ;;  %10870 = vmatpush1.bf16.msra.mxu1 %v10869_v45  ;;  %v8272_v50 = vld [vmem:[%s14937_s9 + $0x50] sm:$0xff]  ;;  %v8275_v58 = vld [vmem:[%s14937_s9 + $0x68] sm:$0xff] }
 0x2de   :  { %v7629_v62 = vadd.f32 %v10399_v55, %v14346_v16  ;;  %v7667_v63 = vadd.f32 %v10418_v56, %v7626_v54  ;;  %10699 = vmatpush3.bf16.msra.mxu0 %v11822_v4  ;;  %v10871_v52 = vpack.c.bf16 %v8272_v50, %v8269_v49  ;;  %v8270_v54 = vld [vmem:[%s14937_s9 + $0x40] sm:$0xff]  ;;  %v8273_v55 = vld [vmem:[%s14937_s9 + $0x58] sm:$0xff]  ;;  %v10873_v56 = vpack.c.bf16 %v8271_v53, %v8268_v51  ;;  %v8300_v45 = vld [vmem:[%s14937_s9 + $0x130] sm:$0xff] }
 0x2df   :  { %10700 = vmatprep.subr.bf16.mxu0 %v11823_v5  ;;  %v10903_v57 = vpack.c.bf16 %v8273_v55, %v8270_v54  ;;  %v8281_v5 = vld [vmem:[%s14937_s9 + $0x98] sm:$0xff]  ;;  %v8303_v46 = vld [vmem:[%s14937_s9 + $0x148] sm:$0xff]  ;;  %v8308_v55 = vld [vmem:[%s14937_s9 + $0x170] sm:$0xff] }
 0x2e0   :  { %v7670_v3 = vadd.f32 %v10421_v0, %v7629_v62  ;;  %10872 = vmatprep.subr.bf16.mxu1 %v10871_v52  ;;  %v10875_v62 = vpack.c.bf16 %v8278_v59, %v8275_v58  ;;  %v8276_v0 = vld [vmem:[%s14937_s9 + $0x70] sm:$0xff]  ;;  %v10923_v49 = vpack.c.bf16 %v8303_v46, %v8300_v45  ;;  %v8305_v54 = vld [vmem:[%s14937_s9 + $0x158] sm:$0xff] }
 0x2e1   :  { %10874 = vmatpush1.bf16.msra.mxu1 %v10873_v56  ;;  %v10907_v4 = vpack.c.bf16 %v8279_v2, %v8276_v0  ;;  %v8304_v58 = vld [vmem:[%s14937_s9 + $0x150] sm:$0xff]  ;;  %v8306_v0 = vld [vmem:[%s14937_s9 + $0x160] sm:$0xff]  ;;  %v8309_v2 = vld [vmem:[%s14937_s9 + $0x178] sm:$0xff] }
 0x2e2   :  { %10701 = vmatpush3.bf16.msra.mxu0 %v11824_v6  ;;  %v8284_v6 = vld [vmem:[%s14937_s9 + $0xb0] sm:$0xff]  ;;  %10876 = vmatprep.subr.bf16.mxu1 %v10875_v62 }
 0x2e3   :  { %10900 = vmatprep.subr.bf16.mxu0 %v10899_v48 }
 0x2e5   :  { %8198 = vmatmul.mubr.bf16.vlgmr.msra.gmra.mrb[88].mxu0 %v9136_v7  ;;  %v8280_v7 = vld [vmem:[%s14937_s9 + $0x90] sm:$0xff] }
 0x2e6   :  { %10902 = vmatpush3.bf16.msra.mxu0 %v10899_v48 }
 0x2e7   :  { %10904 = vmatprep.subr.bf16.mxu0 %v10903_v57 }
 0x2ea   :  { %10906 = vmatpush3.bf16.msra.mxu0 %v10903_v57  ;;  %v10895_v57 = vpack.c.bf16 %v8308_v55, %v8305_v54 }
 0x2eb   :  { %10908 = vmatprep.subr.bf16.mxu0 %v10907_v4 }
 0x2ee   :  { %10910 = vmatpush3.bf16.msra.mxu0 %v10907_v4 }
 0x2f8   :  { %v10438_v8 = vpop.f32.mrb[64].mxu0 }
 0x2f9   :  { %v10439_v9 = vpop.f32.mrb[65].mxu0  ;;  %v10460_v12 = vpop.f32.mrb[64].mxu1 }
 0x2fa   :  { %v10440_v10 = vadd.f32 %v10439_v9, %v10438_v8  ;;  %v10441_v11 = vpop.f32.mrb[66].mxu0  ;;  %v10461_v16 = vpop.f32.mrb[65].mxu1  ;;  %v10879_v8 = vpack.c.bf16 %v8284_v6, %v8281_v5  ;;  %v8283_v9 = vld [vmem:[%s14937_s9 + $0xa8] sm:$0xff]  ;;  %v8218_v5 = vld [vmem:[%s14938_s8 + $0x20] sm:$0xff] }
 0x2fb   :  { %v10442_v13 = vpop.f32.mrb[67].mxu0  ;;  %v10462_v17 = vadd.f32 %v10461_v16, %v10460_v12  ;;  %v10463_v18 = vpop.f32.mrb[66].mxu1  ;;  %v8287_v12 = vld [vmem:[%s14937_s9 + $0xc8] sm:$0xff]  ;;  %v8288_v16 = vld [vmem:[%s14937_s9 + $0xd0] sm:$0xff] }
 0x2fc   :  { %v7708_v14 = vadd.f32 %v10440_v10, %v7667_v63  ;;  %v10443_v15 = vadd.f32 %v10442_v13, %v10441_v11  ;;  %v10464_v20 = vpop.f32.mrb[67].mxu1  ;;  %v8277_v63 = vld [vmem:[%s14937_s9 + $0x78] sm:$0xff]  ;;  %v8282_v10 = vld [vmem:[%s14937_s9 + $0xa0] sm:$0xff] }
 0x2fd   :  { %v10465_v22 = vadd.f32 %v10464_v20, %v10463_v18  ;;  %v8285_v11 = vld [vmem:[%s14937_s9 + $0xb8] sm:$0xff]  ;;  %v8290_v13 = vld [vmem:[%s14937_s9 + $0xe0] sm:$0xff] }
 0x2fe   :  { %v7711_v19 = vadd.f32 %v10443_v15, %v7670_v3  ;;  %v7749_v21 = vadd.f32 %v10462_v17, %v7708_v14  ;;  %v10877_v3 = vpack.c.bf16 %v8277_v63, %v8274_v61  ;;  %v10911_v14 = vpack.c.bf16 %v8285_v11, %v8282_v10  ;;  %v8291_v17 = vld [vmem:[%s14937_s9 + $0xe8] sm:$0xff]  ;;  %v8289_v20 = vld [vmem:[%s14937_s9 + $0xd8] sm:$0xff] }
 0x2ff   :  { %v10881_v15 = vpack.c.bf16 %v8283_v9, %v8280_v7  ;;  %v10883_v18 = vpack.c.bf16 %v8290_v13, %v8287_v12  ;;  %v11845_v7 = vmov 0.0   ;;  %v8219_v9 = vld [vmem:[%s14938_s8 + $0x28] sm:$0xff] }
 0x300   :  { %v7752_v23 = vadd.f32 %v10465_v22, %v7711_v19  ;;  %10878 = vmatpush1.bf16.msra.mxu1 %v10877_v3  ;;  %v8286_v19 = vld [vmem:[%s14937_s9 + $0xc0] sm:$0xff]  ;;  %v8296_v22 = vld [vmem:[%s14937_s9 + $0x110] sm:$0xff]  ;;  %10912 = vmatprep.subr.bf16.mxu0 %v10911_v14  ;;  %v10927_v3 = vpack.c.bf16 %v8309_v2, %v8306_v0 }
 0x301   :  { %10880 = vmatprep.subr.bf16.mxu1 %v10879_v8  ;;  %10914 = vmatpush3.bf16.msra.mxu0 %v10911_v14  ;;  %v8216_v8 = vld [vmem:[%s14938_s8 + $0x10] sm:$0xff]  ;;  %v8214_v2 = vld [vmem:[%s14938_s8] sm:$0xff] }
 0x302   :  { %8374 = vmatprep.mubr.f32.mxu1 %v11845_v7  ;;  %v14606_v10 = vpack.c.bf16 %v8219_v9, %v8216_v8 }
 0x304   :  { %10882 = vmatpush1.bf16.msra.mxu1 %v10881_v15 }
 0x305   :  { %10884 = vmatprep.subr.bf16.mxu1 %v10883_v18 }
 0x318   :  { %v10482_v24 = vpop.f32.mrb[68].mxu0 }
 0x319   :  { %v10483_v25 = vpop.f32.mrb[69].mxu0  ;;  %v10504_v28 = vpop.f32.mrb[68].mxu1 }
 0x31a   :  { %v10484_v26 = vadd.f32 %v10483_v25, %v10482_v24  ;;  %v10485_v27 = vpop.f32.mrb[70].mxu0  ;;  %v10505_v32 = vpop.f32.mrb[69].mxu1  ;;  %v10885_v24 = vpack.c.bf16 %v8289_v20, %v8286_v19  ;;  %v8294_v25 = vld [vmem:[%s14937_s9 + $0x100] sm:$0xff] }
 0x31b   :  { %v10486_v29 = vpop.f32.mrb[71].mxu0  ;;  %v10506_v33 = vadd.f32 %v10505_v32, %v10504_v28  ;;  %v10507_v34 = vpop.f32.mrb[70].mxu1  ;;  %v8292_v28 = vld [vmem:[%s14937_s9 + $0xf0] sm:$0xff] }
 0x31c   :  { %v7790_v30 = vadd.f32 %v10484_v26, %v7749_v21  ;;  %v10487_v31 = vadd.f32 %v10486_v29, %v10485_v27  ;;  %v10508_v36 = vpop.f32.mrb[71].mxu1  ;;  %v8293_v21 = vld [vmem:[%s14937_s9 + $0xf8] sm:$0xff]  ;;  %v8295_v29 = vld [vmem:[%s14937_s9 + $0x108] sm:$0xff]  ;;  %10886 = vmatpush1.bf16.msra.mxu1 %v10885_v24 }
 0x31d   :  { %v10509_v38 = vadd.f32 %v10508_v36, %v10507_v34  ;;  %v8297_v26 = vld [vmem:[%s14937_s9 + $0x118] sm:$0xff]  ;;  %v10887_v27 = vpack.c.bf16 %v8296_v22, %v8293_v21 }
 0x31e   :  { %v7793_v35 = vadd.f32 %v10487_v31, %v7752_v23  ;;  %v14443_v37 = vadd.f32 %v10506_v33, %v7790_v30  ;;  %v10915_v23 = vpack.c.bf16 %v8291_v17, %v8288_v16  ;;  %v8299_v30 = vld [vmem:[%s14937_s9 + $0x128] sm:$0xff]  ;;  %v8302_v31 = vld [vmem:[%s14937_s9 + $0x140] sm:$0xff]  ;;  %v10919_v32 = vpack.c.bf16 %v8297_v26, %v8294_v25 }
 0x31f   :  { %v10889_v33 = vpack.c.bf16 %v8295_v29, %v8292_v28  ;;  %10888 = vmatprep.subr.bf16.mxu1 %v10887_v27  ;;  %v10891_v34 = vpack.c.bf16 %v8302_v31, %v8299_v30 }
 0x320   :  { %v14445_v39 = vadd.f32 %v10509_v38, %v7793_v35  ;;  %10916 = vmatprep.subr.bf16.mxu0 %v10915_v23  ;;  %v8298_v38 = vld [vmem:[%s14937_s9 + $0x120] sm:$0xff] }
 0x321   :  { %10918 = vmatpush3.bf16.msra.mxu0 %v10915_v23  ;;  %10890 = vmatpush1.bf16.msra.mxu1 %v10889_v33  ;;  %v10893_v44 = vpack.c.bf16 %v8301_v40, %v8298_v38 }
 0x322   :  { %10920 = vmatprep.subr.bf16.mxu0 %v10919_v32  ;;  %10892 = vmatprep.subr.bf16.mxu1 %v10891_v34 }
 0x325   :  { %10922 = vmatpush3.bf16.msra.mxu0 %v10919_v32  ;;  %10894 = vmatpush1.bf16.msra.mxu1 %v10893_v44 }
 0x326   :  { %10924 = vmatprep.subr.bf16.mxu0 %v10923_v49  ;;  %10896 = vmatprep.subr.bf16.mxu1 %v10895_v57 }
 0x329   :  { %10926 = vmatpush3.bf16.msra.mxu0 %v10923_v49 }
 0x32a   :  { %10928 = vmatprep.subr.bf16.mxu0 %v10927_v3 }
 0x32d   :  { %10930 = vmatpush3.bf16.msra.mxu0 %v10927_v3  ;;  %v8217_v3 = vld [vmem:[%s14938_s8 + $0x18] sm:$0xff] }
 0x32e   :  { %10964 = vmatprep.subr.bf16.mxu0 %v14606_v10  ;;  %v10933_v9 = vpack.c.bf16 %v8217_v3, %v8214_v2  ;;  %v8253_v2 = vld [vmem:[%s14938_s8 + $0x138] sm:$0xff] }
 0x32f   :  { %v8257_v3 = vld [vmem:[%s14938_s8 + $0x158] sm:$0xff] }
 0x338   :  { %v10526_v35 = vpop.f32.mrb[72].mxu0 }
 0x339   :  { %v10527_v36 = vpop.f32.mrb[73].mxu0  ;;  %v10548_v43 = vpop.f32.mrb[72].mxu1 }
 0x33a   :  { %v10528_v41 = vadd.f32 %v10527_v36, %v10526_v35  ;;  %v10529_v42 = vpop.f32.mrb[74].mxu0  ;;  %v10549_v48 = vpop.f32.mrb[73].mxu1 }
 0x33b   :  { %v10530_v47 = vpop.f32.mrb[75].mxu0  ;;  %v10550_v52 = vadd.f32 %v10549_v48, %v10548_v43  ;;  %v10551_v53 = vpop.f32.mrb[74].mxu1 }
 0x33c   :  { %v7872_v50 = vadd.f32 %v10528_v41, %v14443_v37  ;;  %v10531_v51 = vadd.f32 %v10530_v47, %v10529_v42  ;;  %v10552_v56 = vpop.f32.mrb[75].mxu1  ;;  %v8307_v37 = vld [vmem:[%s14937_s9 + $0x168] sm:$0xff] }
 0x33d   :  { %v10553_v62 = vadd.f32 %v10552_v56, %v10551_v53  ;;  %v10897_v63 = vpack.c.bf16 %v8307_v37, %v8304_v58 }
 0x33e   :  { %v7875_v59 = vadd.f32 %v10531_v51, %v14445_v39  ;;  %v7913_v61 = vadd.f32 %v10550_v52, %v7872_v50  ;;  %v8215_v39 = vld [vmem:[%s14938_s8 + $0x8] sm:$0xff] }
 0x33f   :  { %10898 = vmatpush1.bf16.msra.mxu1 %v10897_v63  ;;  %v10931_v6 = vpack.c.bf16 %v8218_v5, %v8215_v39  ;;  %v8221_v39 = vld [vmem:[%s14938_s8 + $0x38] sm:$0xff]  ;;  %v8224_v5 = vld [vmem:[%s14938_s8 + $0x50] sm:$0xff] }
 0x340   :  { %v7916_v4 = vadd.f32 %v10553_v62, %v7875_v59 }
 0x341   :  { %10932 = vmatprep.subr.bf16.mxu1 %v10931_v6 }
 0x358   :  { %v10570_v11 = vpop.f32.mrb[76].mxu0 }
 0x359   :  { %v10571_v12 = vpop.f32.mrb[77].mxu0  ;;  %v10592_v15 = vpop.f32.mrb[76].mxu1 }
 0x35a   :  { %v10572_v13 = vadd.f32 %v10571_v12, %v10570_v11  ;;  %v10573_v14 = vpop.f32.mrb[78].mxu0  ;;  %v10593_v19 = vpop.f32.mrb[77].mxu1  ;;  %v8222_v11 = vld [vmem:[%s14938_s8 + $0x40] sm:$0xff]  ;;  %v8225_v12 = vld [vmem:[%s14938_s8 + $0x58] sm:$0xff] }
 0x35b   :  { %v10574_v16 = vpop.f32.mrb[79].mxu0  ;;  %v10594_v20 = vadd.f32 %v10593_v19, %v10592_v15  ;;  %v10595_v21 = vpop.f32.mrb[78].mxu1  ;;  %v10935_v15 = vpack.c.bf16 %v8224_v5, %v8221_v39  ;;  %v8230_v19 = vld [vmem:[%s14938_s8 + $0x80] sm:$0xff] }
 0x35c   :  { %v7954_v17 = vadd.f32 %v10572_v13, %v7913_v61  ;;  %v10575_v18 = vadd.f32 %v10574_v16, %v10573_v14  ;;  %v10596_v23 = vpop.f32.mrb[79].mxu1  ;;  %v8220_v16 = vld [vmem:[%s14938_s8 + $0x30] sm:$0xff] }
 0x35d   :  { %v10597_v25 = vadd.f32 %v10596_v23, %v10595_v21  ;;  %v10967_v21 = vpack.c.bf16 %v8225_v12, %v8222_v11  ;;  %v8256_v11 = vld [vmem:[%s14938_s8 + $0x150] sm:$0xff]  ;;  %v8259_v12 = vld [vmem:[%s14938_s8 + $0x168] sm:$0xff] }
 0x35e   :  { %v7957_v22 = vadd.f32 %v10575_v18, %v7916_v4  ;;  %v7995_v24 = vadd.f32 %v10594_v20, %v7954_v17  ;;  %v8223_v17 = vld [vmem:[%s14938_s8 + $0x48] sm:$0xff] }
 0x35f   :  { %v8227_v18 = vld [vmem:[%s14938_s8 + $0x68] sm:$0xff]  ;;  %v10937_v23 = vpack.c.bf16 %v8223_v17, %v8220_v16  ;;  %v10961_v16 = vpack.c.bf16 %v8259_v12, %v8256_v11  ;;  %v8639_v17 = vld [vmem:[%s14939_s10 + $0x10] sm:$0xff] }
 0x360   :  { %v7998_v26 = vadd.f32 %v10597_v25, %v7957_v22  ;;  %v1681_v22 = vmax.f32 %v13175_v60, 0.0  ;;  %v8231_v25 = vld [vmem:[%s14938_s8 + $0x88] sm:$0xff]  ;;  %v8675_v12 = vld [vmem:[%s14939_s10 + $0x130] sm:$0xff] }
 0x378   :  { %v10614_v27 = vpop.f32.mrb[80].mxu0 }
 0x379   :  { %v10615_v28 = vpop.f32.mrb[81].mxu0  ;;  %v10636_v31 = vpop.f32.mrb[80].mxu1 }
 0x37a   :  { %v10616_v29 = vadd.f32 %v10615_v28, %v10614_v27  ;;  %v10617_v30 = vpop.f32.mrb[82].mxu0  ;;  %v10637_v35 = vpop.f32.mrb[81].mxu1  ;;  %v8226_v27 = vld [vmem:[%s14938_s8 + $0x60] sm:$0xff]  ;;  %v8229_v28 = vld [vmem:[%s14938_s8 + $0x78] sm:$0xff] }
 0x37b   :  { %v10618_v32 = vpop.f32.mrb[83].mxu0  ;;  %v10638_v36 = vadd.f32 %v10637_v35, %v10636_v31  ;;  %v10639_v38 = vpop.f32.mrb[82].mxu1  ;;  %v8232_v35 = vld [vmem:[%s14938_s8 + $0x90] sm:$0xff] }
 0x37c   :  { %v8036_v33 = vadd.f32 %v10616_v29, %v7995_v24  ;;  %v10619_v34 = vadd.f32 %v10618_v32, %v10617_v30  ;;  %v10640_v41 = vpop.f32.mrb[83].mxu1  ;;  %v8228_v24 = vld [vmem:[%s14938_s8 + $0x70] sm:$0xff]  ;;  %v8233_v29 = vld [vmem:[%s14938_s8 + $0x98] sm:$0xff]  ;;  %v10941_v32 = vpack.c.bf16 %v8229_v28, %v8226_v27  ;;  %v8645_v28 = vld [vmem:[%s14939_s10 + $0x40] sm:$0xff] }
 0x37d   :  { %v10641_v43 = vadd.f32 %v10640_v41, %v10639_v38  ;;  %v8236_v30 = vld [vmem:[%s14938_s8 + $0xb0] sm:$0xff]  ;;  %v10971_v31 = vpack.c.bf16 %v8231_v25, %v8228_v24  ;;  %v8239_v38 = vld [vmem:[%s14938_s8 + $0xc8] sm:$0xff] }
 0x37e   :  { %v8039_v40 = vadd.f32 %v10619_v34, %v7998_v26  ;;  %v8077_v42 = vadd.f32 %v10638_v36, %v8036_v33  ;;  %v10939_v26 = vpack.c.bf16 %v8230_v19, %v8227_v18  ;;  %v8237_v33 = vld [vmem:[%s14938_s8 + $0xb8] sm:$0xff]  ;;  %v10943_v34 = vpack.c.bf16 %v8236_v30, %v8233_v29  ;;  %v8235_v36 = vld [vmem:[%s14938_s8 + $0xa8] sm:$0xff]  ;;  %v8647_v24 = vld [vmem:[%s14939_s10 + $0x50] sm:$0xff] }
 0x37f   :  { %v8642_v18 = vld [vmem:[%s14939_s10 + $0x28] sm:$0xff]  ;;  %v8643_v27 = vld [vmem:[%s14939_s10 + $0x30] sm:$0xff]  ;;  %v8648_v29 = vld [vmem:[%s14939_s10 + $0x58] sm:$0xff] }
 0x380   :  { %v8080_v44 = vadd.f32 %v10641_v43, %v8039_v40  ;;  %v8242_v40 = vld [vmem:[%s14938_s8 + $0xe0] sm:$0xff]  ;;  %v8240_v43 = vld [vmem:[%s14938_s8 + $0xd0] sm:$0xff]  ;;  %v11027_v25 = vpack.c.bf16 %v8642_v18, %v8639_v17  ;;  %v8680_v17 = vld [vmem:[%s14939_s10 + $0x158] sm:$0xff] }
 0x381   :  { %v8683_v18 = vld [vmem:[%s14939_s10 + $0x170] sm:$0xff] }
 0x398   :  { %v10658_v45 = vpop.f32.mrb[84].mxu0 }
 0x399   :  { %v10659_v46 = vpop.f32.mrb[85].mxu0  ;;  %v10680_v49 = vpop.f32.mrb[84].mxu1 }
 0x39a   :  { %v10660_v47 = vadd.f32 %v10659_v46, %v10658_v45  ;;  %v10661_v48 = vpop.f32.mrb[86].mxu0  ;;  %v10681_v51 = vpop.f32.mrb[85].mxu1  ;;  %v10947_v45 = vpack.c.bf16 %v8242_v40, %v8239_v38  ;;  %v8238_v46 = vld [vmem:[%s14938_s8 + $0xc0] sm:$0xff] }
 0x39b   :  { %v10662_v50 = vpop.f32.mrb[87].mxu0  ;;  %v10682_v54 = vadd.f32 %v10681_v51, %v10680_v49  ;;  %v10683_v55 = vpop.f32.mrb[86].mxu1  ;;  %v8248_v49 = vld [vmem:[%s14938_s8 + $0x110] sm:$0xff] }
 0x39c   :  { %v8118_v52 = vadd.f32 %v10660_v47, %v8077_v42  ;;  %v10663_v53 = vadd.f32 %v10662_v50, %v10661_v48  ;;  %v10684_v56 = vpop.f32.mrb[87].mxu1  ;;  %v10945_v42 = vpack.c.bf16 %v8235_v36, %v8232_v35  ;;  %v8241_v47 = vld [vmem:[%s14938_s8 + $0xd8] sm:$0xff]  ;;  %v1682_v35 = vmax.f32 %v13184_v1, 0.0  ;;  %v8649_v1 = vld [vmem:[%s14939_s10 + $0x60] sm:$0xff] }
 0x39d   :  { %v10685_v37 = vadd.f32 %v10684_v56, %v10683_v55  ;;  %v8245_v48 = vld [vmem:[%s14938_s8 + $0xf8] sm:$0xff]  ;;  %v10949_v51 = vpack.c.bf16 %v8241_v47, %v8238_v46  ;;  %v8244_v55 = vld [vmem:[%s14938_s8 + $0xf0] sm:$0xff]  ;;  %v8247_v56 = vld [vmem:[%s14938_s8 + $0x108] sm:$0xff]  ;;  %v11031_v36 = vpack.c.bf16 %v8648_v29, %v8645_v28 }
 0x39e   :  { %v8121_v57 = vadd.f32 %v10663_v53, %v8080_v44  ;;  %v8159_v58 = vadd.f32 %v10682_v54, %v8118_v52  ;;  %v8243_v44 = vld [vmem:[%s14938_s8 + $0xe8] sm:$0xff]  ;;  %v8246_v52 = vld [vmem:[%s14938_s8 + $0x100] sm:$0xff]  ;;  %v8249_v53 = vld [vmem:[%s14938_s8 + $0x118] sm:$0xff]  ;;  %v10951_v54 = vpack.c.bf16 %v8248_v49, %v8245_v48 }
 0x39f   :  { %v10979_v50 = vpack.c.bf16 %v8243_v44, %v8240_v43  ;;  %v8656_v43 = vld [vmem:[%s14939_s10 + $0x98] sm:$0xff]  ;;  %v8659_v44 = vld [vmem:[%s14939_s10 + $0xb0] sm:$0xff]  ;;  %v8657_v47 = vld [vmem:[%s14939_s10 + $0xa0] sm:$0xff] }
 0x3a0   :  { %v8162_v59 = vadd.f32 %v10685_v37, %v8121_v57  ;;  %v8251_v57 = vld [vmem:[%s14938_s8 + $0x128] sm:$0xff]  ;;  %v10983_v37 = vpack.c.bf16 %v8249_v53, %v8246_v52  ;;  %v8660_v48 = vld [vmem:[%s14939_s10 + $0xb8] sm:$0xff]  ;;  %v11007_v49 = vpack.c.bf16 %v8659_v44, %v8656_v43  ;;  %v8665_v53 = vld [vmem:[%s14939_s10 + $0xe0] sm:$0xff] }
 0x3a1   :  { %v8662_v52 = vld [vmem:[%s14939_s10 + $0xc8] sm:$0xff] }
 0x3a2   :  { %v8209_v29 = vld [vmem:[%s14940_s6 + $0x8] sm:$0xff] }
 0x3b8   :  { %v10702_v61 = vpop.f32.mrb[88].mxu0 }
 0x3b9   :  { %v10703_v62 = vpop.f32.mrb[89].mxu0 }
 0x3ba   :  { %v10704_v63 = vadd.f32 %v10703_v62, %v10702_v61  ;;  %v10705_v0 = vpop.f32.mrb[90].mxu0  ;;  %v8252_v61 = vld [vmem:[%s14938_s8 + $0x130] sm:$0xff]  ;;  %v8255_v62 = vld [vmem:[%s14938_s8 + $0x148] sm:$0xff] }
 0x3bb   :  { %v10706_v4 = vpop.f32.mrb[91].mxu0  ;;  %v10987_v39 = vpack.c.bf16 %v8255_v62, %v8252_v61  ;;  %v8668_v61 = vld [vmem:[%s14939_s10 + $0xf8] sm:$0xff]  ;;  %v8671_v62 = vld [vmem:[%s14939_s10 + $0x110] sm:$0xff] }
 0x3bc   :  { %v8200_v6 = vadd.f32 %v10704_v63, %v8159_v58  ;;  %v10707_v8 = vadd.f32 %v10706_v4, %v10705_v0  ;;  %v8254_v58 = vld [vmem:[%s14938_s8 + $0x140] sm:$0xff]  ;;  %v8260_v4 = vld [vmem:[%s14938_s8 + $0x170] sm:$0xff] }
 0x3bd   :  { %v10955_v63 = vpack.c.bf16 %v8254_v58, %v8251_v57  ;;  %v8250_v0 = vld [vmem:[%s14938_s8 + $0x120] sm:$0xff]  ;;  %v8666_v57 = vld [vmem:[%s14939_s10 + $0xe8] sm:$0xff]  ;;  %v11011_v58 = vpack.c.bf16 %v8665_v53, %v8662_v52 }
 0x3be   :  { %v8206_v13 = vmax.f32 %v8200_v6, 0.0  ;;  %v8203_v14 = vadd.f32 %v10707_v8, %v8162_v59  ;;  %v10953_v59 = vpack.c.bf16 %v8247_v56, %v8244_v55  ;;  %v10957_v5 = vpack.c.bf16 %v8253_v2, %v8250_v0  ;;  %v8258_v6 = vld [vmem:[%s14938_s8 + $0x160] sm:$0xff]  ;;  %v8261_v8 = vld [vmem:[%s14938_s8 + $0x178] sm:$0xff]  ;;  %v8663_v56 = vld [vmem:[%s14939_s10 + $0xd0] sm:$0xff] }
 0x3bf   :  { %v8669_v2 = vld [vmem:[%s14939_s10 + $0x100] sm:$0xff] }
 0x3c0   :  { %v8207_v20 = vmax.f32 %v8203_v14, 0.0  ;;  %8375 = vmatmul.mubr.f32.vlgmr.msra.gmra.mrb[88].mxu1 %v8206_v13  ;;  %10794 = vmatprep.mubr.f32.mxu0 %v8206_v13  ;;  %v8638_v13 = vld [vmem:[%s14939_s10 + $0x8] sm:$0xff]  ;;  %v8641_v14 = vld [vmem:[%s14939_s10 + $0x20] sm:$0xff] }
 0x3c1   :  { %10934 = vmatpush1.bf16.msra.mxu1 %v10933_v9  ;;  %8380 = vmatprep.mubr.f32.mxu1 %v11845_v7  ;;  %v10959_v9 = vpack.c.bf16 %v8260_v4, %v8257_v3  ;;  %v10995_v19 = vpack.c.bf16 %v8641_v14, %v8638_v13  ;;  %v8672_v3 = vld [vmem:[%s14939_s10 + $0x118] sm:$0xff]  ;;  %v11015_v4 = vpack.c.bf16 %v8671_v62, %v8668_v61  ;;  %v8678_v13 = vld [vmem:[%s14939_s10 + $0x148] sm:$0xff] }
 0x3c2   :  { %10795 = vmatmul.mubr.f32.vlgmr.msra.gmra.mrb[92].mxu0 %v8207_v20  ;;  %10936 = vmatprep.subr.bf16.mxu1 %v10935_v15  ;;  %v10991_v15 = vpack.c.bf16 %v8261_v8, %v8258_v6  ;;  %v8674_v6 = vld [vmem:[%s14939_s10 + $0x128] sm:$0xff]  ;;  %v8677_v8 = vld [vmem:[%s14939_s10 + $0x140] sm:$0xff] }
 0x3c3   :  { %10966 = vmatpush3.bf16.msra.mxu0 %v14606_v10  ;;  %10829 = vmatprep.mubr.f32.mxu0 %v1681_v22  ;;  %v8234_v10 = vld [vmem:[%s14938_s8 + $0xa0] sm:$0xff]  ;;  %v11019_v14 = vpack.c.bf16 %v8677_v8, %v8674_v6 }
 0x3c4   :  { %8381 = vmatmul.mubr.f32.gmra.mrb[90].mxu1 %v8207_v20  ;;  %10968 = vmatprep.subr.bf16.mxu0 %v10967_v21  ;;  %v10975_v41 = vpack.c.bf16 %v8237_v33, %v8234_v10  ;;  %v8637_v20 = vld [vmem:[%s14939_s10] sm:$0xff]  ;;  %v8650_v33 = vld [vmem:[%s14939_s10 + $0x68] sm:$0xff] }
 0x3c5   :  { %10938 = vmatpush1.bf16.msra.mxu1 %v10937_v23  ;;  %8526 = vmatprep.mubr.f32.mxu1 %v11845_v7  ;;  %v8644_v23 = vld [vmem:[%s14939_s10 + $0x38] sm:$0xff]  ;;  %v8210_v10 = vld [vmem:[%s14941_s7] sm:$0xff] }
 0x3c6   :  { %10940 = vmatprep.subr.bf16.mxu1 %v10939_v26  ;;  %v10999_v30 = vpack.c.bf16 %v8647_v24, %v8644_v23  ;;  %v8684_v23 = vld [vmem:[%s14939_s10 + $0x178] sm:$0xff]  ;;  %v11023_v24 = vpack.c.bf16 %v8683_v18, %v8680_v17 }
 0x3c7   :  { %10970 = vmatpush3.bf16.msra.mxu0 %v10967_v21  ;;  %v8640_v21 = vld [vmem:[%s14939_s10 + $0x18] sm:$0xff] }
 0x3c8   :  { %10972 = vmatprep.subr.bf16.mxu0 %v10971_v31  ;;  %v10997_v26 = vpack.c.bf16 %v8640_v21, %v8637_v20  ;;  %v8681_v21 = vld [vmem:[%s14939_s10 + $0x160] sm:$0xff] }
 0x3c9   :  { %10942 = vmatpush1.bf16.msra.mxu1 %v10941_v32  ;;  %v8208_v32 = vld [vmem:[%s14940_s6] sm:$0xff] }
 0x3ca   :  { %10944 = vmatprep.subr.bf16.mxu1 %v10943_v34  ;;  %v8653_v34 = vld [vmem:[%s14939_s10 + $0x80] sm:$0xff]  ;;  %v14799_v40 = vmul.f32 %v8210_v10, %v8208_v32 }
 0x3cb   :  { %10974 = vmatpush3.bf16.msra.mxu0 %v10971_v31  ;;  %v8646_v31 = vld [vmem:[%s14939_s10 + $0x48] sm:$0xff]  ;;  %v11003_v60 = vpack.c.bf16 %v8653_v34, %v8650_v33  ;;  %v8616_v33 = vlaneseq }
 0x3cc   :  { %10976 = vmatprep.subr.bf16.mxu0 %v10975_v41  ;;  %v11001_v38 = vpack.c.bf16 %v8646_v31, %v8643_v27  ;;  %v11055_v27 = vpack.c.bf16 %v8684_v23, %v8681_v21 }
 0x3cd   :  { %10946 = vmatpush1.bf16.msra.mxu1 %v10945_v42  ;;  %v8654_v42 = vld [vmem:[%s14939_s10 + $0x88] sm:$0xff]  ;;  %v8617_v34 = vshrl.u32 %v8616_v33, 7 }
 0x3ce   :  { %10948 = vmatprep.subr.bf16.mxu1 %v10947_v45 }
 0x3cf   :  { %10978 = vmatpush3.bf16.msra.mxu0 %v10975_v41  ;;  %v8651_v41 = vld [vmem:[%s14939_s10 + $0x70] sm:$0xff]  ;;  %v8626_v61 = vsub.s32 2, %v8617_v34 }
 0x3d0   :  { %10980 = vmatprep.subr.bf16.mxu0 %v10979_v50  ;;  %v11035_v45 = vpack.c.bf16 %v8654_v42, %v8651_v41  ;;  %v8622_v41 = vsub.s32 1, %v8617_v34 }
 0x3d1   :  { %10950 = vmatpush1.bf16.msra.mxu1 %v10949_v51  ;;  %v8658_v51 = vld [vmem:[%s14939_s10 + $0xa8] sm:$0xff] }
 0x3d2   :  { %10952 = vmatprep.subr.bf16.mxu1 %v10951_v54  ;;  %v11039_v54 = vpack.c.bf16 %v8660_v48, %v8657_v47 }
 0x3d3   :  { %10982 = vmatpush3.bf16.msra.mxu0 %v10979_v50  ;;  %v8655_v50 = vld [vmem:[%s14939_s10 + $0x90] sm:$0xff] }
 0x3d4   :  { %10984 = vmatprep.subr.bf16.mxu0 %v10983_v37  ;;  %v11009_v55 = vpack.c.bf16 %v8658_v51, %v8655_v50 }
 0x3d5   :  { %10954 = vmatpush1.bf16.msra.mxu1 %v10953_v59  ;;  %v8664_v59 = vld [vmem:[%s14939_s10 + $0xd8] sm:$0xff] }
 0x3d6   :  { %10956 = vmatprep.subr.bf16.mxu1 %v10955_v63  ;;  %v11043_v63 = vpack.c.bf16 %v8666_v57, %v8663_v56 }
 0x3d7   :  { %10986 = vmatpush3.bf16.msra.mxu0 %v10983_v37  ;;  %v8661_v37 = vld [vmem:[%s14939_s10 + $0xc0] sm:$0xff] }
 0x3d8   :  { %10988 = vmatprep.subr.bf16.mxu0 %v10987_v39  ;;  %v11013_v0 = vpack.c.bf16 %v8664_v59, %v8661_v37 }
 0x3d9   :  { %10958 = vmatpush1.bf16.msra.mxu1 %v10957_v5  ;;  %v8670_v5 = vld [vmem:[%s14939_s10 + $0x108] sm:$0xff] }
 0x3da   :  { %10960 = vmatprep.subr.bf16.mxu1 %v10959_v9  ;;  %v11047_v9 = vpack.c.bf16 %v8672_v3, %v8669_v2 }
 0x3db   :  { %10990 = vmatpush3.bf16.msra.mxu0 %v10987_v39  ;;  %v8667_v39 = vld [vmem:[%s14939_s10 + $0xf0] sm:$0xff] }
 0x3dc   :  { %10992 = vmatprep.subr.bf16.mxu0 %v10991_v15  ;;  %v11017_v11 = vpack.c.bf16 %v8670_v5, %v8667_v39 }
 0x3dd   :  { %10962 = vmatpush1.bf16.msra.mxu1 %v10961_v16  ;;  %v8676_v16 = vld [vmem:[%s14939_s10 + $0x138] sm:$0xff] }
 0x3de   :  { %10996 = vmatprep.subr.bf16.mxu1 %v10995_v19  ;;  %v11051_v19 = vpack.c.bf16 %v8678_v13, %v8675_v12 }
 0x3df   :  { %10994 = vmatpush3.bf16.msra.mxu0 %v10991_v15  ;;  %v8673_v15 = vld [vmem:[%s14939_s10 + $0x120] sm:$0xff] }
 0x3e0   :  { %8527 = vmatmul.mubr.f32.vlgmr.msra.gmra.mrb[88].mxu1 %v1681_v22  ;;  %11028 = vmatprep.subr.bf16.mxu0 %v11027_v25  ;;  %v8652_v22 = vld [vmem:[%s14939_s10 + $0x78] sm:$0xff]  ;;  %v11021_v20 = vpack.c.bf16 %v8676_v16, %v8673_v15 }
 0x3e1   :  { %10998 = vmatpush1.bf16.msra.mxu1 %v10997_v26  ;;  %8532 = vmatprep.mubr.f32.mxu1 %v11845_v7  ;;  %v11005_v46 = vpack.c.bf16 %v8652_v22, %v8649_v1  ;;  %v8682_v26 = vld [vmem:[%s14939_s10 + $0x168] sm:$0xff] }
 0x3e2   :  { %10830 = vmatmul.mubr.f32.vlgmr.msra.gmra.mrb[92].mxu0 %v1682_v35  ;;  %11000 = vmatprep.subr.bf16.mxu1 %v10999_v30  ;;  %v8211_v30 = vld [vmem:[%s14941_s7 + $0x8] sm:$0xff] }
 0x3e3   :  { %11030 = vmatpush3.bf16.msra.mxu0 %v11027_v25  ;;  %10864 = vmatprep.mubr.f32.mxu0 %v14799_v40  ;;  %v8679_v25 = vld [vmem:[%s14939_s10 + $0x150] sm:$0xff]  ;;  %v14912_v31 = vmul.f32 %v8211_v30, %v8209_v29 }
 0x3e4   :  { %8533 = vmatmul.mubr.f32.gmra.mrb[90].mxu1 %v1682_v35  ;;  %11032 = vmatprep.subr.bf16.mxu0 %v11031_v36  ;;  %v11025_v28 = vpack.c.bf16 %v8682_v26, %v8679_v25  ;;  %v8618_v35 = vsub.s32 0, %v8617_v34 }
 0x3e5   :  { %11002 = vmatpush1.bf16.msra.mxu1 %v11001_v38  ;;  %8766 = vmatprep.mubr.f32.mxu1 %v11845_v7  ;;  %v8614_v38 = vld [vmem:[%s14943_s11] sm:$0x7] }
 0x3e6   :  { %11004 = vmatprep.subr.bf16.mxu1 %v11003_v60  ;;  %v8619_v42 = vrot.slane %v8614_v38, %v8618_v35  ;;  %v8623_v60 = vrot.slane %v8614_v38, %v8622_v41  ;;  %v8627_v3 = vrot.slane %v8614_v38, %v8626_v61 }
 0x3e7   :  { %11034 = vmatpush3.bf16.msra.mxu0 %v11031_v36  ;;  %v8685_v36 = vld [vmem:[%s14942_s12] sm:$0x7] }
 0x3e8   :  { %11036 = vmatprep.subr.bf16.mxu0 %v11035_v45  ;;  %v8694_v1 = vrot.slane %v8685_v36, %v8622_v41 }
 0x3e9   :  { %11006 = vmatpush1.bf16.msra.mxu1 %v11005_v46 }
 0x3ea   :  { %11008 = vmatprep.subr.bf16.mxu1 %v11007_v49  ;;  %v11061_v44 = vadd.f32 %v8694_v1, %v8623_v60 }
 0x3eb   :  { %11038 = vmatpush3.bf16.msra.mxu0 %v11035_v45 }
 0x3ec   :  { %11040 = vmatprep.subr.bf16.mxu0 %v11039_v54 }
 0x3ed   :  { %11010 = vmatpush1.bf16.msra.mxu1 %v11009_v55 }
 0x3ee   :  { %11012 = vmatprep.subr.bf16.mxu1 %v11011_v58 }
 0x3ef   :  { %11042 = vmatpush3.bf16.msra.mxu0 %v11039_v54 }
 0x3f0   :  { %11044 = vmatprep.subr.bf16.mxu0 %v11043_v63 }
 0x3f1   :  { %11014 = vmatpush1.bf16.msra.mxu1 %v11013_v0 }
 0x3f2   :  { %11016 = vmatprep.subr.bf16.mxu1 %v11015_v4 }
 0x3f3   :  { %11046 = vmatpush3.bf16.msra.mxu0 %v11043_v63  ;;  %v8698_v63 = vrot.slane %v8685_v36, %v8626_v61 }
 0x3f4   :  { %11048 = vmatprep.subr.bf16.mxu0 %v11047_v9 }
 0x3f5   :  { %11018 = vmatpush1.bf16.msra.mxu1 %v11017_v11 }
 0x3f6   :  { %11020 = vmatprep.subr.bf16.mxu1 %v11019_v14 }
 0x3f7   :  { %11050 = vmatpush3.bf16.msra.mxu0 %v11047_v9 }
 0x3f8   :  { %11052 = vmatprep.subr.bf16.mxu0 %v11051_v19 }
 0x3f9   :  { %11022 = vmatpush1.bf16.msra.mxu1 %v11021_v20 }
 0x3fa   :  { %11024 = vmatprep.subr.bf16.mxu1 %v11023_v24 }
 0x3fb   :  { %11054 = vmatpush3.bf16.msra.mxu0 %v11051_v19 }
 0x3fc   :  { %11056 = vmatprep.subr.bf16.mxu0 %v11055_v27 }
 0x3fd   :  { %11026 = vmatpush1.bf16.msra.mxu1 %v11025_v28 }
 0x3ff   :  { %11058 = vmatpush3.bf16.msra.mxu0 %v11055_v27 }
 0x400   :  { %8767 = vmatmul.mubr.f32.vlgmr.msra.gmra.mrb[88].mxu1 %v14799_v40 }
 0x401   :  { %8772 = vmatprep.mubr.f32.mxu1 %v11845_v7  ;;  %v8690_v7 = vrot.slane %v8685_v36, %v8618_v35 }
 0x402   :  { %10865 = vmatmul.mubr.f32.vlgmr.msra.gmra.mrb[94].mxu0 %v14912_v31 }
 0x403   :  { %v11059_v22 = vadd.f32 %v8690_v7, %v8619_v42 }
 0x404   :  { %8773 = vmatmul.mubr.f32.gmra.mrb[90].mxu1 %v14912_v31 }
 0x4b5   :  { %v10831_v32 = vpop.f32.mrb[92].mxu0 }
 0x4b6   :  { %v8605_v10 = vpop.f32.mrb[93].mxu0  ;;  %v8636_v14 = vadd.f32 %v10831_v32, %v8627_v3 }
 0x4b7   :  { %v8633_v8 = vadd.f32 %v8627_v3, %v8605_v10 }
 0x4d3   :  { %v8768_v43 = vpop.f32.mrb[88].mxu1 }
 0x4d4   :  { %v11060_v45 = vadd.f32 %v11059_v22, %v8768_v43  ;;  %v8770_v46 = vpop.f32.mrb[89].mxu1 }
 0x4d5   :  { %v10866_v47 = vpop.f32.mrb[94].mxu0  ;;  %v11062_v50 = vadd.f32 %v11061_v44, %v8770_v46 }
 0x4d6   :  { %v9714_v48 = vmul.f32 -1.442695, %v11060_v45  ;;  %v8845_v49 = vpop.f32.mrb[95].mxu0  ;;  %v8851_v9 = vadd.f32 %v10866_v47, %v8698_v63 }
 0x4d7   :  { %v8774_v51 = vpop.f32.mrb[90].mxu1  ;;  %v9716_v56 = vmul.f32 -1.442695, %v11062_v50  ;;  %v8846_v39 = vadd.f32 %v8845_v49, %v8698_v63 }
 0x4d8   :  { %11825 = vpow2.f32 %v9714_v48  ;;  %v11064_v52 = vadd.f32 %v11059_v22, %v8774_v51  ;;  %v8776_v53 = vpop.f32.mrb[91].mxu1 }
 0x4d9   :  { %v11066_v55 = vadd.f32 %v11061_v44, %v8776_v53 }
 0x4da   :  { %v9715_v54 = vmul.f32 -1.442695, %v11064_v52 }
 0x4db   :  { %v9717_v57 = vmul.f32 -1.442695, %v11066_v55 }
 0x4dc   :  { %11827 = vpow2.f32 %v9715_v54 }
 0x4dd   :  { %11829 = vpow2.f32 %v9716_v56 }
 0x4de   :  { %11831 = vpow2.f32 %v9717_v57 }
 0x4e2   :  { %v11826_v58 = vpop.eup %11825 }
 0x4e3   :  { %v8862_v37 = vadd.f32 1.0, %v11826_v58 }
 0x4e5   :  { %11833 = vrcp.f32 %v8862_v37 }
 0x4e6   :  { %v11828_v59 = vpop.eup %11827 }
 0x4e7   :  { %v8863_v62 = vadd.f32 1.0, %v11828_v59  ;;  %v11830_v0 = vpop.eup %11829 }
 0x4e8   :  { %v11832_v2 = vpop.eup %11831  ;;  %v8876_v4 = vadd.f32 1.0, %v11830_v0 }
 0x4e9   :  { %11835 = vrcp.f32 %v8863_v62  ;;  %v8877_v6 = vadd.f32 1.0, %v11832_v2 }
 0x4ea   :  { %11837 = vrcp.f32 %v8876_v4 }
 0x4eb   :  { %11839 = vrcp.f32 %v8877_v6 }
 0x4ef   :  { %v11834_v5 = vpop.eup %11833 }
 0x4f0   :  { %v8882_v11 = vmul.f32 %v11834_v5, %v8846_v39 }
 0x4f2   :  { %v8884_v12 = vadd.f32 %v8882_v11, %v8633_v8 }
 0x4f3   :  { %v11836_v13 = vpop.eup %11835 }
 0x4f4   :  { %v8883_v15 = vmul.f32 %v11836_v13, %v8851_v9  ;;  %11841 = vtanh.f32 %v8884_v12  ;;  %v11838_v17 = vpop.eup %11837 }
 0x4f5   :  { %v11840_v18 = vpop.eup %11839  ;;  %v8888_v19 = vsub.f32 1.0, %v11838_v17  ;;  %v8892_v21 = vmul.f32 %v11838_v17, %v14799_v40 }
 0x4f6   :  { %v8885_v16 = vadd.f32 %v8883_v15, %v8636_v14  ;;  %v8889_v24 = vsub.f32 1.0, %v11840_v18  ;;  %v8893_v27 = vmul.f32 %v11840_v18, %v14912_v31 }
 0x4f8   :  { %11843 = vtanh.f32 %v8885_v16 }
 0x4fe   :  { %v11842_v20 = vpop.eup %11841 }
 0x4ff   :  { %v8890_v23 = vmul.f32 %v11842_v20, %v8888_v19 }
 0x501   :  { %v8894_v25 = vadd.f32 %v8892_v21, %v8890_v23 }
 0x502   :  { %v11844_v26 = vpop.eup %11843 }
 0x503   :  { %v8891_v28 = vmul.f32 %v11844_v26, %v8889_v24  ;;  %8896 = vst [vmem:[%s14944_s13] sm:$0xff] %v8894_v25 }
 0x505   :  { %v8895_v29 = vadd.f32 %v8893_v27, %v8891_v28 }
 0x507   :  { %8897 = vst [vmem:[%s14944_s13 + $0x8] sm:$0xff] %v8895_v29 }

</bundles_post_ra>
